<compile_context>
chip_gen: v7x
topology: tpu7x:2x2x1
jax: 0.10.0
libtpu: 0.0.40
codegen_flags: <defaults>
</compile_context>

<pallas_src>
import jax
import jax.numpy as jnp
from jax import lax
from jax.experimental import pallas as pl
from jax.experimental.pallas import tpu as pltpu


def _make_kernel(H, W, Cin, Cout, tile_h):
    """Kernel closure over the static shape/tiling constants."""
    E = tile_h + 4  # extended rows per step: tile + 2-row halo on each side

    def kernel(x_ref, halo_ref, scale_ref, shift_ref,
               w9p_ref, b9p_ref, w13_ref, b13_ref, w31_ref, b31_ref,
               out_ref):
        ti = pl.program_id(1)

        # ---- assemble extended rows: [2-row top halo | tile | 2-row bottom halo]
        halo = halo_ref[0, 0]                                           # (4, W, Cin) f32
        xe = jnp.concatenate([halo[0:2], x_ref[0], halo[2:4]], axis=0)  # (E, W, Cin)

        # ---- preact = relu(bn(x)) in f32; zero rows outside the true image
        # (conv padding is applied AFTER bn+relu in the module); one bf16 cast.
        pre = jnp.maximum(xe * scale_ref[...] + shift_ref[...], 0.0)
        g = lax.broadcasted_iota(jnp.int32, (E, 1, 1), 0) + ti * tile_h - 2
        pre = jnp.where((g >= 0) & (g < H), pre, 0.0).astype(jnp.bfloat16)

        def mm(t, w):
            """(h, w, k) @ (k, co) -> (h, w, co); bf16 operands, f32 accumulation."""
            h, ww, k = t.shape
            o = jnp.dot(t.reshape(h * ww, k), w, preferred_element_type=jnp.float32)
            return o.reshape(h, ww, -1)

        def shift_w(t, s):
            """result[:, x] = t[:, x + s], zero column shifted in (s in {-1, +1}).

            8-sublane-aligned zero pad + static window slice: boundary zeros come
            from the pad, no full-buffer zeroing, no VMEM scratch round trip."""
            h, w, c = t.shape
            zpad = jnp.zeros((h, 8, c), t.dtype)
            if s > 0:
                return jnp.concatenate([t, zpad], axis=1)[:, s:w + s, :]
            return jnp.concatenate([zpad, t], axis=1)[:, 8 + s:8 + s + w, :]

        def kh_cat(t):
            """(E, W, C) -> (E-2, W, 3C): kh = 0,1,2 taps via free plane slices."""
            return jnp.concatenate([t[0:E - 2], t[1:E - 1], t[2:E]], axis=-1)

        # ---- conv3x3 (pad 1) + fused conv1x1 shortcut (extra output columns),
        # as 3 accumulated K=3*Cin matmuls, one per kw tap.  W shifts act on the
        # narrow Cin-wide tensor; kh taps are free major-axis slices.
        pre_l = shift_w(pre, -1)                      # kw = 0 tap (x - 1)
        pre_r = shift_w(pre, +1)                      # kw = 2 tap (x + 1)
        acc = mm(kh_cat(pre_l), w9p_ref[0])
        acc = acc + mm(kh_cat(pre), w9p_ref[1])
        acc = acc + mm(kh_cat(pre_r), w9p_ref[2])
        acc = acc + b9p_ref[...]                      # (E-2, W, 2*Cout) f32
        res = acc[..., :Cout]                         # conv3x3 output rows (ext 1..E-2)
        shortcut = acc[..., Cout:]                    # conv1x1 shortcut (same rows)

        # ---- conv1x3 (pad (0, 1)): rows unchanged, one K=3*Cout matmul
        res = res.astype(jnp.bfloat16)
        cat13 = jnp.concatenate([shift_w(res, -1), res, shift_w(res, +1)], axis=-1)
        res = mm(cat13, w13_ref[...]) + b13_ref[...]

        # ---- zero intermediate rows that fall outside the image before the
        # row-mixing conv3x1 (its zero padding is over the *intermediate*, which
        # only exists for rows 0..H-1 in the module).
        g2 = lax.broadcasted_iota(jnp.int32, (E - 2, 1, 1), 0) + ti * tile_h - 1
        res = jnp.where((g2 >= 0) & (g2 < H), res, 0.0).astype(jnp.bfloat16)

        # ---- conv3x1 (pad (1, 0)): output = the tile's tile_h rows
        cat31 = jnp.concatenate(
            [res[0:tile_h], res[1:tile_h + 1], res[2:tile_h + 2]], axis=-1)
        res = mm(cat31, w31_ref[...]) + b31_ref[...]  # (tile_h, W, Cout) f32

        # ---- out = shortcut + residual
        out_ref[0] = (shortcut[1:tile_h + 1] + res).astype(out_ref.dtype)

    return kernel


def basic_block_forward(x_nchw, params, *, stride=1, upsample=1, bn_eps=1e-5,
                        tile_h=None):
    # TODO(synk): stride > 1 (strided conv) and bilinear upsample with
    # align_corners=True (upsample > 1) are not implemented in the kernel.
    assert stride == 1 and upsample == 1

    N, Cin, H, W = x_nchw.shape
    Cout = params["w1x1"].shape[1]
    # TODO(synk): pad odd widths in the wrapper (keeps shifts / reshapes
    # (8,128)-tile-aligned and shift_h a pure plane concat).
    assert W % 8 == 0, "width must be a multiple of 8"

    # ---- generation-aware VMEM budget (v7x: 64 MiB physical, v5e/v6e: 128 MiB)
    try:
        vmem_cap = int(pltpu.get_tpu_info().vmem_capacity_bytes)
    except Exception:
        vmem_cap = 128 * 1024 * 1024
    vmem_limit = int(min(vmem_cap * 3 // 4, 100 * 1024 * 1024))

    # ---- pick the H row tile so live intermediates fit comfortably
    if tile_h is None:
        per_row = W * (32 * Cin + 40 * Cout)       # rough live bytes / output row
        tile_h = max(8, (vmem_limit // 2) // max(per_row, 1))
    tile_h = int(min(tile_h, H))
    nt = pl.cdiv(H, tile_h)
    H_ceil = nt * tile_h

    # ---- NCHW -> NHWC (channels on lanes)
    x = jnp.transpose(x_nchw, (0, 2, 3, 1)).astype(jnp.float32)

    # Main tiles (H padded up to a multiple of tile_h) + per-tile 2-row halos.
    x_main = jnp.pad(x, ((0, 0), (0, H_ceil - H), (0, 0), (0, 0)))
    xp = jnp.pad(x, ((0, 0), (2, 2 + H_ceil - H), (0, 0), (0, 0)))
    hrows = (jnp.arange(nt)[:, None] * tile_h
             + jnp.array([0, 1, tile_h + 2, tile_h + 3])[None, :])       # (nt, 4)
    halo = jnp.take(xp, hrows.reshape(-1), axis=1).reshape(N, nt, 4, W, Cin)

    # ---- fold inference-mode BatchNorm into per-channel scale / shift
    inv_std = 1.0 / jnp.sqrt(params["running_var"] + bn_eps)
    scale = (params["gamma"] * inv_std).reshape(1, Cin)
    shift = (params["beta"]
             - params["running_mean"] * params["gamma"] * inv_std).reshape(1, Cin)

    # ---- conv weights: 3x3 rows ordered (kw, kh, cin); 1x1 shortcut fused as
    # extra output columns on the center tap (kw=1, kh=1 -> row block 4).
    w9 = jnp.transpose(params["w3x3"], (1, 0, 2, 3)).reshape(9 * Cin, Cout)
    w1e = jnp.zeros((9 * Cin, Cout), jnp.float32).at[4 * Cin:5 * Cin].set(
        params["w1x1"])
    w9p = jnp.concatenate([w9, w1e], axis=1).reshape(
        3, 3 * Cin, 2 * Cout).astype(jnp.bfloat16)                        # (3, 3Cin, 2Cout)
    b9p = jnp.concatenate([params["b3x3"], params["b1x1"]]).reshape(
        1, 2 * Cout).astype(jnp.float32)
    w13 = params["w1x3"].reshape(3 * Cout, Cout).astype(jnp.bfloat16)
    w31 = params["w3x1"].reshape(3 * Cout, Cout).astype(jnp.bfloat16)
    b13 = params["b1x3"].reshape(1, Cout).astype(jnp.float32)
    b31 = params["b3x1"].reshape(1, Cout).astype(jnp.float32)

    def const_spec(shape):
        zeros = (0,) * len(shape)
        return pl.BlockSpec(shape, lambda n, t: zeros)   # explicit 2-arg index map

    flops = 2 * N * H * W * (9 * Cin * 2 * Cout + 2 * 3 * Cout * Cout)
    bytes_accessed = int(x_main.size * 4 + halo.size * 4
                         + N * H_ceil * W * Cout * 4
                         + (w9p.size + w13.size + w31.size) * 2)
    cost = pl.CostEstimate(flops=int(flops), transcendentals=0,
                           bytes_accessed=bytes_accessed)

    kernel = _make_kernel(H, W, Cin, Cout, tile_h)

    out_nhwc = pl.pallas_call(
        kernel,
        out_shape=jax.ShapeDtypeStruct((N, H_ceil, W, Cout), jnp.float32),
        grid_spec=pltpu.PrefetchScalarGridSpec(
            num_scalar_prefetch=0,
            grid=(N, nt),
            in_specs=[
                pl.BlockSpec((1, tile_h, W, Cin), lambda n, t: (n, t, 0, 0)),
                pl.BlockSpec((1, 1, 4, W, Cin), lambda n, t: (n, t, 0, 0, 0)),
                const_spec((1, Cin)), const_spec((1, Cin)),
                const_spec((3, 3 * Cin, 2 * Cout)), const_spec((1, 2 * Cout)),
                const_spec((3 * Cout, Cout)), const_spec((1, Cout)),
                const_spec((3 * Cout, Cout)), const_spec((1, Cout)),
            ],
            out_specs=pl.BlockSpec((1, tile_h, W, Cout), lambda n, t: (n, t, 0, 0)),
        ),
        compiler_params=pltpu.CompilerParams(
            dimension_semantics=("parallel", "parallel"),
            vmem_limit_bytes=vmem_limit,
        ),
        cost_estimate=cost,
    )(x_main, halo, scale, shift, w9p, b9p, w13, b13, w31, b31)

    out_nhwc = out_nhwc[:, :H]                                  # drop H padding
    return jnp.transpose(out_nhwc, (0, 3, 1, 2))                # NHWC -> NCHW


def basic_block_reference(x_nchw, params, bn_eps=1e-5, matmul_dtype=jnp.float32):
    """Pure-JAX reference (lax convs).  With matmul_dtype=bfloat16 it mirrors the
    kernel's numerics (bf16 conv operands, f32 accumulation)."""
    x = jnp.transpose(x_nchw, (0, 2, 3, 1)).astype(jnp.float32)
    inv_std = 1.0 / jnp.sqrt(params["running_var"] + bn_eps)
    pre = jnp.maximum(
        x * (params["gamma"] * inv_std)
        + (params["beta"] - params["running_mean"] * params["gamma"] * inv_std), 0.0)

    def conv(inp, w_hwio, b, pad):
        y = jax.lax.conv_general_dilated(
            inp.astype(matmul_dtype), w_hwio.astype(matmul_dtype),
            window_strides=(1, 1), padding=pad,
            dimension_numbers=("NHWC", "HWIO", "NHWC"),
            preferred_element_type=jnp.float32)
        return y + b

    sc = conv(pre, params["w1x1"][None, None], params["b1x1"], "VALID")
    r = conv(pre, params["w3x3"], params["b3x3"], [(1, 1), (1, 1)])
    r = conv(r, params["w1x3"][None], params["b1x3"], [(0, 0), (1, 1)])
    r = conv(r, params["w3x1"][:, None], params["b3x1"], [(1, 1), (0, 0)])
    return jnp.transpose(sc + r, (0, 3, 1, 2))


if __name__ == "__main__":
    key = jax.random.PRNGKey(0)
    ks = jax.random.split(key, 16)
    N, Cin, Cout, H, W = 2, 4, 8, 16, 16

    params = {
        "gamma":        1.0 + 0.1 * jax.random.normal(ks[0], (Cin,), jnp.float32),
        "beta":         0.1 * jax.random.normal(ks[1], (Cin,), jnp.float32),
        "running_mean": 0.1 * jax.random.normal(ks[2], (Cin,), jnp.float32),
        "running_var":  1.0 + 0.1 * jax.random.uniform(ks[3], (Cin,), jnp.float32),
        "w1x1": 0.2 * jax.random.normal(ks[4], (Cin, Cout), jnp.float32),
        "b1x1": 0.1 * jax.random.normal(ks[5], (Cout,), jnp.float32),
        "w3x3": 0.2 * jax.random.normal(ks[6], (3, 3, Cin, Cout), jnp.float32),
        "b3x3": 0.1 * jax.random.normal(ks[7], (Cout,), jnp.float32),
        "w1x3": 0.2 * jax.random.normal(ks[8], (3, Cout, Cout), jnp.float32),
        "b1x3": 0.1 * jax.random.normal(ks[9], (Cout,), jnp.float32),
        "w3x1": 0.2 * jax.random.normal(ks[10], (3, Cout, Cout), jnp.float32),
        "b3x1": 0.1 * jax.random.normal(ks[11], (Cout,), jnp.float32),
    }
    x = jax.random.normal(ks[12], (N, Cin, H, W), jnp.float32)

    ref_bf = jax.block_until_ready(
        basic_block_reference(x, params, matmul_dtype=jnp.bfloat16))
    ref_f32 = jax.block_until_ready(
        basic_block_reference(x, params, matmul_dtype=jnp.float32))

    # Exercise: single tile (auto), even multi-tile, and non-divisible multi-tile
    # (tests the H-padding + halo + row-mask paths against the reference).
    for th in (None, 8, 6):
        out = jax.block_until_ready(basic_block_forward(x, params, tile_h=th))
        assert out.shape == (N, Cout, H, W), (th, out.shape)
        # Tight check against a reference with matching (bf16-operand) numerics.
        err_bf = float(jnp.max(jnp.abs(out - ref_bf)))
        assert err_bf < 3e-3, f"tile_h={th}: max abs err vs bf16 reference {err_bf}"
        # Loose sanity check against the full-f32 module semantics
        # (slack accounts only for bf16 operand rounding).
        err_f32 = float(jnp.max(jnp.abs(out - ref_f32)))
        assert err_f32 < 1.5e-1, f"tile_h={th}: max abs err vs f32 reference {err_f32}"

    print("KERNEL_OK")
</pallas_src>

<mosaic_0001>
module attributes {stable_mosaic.version = 11 : i64} {
  func.func @kernel(%arg0: i32, %arg1: i32, %arg2: memref<1x16x16x4xf32, #tpu.memory_space<vmem>>, %arg3: memref<1x1x4x16x4xf32, #tpu.memory_space<vmem>>, %arg4: memref<1x4xf32, #tpu.memory_space<vmem>>, %arg5: memref<1x4xf32, #tpu.memory_space<vmem>>, %arg6: memref<3x12x16xbf16, #tpu.memory_space<vmem>>, %arg7: memref<1x16xf32, #tpu.memory_space<vmem>>, %arg8: memref<24x8xbf16, #tpu.memory_space<vmem>>, %arg9: memref<1x8xf32, #tpu.memory_space<vmem>>, %arg10: memref<24x8xbf16, #tpu.memory_space<vmem>>, %arg11: memref<1x8xf32, #tpu.memory_space<vmem>>, %arg12: memref<1x16x16x8xf32, #tpu.memory_space<vmem>>) attributes {dimension_semantics = [#tpu.dimension_semantics<parallel>, #tpu.dimension_semantics<parallel>], iteration_bounds = array<i64: 2, 1>, scalar_prefetch = 0 : i64, scratch_operands = 0 : i64, tpu.core_type = #tpu.core_type<tc>, window_params = [{transform_indices = @transform_0, window_bounds = array<i64: 1, 16, 16, 4>}, {transform_indices = @transform_1, window_bounds = array<i64: 1, 1, 4, 16, 4>}, {pipeline_mode = #tpu.pipeline_mode<synchronous>, transform_indices = @transform_2, window_bounds = array<i64: 1, 4>}, {pipeline_mode = #tpu.pipeline_mode<synchronous>, transform_indices = @transform_3, window_bounds = array<i64: 1, 4>}, {pipeline_mode = #tpu.pipeline_mode<synchronous>, transform_indices = @transform_4, window_bounds = array<i64: 3, 12, 16>}, {pipeline_mode = #tpu.pipeline_mode<synchronous>, transform_indices = @transform_5, window_bounds = array<i64: 1, 16>}, {pipeline_mode = #tpu.pipeline_mode<synchronous>, transform_indices = @transform_6, window_bounds = array<i64: 24, 8>}, {pipeline_mode = #tpu.pipeline_mode<synchronous>, transform_indices = @transform_7, window_bounds = array<i64: 1, 8>}, {pipeline_mode = #tpu.pipeline_mode<synchronous>, transform_indices = @transform_8, window_bounds = array<i64: 24, 8>}, {pipeline_mode = #tpu.pipeline_mode<synchronous>, transform_indices = @transform_9, window_bounds = array<i64: 1, 8>}, {transform_indices = @transform_10, window_bounds = array<i64: 1, 16, 16, 8>}]} {
    %c0 = arith.constant 0 : index
    %c0_0 = arith.constant 0 : index
    %c0_1 = arith.constant 0 : index
    %c0_2 = arith.constant 0 : index
    %c0_3 = arith.constant 0 : index
    %0 = vector.load %arg3[%c0, %c0_0, %c0_1, %c0_2, %c0_3] : memref<1x1x4x16x4xf32, #tpu.memory_space<vmem>>, vector<1x1x4x16x4xf32>
    %1 = vector.shape_cast %0 : vector<1x1x4x16x4xf32> to vector<4x16x4xf32>
    %2 = vector.extract_strided_slice %1 {offsets = [0, 0, 0], sizes = [2, 16, 4], strides = [1, 1, 1]} : vector<4x16x4xf32> to vector<2x16x4xf32>
    %c0_4 = arith.constant 0 : index
    %c0_5 = arith.constant 0 : index
    %c0_6 = arith.constant 0 : index
    %c0_7 = arith.constant 0 : index
    %3 = vector.load %arg2[%c0_4, %c0_5, %c0_6, %c0_7] : memref<1x16x16x4xf32, #tpu.memory_space<vmem>>, vector<1x16x16x4xf32>
    %4 = vector.shape_cast %3 : vector<1x16x16x4xf32> to vector<16x16x4xf32>
    %5 = vector.extract_strided_slice %1 {offsets = [2, 0, 0], sizes = [2, 16, 4], strides = [1, 1, 1]} : vector<4x16x4xf32> to vector<2x16x4xf32>
    %6 = tpu.concatenate %2, %4, %5 in 0 : vector<2x16x4xf32>, vector<16x16x4xf32>, vector<2x16x4xf32> -> vector<20x16x4xf32>
    %c0_8 = arith.constant 0 : index
    %c0_9 = arith.constant 0 : index
    %7 = vector.load %arg4[%c0_8, %c0_9] : memref<1x4xf32, #tpu.memory_space<vmem>>, vector<1x4xf32>
    %8 = vector.shape_cast %7 : vector<1x4xf32> to vector<1x1x4xf32>
    %9 = vector.broadcast %8 : vector<1x1x4xf32> to vector<20x16x4xf32>
    %10 = arith.mulf %6, %9 : vector<20x16x4xf32>
    %c0_10 = arith.constant 0 : index
    %c0_11 = arith.constant 0 : index
    %11 = vector.load %arg5[%c0_10, %c0_11] : memref<1x4xf32, #tpu.memory_space<vmem>>, vector<1x4xf32>
    %12 = vector.shape_cast %11 : vector<1x4xf32> to vector<1x1x4xf32>
    %13 = vector.broadcast %12 : vector<1x1x4xf32> to vector<20x16x4xf32>
    %14 = arith.addf %10, %13 : vector<20x16x4xf32>
    %cst = arith.constant 0.000000e+00 : f32
    %15 = vector.broadcast %cst : f32 to vector<20x16x4xf32>
    %16 = arith.maximumf %14, %15 : vector<20x16x4xf32>
    %17 = tpu.iota {dimensions = array<i32: 0>} : vector<20x1x1xi32>
    %c16_i32 = arith.constant 16 : i32
    %18 = arith.muli %arg1, %c16_i32 : i32
    %19 = vector.broadcast %18 : i32 to vector<20x1x1xi32>
    %20 = arith.addi %17, %19 : vector<20x1x1xi32>
    %c2_i32 = arith.constant 2 : i32
    %21 = vector.broadcast %c2_i32 : i32 to vector<20x1x1xi32>
    %22 = arith.subi %20, %21 : vector<20x1x1xi32>
    %c0_i32 = arith.constant 0 : i32
    %23 = vector.broadcast %c0_i32 : i32 to vector<20x1x1xi32>
    %24 = arith.cmpi sge, %22, %23 : vector<20x1x1xi32>
    %c16_i32_12 = arith.constant 16 : i32
    %25 = vector.broadcast %c16_i32_12 : i32 to vector<20x1x1xi32>
    %26 = arith.cmpi slt, %22, %25 : vector<20x1x1xi32>
    %27 = arith.andi %24, %26 : vector<20x1x1xi1>
    %cst_13 = arith.constant 0.000000e+00 : f32
    %28 = vector.shape_cast %27 : vector<20x1x1xi1> to vector<20x1x1xi1>
    %29 = vector.broadcast %28 : vector<20x1x1xi1> to vector<20x16x4xi1>
    %30 = vector.broadcast %cst_13 : f32 to vector<20x16x4xf32>
    %31 = arith.select %29, %16, %30 : vector<20x16x4xi1>, vector<20x16x4xf32>
    %32 = arith.truncf %31 : vector<20x16x4xf32> to vector<20x16x4xbf16>
    %cst_14 = arith.constant 0.000000e+00 : bf16
    %33 = vector.broadcast %cst_14 : bf16 to vector<20x8x4xbf16>
    %34 = tpu.concatenate %33, %32 in 1 : vector<20x8x4xbf16>, vector<20x16x4xbf16> -> vector<20x24x4xbf16>
    %35 = vector.extract_strided_slice %34 {offsets = [0, 7, 0], sizes = [20, 16, 4], strides = [1, 1, 1]} : vector<20x24x4xbf16> to vector<20x16x4xbf16>
    %cst_15 = arith.constant 0.000000e+00 : bf16
    %36 = vector.broadcast %cst_15 : bf16 to vector<20x8x4xbf16>
    %37 = tpu.concatenate %32, %36 in 1 : vector<20x16x4xbf16>, vector<20x8x4xbf16> -> vector<20x24x4xbf16>
    %38 = vector.extract_strided_slice %37 {offsets = [0, 1, 0], sizes = [20, 16, 4], strides = [1, 1, 1]} : vector<20x24x4xbf16> to vector<20x16x4xbf16>
    %39 = vector.extract_strided_slice %35 {offsets = [0, 0, 0], sizes = [18, 16, 4], strides = [1, 1, 1]} : vector<20x16x4xbf16> to vector<18x16x4xbf16>
    %40 = vector.extract_strided_slice %35 {offsets = [1, 0, 0], sizes = [18, 16, 4], strides = [1, 1, 1]} : vector<20x16x4xbf16> to vector<18x16x4xbf16>
    %41 = vector.extract_strided_slice %35 {offsets = [2, 0, 0], sizes = [18, 16, 4], strides = [1, 1, 1]} : vector<20x16x4xbf16> to vector<18x16x4xbf16>
    %42 = tpu.concatenate %39, %40, %41 in 2 : vector<18x16x4xbf16>, vector<18x16x4xbf16>, vector<18x16x4xbf16> -> vector<18x16x12xbf16>
    %c0_16 = arith.constant 0 : index
    %c0_17 = arith.constant 0 : index
    %c0_18 = arith.constant 0 : index
    %43 = vector.load %arg6[%c0_16, %c0_17, %c0_18] : memref<3x12x16xbf16, #tpu.memory_space<vmem>>, vector<1x12x16xbf16>
    %44 = vector.shape_cast %43 : vector<1x12x16xbf16> to vector<12x16xbf16>
    %45 = vector.shape_cast %42 : vector<18x16x12xbf16> to vector<288x12xbf16>
    %cst_19 = arith.constant dense<0.000000e+00> : vector<288x16xf32>
    %46 = tpu.matmul %45, %44, %cst_19 {dimension_numbers = #tpu.dot_dimension_numbers<[1], [0], [0], [1], [0, 0, 1, 1], [], []>} : vector<288x12xbf16>, vector<12x16xbf16>, vector<288x16xf32> -> vector<288x16xf32>
    %47 = vector.shape_cast %46 : vector<288x16xf32> to vector<18x16x16xf32>
    %48 = vector.extract_strided_slice %32 {offsets = [0, 0, 0], sizes = [18, 16, 4], strides = [1, 1, 1]} : vector<20x16x4xbf16> to vector<18x16x4xbf16>
    %49 = vector.extract_strided_slice %32 {offsets = [1, 0, 0], sizes = [18, 16, 4], strides = [1, 1, 1]} : vector<20x16x4xbf16> to vector<18x16x4xbf16>
    %50 = vector.extract_strided_slice %32 {offsets = [2, 0, 0], sizes = [18, 16, 4], strides = [1, 1, 1]} : vector<20x16x4xbf16> to vector<18x16x4xbf16>
    %51 = tpu.concatenate %48, %49, %50 in 2 : vector<18x16x4xbf16>, vector<18x16x4xbf16>, vector<18x16x4xbf16> -> vector<18x16x12xbf16>
    %c1 = arith.constant 1 : index
    %c0_20 = arith.constant 0 : index
    %c0_21 = arith.constant 0 : index
    %52 = vector.load %arg6[%c1, %c0_20, %c0_21] : memref<3x12x16xbf16, #tpu.memory_space<vmem>>, vector<1x12x16xbf16>
    %53 = vector.shape_cast %52 : vector<1x12x16xbf16> to vector<12x16xbf16>
    %54 = vector.shape_cast %51 : vector<18x16x12xbf16> to vector<288x12xbf16>
    %cst_22 = arith.constant dense<0.000000e+00> : vector<288x16xf32>
    %55 = tpu.matmul %54, %53, %cst_22 {dimension_numbers = #tpu.dot_dimension_numbers<[1], [0], [0], [1], [0, 0, 1, 1], [], []>} : vector<288x12xbf16>, vector<12x16xbf16>, vector<288x16xf32> -> vector<288x16xf32>
    %56 = vector.shape_cast %55 : vector<288x16xf32> to vector<18x16x16xf32>
    %57 = arith.addf %47, %56 : vector<18x16x16xf32>
    %58 = vector.extract_strided_slice %38 {offsets = [0, 0, 0], sizes = [18, 16, 4], strides = [1, 1, 1]} : vector<20x16x4xbf16> to vector<18x16x4xbf16>
    %59 = vector.extract_strided_slice %38 {offsets = [1, 0, 0], sizes = [18, 16, 4], strides = [1, 1, 1]} : vector<20x16x4xbf16> to vector<18x16x4xbf16>
    %60 = vector.extract_strided_slice %38 {offsets = [2, 0, 0], sizes = [18, 16, 4], strides = [1, 1, 1]} : vector<20x16x4xbf16> to vector<18x16x4xbf16>
    %61 = tpu.concatenate %58, %59, %60 in 2 : vector<18x16x4xbf16>, vector<18x16x4xbf16>, vector<18x16x4xbf16> -> vector<18x16x12xbf16>
    %c2 = arith.constant 2 : index
    %c0_23 = arith.constant 0 : index
    %c0_24 = arith.constant 0 : index
    %62 = vector.load %arg6[%c2, %c0_23, %c0_24] : memref<3x12x16xbf16, #tpu.memory_space<vmem>>, vector<1x12x16xbf16>
    %63 = vector.shape_cast %62 : vector<1x12x16xbf16> to vector<12x16xbf16>
    %64 = vector.shape_cast %61 : vector<18x16x12xbf16> to vector<288x12xbf16>
    %cst_25 = arith.constant dense<0.000000e+00> : vector<288x16xf32>
    %65 = tpu.matmul %64, %63, %cst_25 {dimension_numbers = #tpu.dot_dimension_numbers<[1], [0], [0], [1], [0, 0, 1, 1], [], []>} : vector<288x12xbf16>, vector<12x16xbf16>, vector<288x16xf32> -> vector<288x16xf32>
    %66 = vector.shape_cast %65 : vector<288x16xf32> to vector<18x16x16xf32>
    %67 = arith.addf %57, %66 : vector<18x16x16xf32>
    %c0_26 = arith.constant 0 : index
    %c0_27 = arith.constant 0 : index
    %68 = vector.load %arg7[%c0_26, %c0_27] : memref<1x16xf32, #tpu.memory_space<vmem>>, vector<1x16xf32>
    %69 = vector.shape_cast %68 : vector<1x16xf32> to vector<1x1x16xf32>
    %70 = vector.broadcast %69 : vector<1x1x16xf32> to vector<18x16x16xf32>
    %71 = arith.addf %67, %70 : vector<18x16x16xf32>
    %72 = vector.extract_strided_slice %71 {offsets = [0, 0, 0], sizes = [18, 16, 8], strides = [1, 1, 1]} : vector<18x16x16xf32> to vector<18x16x8xf32>
    %73 = vector.extract_strided_slice %71 {offsets = [0, 0, 8], sizes = [18, 16, 8], strides = [1, 1, 1]} : vector<18x16x16xf32> to vector<18x16x8xf32>
    %74 = arith.truncf %72 : vector<18x16x8xf32> to vector<18x16x8xbf16>
    %cst_28 = arith.constant 0.000000e+00 : bf16
    %75 = vector.broadcast %cst_28 : bf16 to vector<18x8x8xbf16>
    %76 = tpu.concatenate %75, %74 in 1 : vector<18x8x8xbf16>, vector<18x16x8xbf16> -> vector<18x24x8xbf16>
    %77 = vector.extract_strided_slice %76 {offsets = [0, 7, 0], sizes = [18, 16, 8], strides = [1, 1, 1]} : vector<18x24x8xbf16> to vector<18x16x8xbf16>
    %cst_29 = arith.constant 0.000000e+00 : bf16
    %78 = vector.broadcast %cst_29 : bf16 to vector<18x8x8xbf16>
    %79 = tpu.concatenate %74, %78 in 1 : vector<18x16x8xbf16>, vector<18x8x8xbf16> -> vector<18x24x8xbf16>
    %80 = vector.extract_strided_slice %79 {offsets = [0, 1, 0], sizes = [18, 16, 8], strides = [1, 1, 1]} : vector<18x24x8xbf16> to vector<18x16x8xbf16>
    %81 = tpu.concatenate %77, %74, %80 in 2 : vector<18x16x8xbf16>, vector<18x16x8xbf16>, vector<18x16x8xbf16> -> vector<18x16x24xbf16>
    %c0_30 = arith.constant 0 : index
    %c0_31 = arith.constant 0 : index
    %82 = vector.load %arg8[%c0_30, %c0_31] : memref<24x8xbf16, #tpu.memory_space<vmem>>, vector<24x8xbf16>
    %83 = vector.shape_cast %81 : vector<18x16x24xbf16> to vector<288x24xbf16>
    %cst_32 = arith.constant dense<0.000000e+00> : vector<288x8xf32>
    %84 = tpu.matmul %83, %82, %cst_32 {dimension_numbers = #tpu.dot_dimension_numbers<[1], [0], [0], [1], [0, 0, 1, 1], [], []>} : vector<288x24xbf16>, vector<24x8xbf16>, vector<288x8xf32> -> vector<288x8xf32>
    %85 = vector.shape_cast %84 : vector<288x8xf32> to vector<18x16x8xf32>
    %c0_33 = arith.constant 0 : index
    %c0_34 = arith.constant 0 : index
    %86 = vector.load %arg9[%c0_33, %c0_34] : memref<1x8xf32, #tpu.memory_space<vmem>>, vector<1x8xf32>
    %87 = vector.shape_cast %86 : vector<1x8xf32> to vector<1x1x8xf32>
    %88 = vector.broadcast %87 : vector<1x1x8xf32> to vector<18x16x8xf32>
    %89 = arith.addf %85, %88 : vector<18x16x8xf32>
    %90 = tpu.iota {dimensions = array<i32: 0>} : vector<18x1x1xi32>
    %c16_i32_35 = arith.constant 16 : i32
    %91 = arith.muli %arg1, %c16_i32_35 : i32
    %92 = vector.broadcast %91 : i32 to vector<18x1x1xi32>
    %93 = arith.addi %90, %92 : vector<18x1x1xi32>
    %c1_i32 = arith.constant 1 : i32
    %94 = vector.broadcast %c1_i32 : i32 to vector<18x1x1xi32>
    %95 = arith.subi %93, %94 : vector<18x1x1xi32>
    %c0_i32_36 = arith.constant 0 : i32
    %96 = vector.broadcast %c0_i32_36 : i32 to vector<18x1x1xi32>
    %97 = arith.cmpi sge, %95, %96 : vector<18x1x1xi32>
    %c16_i32_37 = arith.constant 16 : i32
    %98 = vector.broadcast %c16_i32_37 : i32 to vector<18x1x1xi32>
    %99 = arith.cmpi slt, %95, %98 : vector<18x1x1xi32>
    %100 = arith.andi %97, %99 : vector<18x1x1xi1>
    %cst_38 = arith.constant 0.000000e+00 : f32
    %101 = vector.shape_cast %100 : vector<18x1x1xi1> to vector<18x1x1xi1>
    %102 = vector.broadcast %101 : vector<18x1x1xi1> to vector<18x16x8xi1>
    %103 = vector.broadcast %cst_38 : f32 to vector<18x16x8xf32>
    %104 = arith.select %102, %89, %103 : vector<18x16x8xi1>, vector<18x16x8xf32>
    %105 = arith.truncf %104 : vector<18x16x8xf32> to vector<18x16x8xbf16>
    %106 = vector.extract_strided_slice %105 {offsets = [0, 0, 0], sizes = [16, 16, 8], strides = [1, 1, 1]} : vector<18x16x8xbf16> to vector<16x16x8xbf16>
    %107 = vector.extract_strided_slice %105 {offsets = [1, 0, 0], sizes = [16, 16, 8], strides = [1, 1, 1]} : vector<18x16x8xbf16> to vector<16x16x8xbf16>
    %108 = vector.extract_strided_slice %105 {offsets = [2, 0, 0], sizes = [16, 16, 8], strides = [1, 1, 1]} : vector<18x16x8xbf16> to vector<16x16x8xbf16>
    %109 = tpu.concatenate %106, %107, %108 in 2 : vector<16x16x8xbf16>, vector<16x16x8xbf16>, vector<16x16x8xbf16> -> vector<16x16x24xbf16>
    %c0_39 = arith.constant 0 : index
    %c0_40 = arith.constant 0 : index
    %110 = vector.load %arg10[%c0_39, %c0_40] : memref<24x8xbf16, #tpu.memory_space<vmem>>, vector<24x8xbf16>
    %111 = vector.shape_cast %109 : vector<16x16x24xbf16> to vector<256x24xbf16>
    %cst_41 = arith.constant dense<0.000000e+00> : vector<256x8xf32>
    %112 = tpu.matmul %111, %110, %cst_41 {dimension_numbers = #tpu.dot_dimension_numbers<[1], [0], [0], [1], [0, 0, 1, 1], [], []>} : vector<256x24xbf16>, vector<24x8xbf16>, vector<256x8xf32> -> vector<256x8xf32>
    %113 = vector.shape_cast %112 : vector<256x8xf32> to vector<16x16x8xf32>
    %c0_42 = arith.constant 0 : index
    %c0_43 = arith.constant 0 : index
    %114 = vector.load %arg11[%c0_42, %c0_43] : memref<1x8xf32, #tpu.memory_space<vmem>>, vector<1x8xf32>
    %115 = vector.shape_cast %114 : vector<1x8xf32> to vector<1x1x8xf32>
    %116 = vector.broadcast %115 : vector<1x1x8xf32> to vector<16x16x8xf32>
    %117 = arith.addf %113, %116 : vector<16x16x8xf32>
    %118 = vector.extract_strided_slice %73 {offsets = [1, 0, 0], sizes = [16, 16, 8], strides = [1, 1, 1]} : vector<18x16x8xf32> to vector<16x16x8xf32>
    %119 = arith.addf %118, %117 : vector<16x16x8xf32>
    %c0_44 = arith.constant 0 : index
    %c0_45 = arith.constant 0 : index
    %c0_46 = arith.constant 0 : index
    %c0_47 = arith.constant 0 : index
    %120 = vector.load %arg12[%c0_44, %c0_45, %c0_46, %c0_47] : memref<1x16x16x8xf32, #tpu.memory_space<vmem>>, vector<1x16x16x8xf32>
    %121 = vector.shape_cast %120 : vector<1x16x16x8xf32> to vector<16x16x8xf32>
    %122 = vector.shape_cast %119 : vector<16x16x8xf32> to vector<1x16x16x8xf32>
    tpu.vector_store %arg12[%c0_44, %c0_45, %c0_46, %c0_47], %122 {strides = array<i32>} : memref<1x16x16x8xf32, #tpu.memory_space<vmem>>, vector<1x16x16x8xf32>,
    return
  }
  func.func @transform_0(%arg0: i32, %arg1: i32) -> (i32, i32, i32, i32) {
    %c0_i32 = arith.constant 0 : i32
    %c0_i32_0 = arith.constant 0 : i32
    %c0_i32_1 = arith.constant 0 : i32
    return %arg0, %arg1, %c0_i32, %c0_i32_0 : i32, i32, i32, i32
  }
  func.func @transform_1(%arg0: i32, %arg1: i32) -> (i32, i32, i32, i32, i32) {
    %c0_i32 = arith.constant 0 : i32
    %c0_i32_0 = arith.constant 0 : i32
    %c0_i32_1 = arith.constant 0 : i32
    %c0_i32_2 = arith.constant 0 : i32
    return %arg0, %arg1, %c0_i32, %c0_i32_0, %c0_i32_1 : i32, i32, i32, i32, i32
  }
  func.func @transform_2(%arg0: i32, %arg1: i32) -> (i32, i32) {
    %c0_i32 = arith.constant 0 : i32
    %c0_i32_0 = arith.constant 0 : i32
    %c0_i32_1 = arith.constant 0 : i32
    return %c0_i32, %c0_i32_0 : i32, i32
  }
  func.func @transform_3(%arg0: i32, %arg1: i32) -> (i32, i32) {
    %c0_i32 = arith.constant 0 : i32
    %c0_i32_0 = arith.constant 0 : i32
    %c0_i32_1 = arith.constant 0 : i32
    return %c0_i32, %c0_i32_0 : i32, i32
  }
  func.func @transform_4(%arg0: i32, %arg1: i32) -> (i32, i32, i32) {
    %c0_i32 = arith.constant 0 : i32
    %c0_i32_0 = arith.constant 0 : i32
    %c0_i32_1 = arith.constant 0 : i32
    %c0_i32_2 = arith.constant 0 : i32
    return %c0_i32, %c0_i32_0, %c0_i32_1 : i32, i32, i32
  }
  func.func @transform_5(%arg0: i32, %arg1: i32) -> (i32, i32) {
    %c0_i32 = arith.constant 0 : i32
    %c0_i32_0 = arith.constant 0 : i32
    %c0_i32_1 = arith.constant 0 : i32
    return %c0_i32, %c0_i32_0 : i32, i32
  }
  func.func @transform_6(%arg0: i32, %arg1: i32) -> (i32, i32) {
    %c0_i32 = arith.constant 0 : i32
    %c0_i32_0 = arith.constant 0 : i32
    %c0_i32_1 = arith.constant 0 : i32
    return %c0_i32, %c0_i32_0 : i32, i32
  }
  func.func @transform_7(%arg0: i32, %arg1: i32) -> (i32, i32) {
    %c0_i32 = arith.constant 0 : i32
    %c0_i32_0 = arith.constant 0 : i32
    %c0_i32_1 = arith.constant 0 : i32
    return %c0_i32, %c0_i32_0 : i32, i32
  }
  func.func @transform_8(%arg0: i32, %arg1: i32) -> (i32, i32) {
    %c0_i32 = arith.constant 0 : i32
    %c0_i32_0 = arith.constant 0 : i32
    %c0_i32_1 = arith.constant 0 : i32
    return %c0_i32, %c0_i32_0 : i32, i32
  }
  func.func @transform_9(%arg0: i32, %arg1: i32) -> (i32, i32) {
    %c0_i32 = arith.constant 0 : i32
    %c0_i32_0 = arith.constant 0 : i32
    %c0_i32_1 = arith.constant 0 : i32
    return %c0_i32, %c0_i32_0 : i32, i32
  }
  func.func @transform_10(%arg0: i32, %arg1: i32) -> (i32, i32, i32, i32) {
    %c0_i32 = arith.constant 0 : i32
    %c0_i32_0 = arith.constant 0 : i32
    %c0_i32_1 = arith.constant 0 : i32
    return %arg0, %arg1, %c0_i32, %c0_i32_0 : i32, i32, i32, i32
  }
}

</mosaic_0001>

<bundles_post_ra>
// kernel: tpu_custom_call.1
= control target key start
LH: loop header
LB: loop body
LE: loop exit
PB: predicated region body
PF: predicated region fallthrough
CT: control target
= control target key end

     0   :  { %s8184_s0 = inlined_call_operand.hbm [shape: f32[2,16,16,4], index: 0, kind: input, shape index: {}]   ;;  %s8185_s1 = inlined_call_operand.hbm [shape: f32[2,1,4,16,4], index: 1, kind: input, shape index: {}]   ;;  %s8186_s2 = inlined_call_operand.hbm [shape: f32[1,4], index: 2, kind: input, shape index: {}]   ;;  %s8187_s3 = inlined_call_operand.hbm [shape: f32[1,4], index: 3, kind: input, shape index: {}]   ;;  %s8188_s4 = inlined_call_operand.hbm [shape: bf16[3,12,16], index: 4, kind: input, shape index: {}]   ;;  %s8189_s5 = inlined_call_operand.hbm [shape: f32[1,16], index: 5, kind: input, shape index: {}]   ;;  %s8190_s6 = inlined_call_operand.hbm [shape: bf16[24,8], index: 6, kind: input, shape index: {}]   ;;  %s8191_s7 = inlined_call_operand.hbm [shape: f32[1,8], index: 7, kind: input, shape index: {}]   ;;  %s8192_s8 = inlined_call_operand.hbm [shape: bf16[24,8], index: 8, kind: input, shape index: {}]   ;;  %s8193_s9 = inlined_call_operand.hbm [shape: f32[1,8], index: 9, kind: input, shape index: {}]   ;;  %s8194_s10 = inlined_call_operand.hbm [shape: f32[2,16,16,8], index: 10, kind: output, shape index: {}]  }
   0x1   :  { %8209 = sst [smem:[#allocation38_spill]] %s8184_s0 }
   0x2   :  { %8210 = sst [smem:[#allocation39_spill]] %s8186_s2 }
   0x3   :  { %8211 = sst [smem:[#allocation40_spill]] %s8187_s3 }
   0x4   :  { %8212 = sst [smem:[#allocation41_spill]] %s8188_s4 }
   0x5   :  { %8213 = sst [smem:[#allocation42_spill]] %s8189_s5 }
   0x6   :  { %8214 = sst [smem:[#allocation43_spill]] %s8190_s6 }
   0x7   :  { %8215 = sst [smem:[#allocation44_spill]] %s8191_s7 }
   0x8   :  { %8216 = sst [smem:[#allocation45_spill]] %s8192_s8 }
   0x9   :  { %8217 = sst [smem:[#allocation46_spill]] %s8194_s10 }
   0xa   :  { %15 = vsyncpa [#allocation3], 0 }
   0xb   :  { %17 = vsyncpa [#allocation3 + $0x1], 0 }
   0xc   :  { %18 = vsyncpa [#allocation6], 0 }
   0xd   :  { %20 = vsyncpa [#allocation6 + $0x1], 0 }
   0xe   :  { %21 = vsyncpa [#allocation9], 0 }
   0xf   :  { %22 = vsyncpa [#allocation12], 0 }
  0x10   :  { %23 = vsyncpa [#allocation15], 0 }
  0x11   :  { %24 = vsyncpa [#allocation18], 0 }
  0x12   :  { %25 = vsyncpa [#allocation4], 0 }
  0x13   :  { %27 = vsyncpa [#allocation4 + $0x1], 0  ;;  %s6006_s13 = smov 0   ;;  %s6008_s14 = smov 0  }
  0x14   :  { %s6010_s15 = smov 0   ;;  %s6012_s16 = smov 0  }
  0x15   :  { %s6014_s17 = smov 0   ;;  %s6016_s18 = smov 0  }
  0x16 LB: > { %8218 = sst [smem:[#allocation28_spill]] %s5919_s16  ;;  %s6037_s19 = sadd.s32 4294967295, %s5927_s18   ;;  %s5927_s18 = sphi %s6016_s18, %s33_s18   ;;  %s5923_s17 = sphi %s6014_s17, %s8276_s17   ;;  %s5919_s16 = sphi %s6012_s16, %s8275_s16   ;;  %s5915_s15 = sphi %s6010_s15, %s8274_s15   ;;  %s5911_s14 = sphi %s6008_s14, %s8273_s14   ;;  %s5907_s13 = sphi %s6006_s13, %s8272_s13  }
  0x17   : > { %p4870_p0 = scmp.ge.s32.totalorder %s5927_s18, 1  ;;  %p8195_p1 = scmp.eq.s32.totalorder %s6037_s19, 0 }
  0x18   : > { %p302_p2 = scmp.lt.s32.totalorder %s5927_s18, 3  ;;  %s5929_s21 = smov [#allocation7]  }
  0x19   : > { %s315_s22 = sshll.u32 %s5929_s21, 4  ;;  %s5930_s23 = smov [#allocation8]   ;;  %s316_s22 = int_to_ptr.vmem [resolvable:$true] %s315_s22 }
  0x1a   : > { %p6042_p3 = pnand %p4870_p0, %p302_p2  ;;  %s326_s24 = sshll.u32 %s5930_s23, 4  ;;  %s6055_s24 = int_to_ptr.vmem [resolvable:$true] %s326_s24 }
  0x1b   : > { %s5931_s26 = smov [#allocation11]   ;;  %s8221_s2 = sld [smem:[#allocation39_spill]] }
  0x1c   : > { %s8219_s20 = scalar_select %p6042_p3, 1, 0 }
  0x1d   : > { %p5409_p5 = pneg %p6042_p3  ;;  %s350_s27 = sshll.u32 %s5931_s26, 4  ;;  %s6057_s27 = int_to_ptr.vmem [resolvable:$true] %s350_s27 }
  0x1f   : > { %p6051_p6 = pnand %p5409_p5, %p8195_p1 }
  0x21   : > { %s5537_s30 = scalar_lea.hbm %s8221_s2, 16  ;;  %p6067_p8 = pneg %p6051_p6 }
  0x22   : > { %p5538_p7 = scmp.ne.s32.totalorder %s8221_s2, %s5537_s30  ;;  %p5544_p11 = scmp.lt.u32.totalorder %s5537_s30, %s8221_s2 }
  0x24   : > { %p5540_p9 = pnand %p6067_p8, %p5538_p7 }
  0x26   : > { %p5541_p10 = pneg %p5540_p9 }
  0x28   : > { %p5546_p12 = pnand %p5544_p11, %p5541_p10 }
  0x2a   : > { %5549 = shalt.err (!%p5546_p12)
}
  0x2b   : > { %s5550_s28 = scalar_lea.vmem %s316_s22, 16  ;;  %s5557_s29 = scalar_lea.vmem %s316_s22, 32 }
  0x2c   : > { %p5551_p13 = scmp.ne.s32.totalorder %s316_s22, %s5550_s28  ;;  %p5558_p5 = scmp.lt.s32.totalorder %s316_s22, %s316_s22 }
  0x2d   : > { %p5559_p4 = scmp.lt.s32.totalorder %s5557_s29, %s5550_s28 }
  0x2e   : > { %p5553_p0 = pnand %p5551_p13, %p6067_p8 }
  0x2f   : > { %p5560_p1 = por %p5559_p4, %p5558_p5 }
  0x30   : > { %p5554_p2 = pneg %p5553_p0 }
  0x32   : > { %p5561_p3 = pnand %p5560_p1, %p5554_p2 }
  0x34   : > { %5564 = shalt.err (!%p5561_p3)
}
  0x35   : > { %5412 = dma.hbm_to_vmem [thread:$0]  (!%p6051_p6), %s8221_s2, 16, %s316_s22, [#allocation6]  }
  0x36   : > { %s8223_s3 = sld [smem:[#allocation40_spill]] }
  0x3c   : > { %s5565_s26 = scalar_lea.hbm %s8223_s3, 16 }
  0x3d   : > { %p5566_p7 = scmp.ne.s32.totalorder %s8223_s3, %s5565_s26  ;;  %p5572_p1 = scmp.lt.u32.totalorder %s5565_s26, %s8223_s3 }
  0x3f   : > { %p5568_p9 = pnand %p5566_p7, %p6067_p8 }
  0x41   : > { %p5569_p4 = pneg %p5568_p9 }
  0x43   : > { %p5574_p3 = pnand %p5572_p1, %p5569_p4 }
  0x45   : > { %5577 = shalt.err (!%p5574_p3)
}
  0x46   : > { %s5578_s22 = scalar_lea.vmem %s6055_s24, 16  ;;  %s5585_s10 = scalar_lea.vmem %s6055_s24, 32 }
  0x47   : > { %p5579_p10 = scmp.ne.s32.totalorder %s6055_s24, %s5578_s22  ;;  %p5586_p13 = scmp.lt.s32.totalorder %s6055_s24, %s6055_s24 }
  0x48   : > { %p5587_p0 = scmp.lt.s32.totalorder %s5585_s10, %s5578_s22 }
  0x49   : > { %p5581_p11 = pnand %p5579_p10, %p6067_p8 }
  0x4a   : > { %p5588_p2 = por %p5587_p0, %p5586_p13 }
  0x4b   : > { %p5582_p12 = pneg %p5581_p11 }
  0x4d   : > { %p5589_p5 = pnand %p5588_p2, %p5582_p12 }
  0x4f   : > { %5592 = shalt.err (!%p5589_p5)
}
  0x50   : > { %5415 = dma.hbm_to_vmem [thread:$0]  (!%p6051_p6), %s8223_s3, 16, %s6055_s24, [#allocation9]  }
  0x51   : > { %s8224_s5 = sld [smem:[#allocation42_spill]] }
  0x57   : > { %s5593_s23 = scalar_lea.hbm %s8224_s5, 16 }
  0x58   : > { %p5594_p7 = scmp.ne.s32.totalorder %s8224_s5, %s5593_s23  ;;  %p5600_p1 = scmp.lt.u32.totalorder %s5593_s23, %s8224_s5 }
  0x5a   : > { %p5596_p9 = pnand %p5594_p7, %p6067_p8 }
  0x5c   : > { %p5597_p4 = pneg %p5596_p9 }
  0x5e   : > { %p5602_p3 = pnand %p5600_p1, %p5597_p4 }
  0x60   : > { %5605 = shalt.err (!%p5602_p3)
}
  0x61   : > { %s5606_s24 = scalar_lea.vmem %s6057_s27, 16  ;;  %s5613_s10 = scalar_lea.vmem %s6057_s27, 32 }
  0x62   : > { %p5607_p10 = scmp.ne.s32.totalorder %s6057_s27, %s5606_s24  ;;  %p5614_p13 = scmp.lt.s32.totalorder %s6057_s27, %s6057_s27 }
  0x63   : > { %p5615_p0 = scmp.lt.s32.totalorder %s5613_s10, %s5606_s24 }
  0x64   : > { %p5609_p11 = pnand %p5607_p10, %p6067_p8 }
  0x65   : > { %p5616_p2 = por %p5615_p0, %p5614_p13 }
  0x66   : > { %p5610_p12 = pneg %p5609_p11 }
  0x68   : > { %p5617_p5 = pnand %p5616_p2, %p5610_p12 }
  0x6a   : > { %5620 = shalt.err (!%p5617_p5)
}
  0x6b   : > { %5421 = dma.hbm_to_vmem [thread:$0]  (!%p6051_p6), %s8224_s5, 16, %s6057_s27, [#allocation12]  }
  0x6c   : > { %s5932_s12 = smov [#allocation14]   ;;  %s5933_s23 = smov [#allocation10]  }
  0x6d   : > { %s374_s30 = sshll.u32 %s5932_s12, 4  ;;  %s336_s26 = sshll.u32 %s5933_s23, 4  ;;  %s375_s30 = int_to_ptr.vmem [resolvable:$true] %s374_s30  ;;  %s337_s26 = int_to_ptr.vmem [resolvable:$true] %s336_s26 }
  0x6e   : > { %s8225_s7 = sld [smem:[#allocation44_spill]] }
  0x74   : > { %s5621_s22 = scalar_lea.hbm %s8225_s7, 16 }
  0x75   : > { %p5622_p7 = scmp.ne.s32.totalorder %s8225_s7, %s5621_s22  ;;  %p5628_p1 = scmp.lt.u32.totalorder %s5621_s22, %s8225_s7 }
  0x77   : > { %p5624_p9 = pnand %p5622_p7, %p6067_p8 }
  0x79   : > { %p5625_p4 = pneg %p5624_p9 }
  0x7b   : > { %p5630_p3 = pnand %p5628_p1, %p5625_p4 }
  0x7d   : > { %5633 = shalt.err (!%p5630_p3)
}
  0x7e   : > { %s5634_s27 = scalar_lea.vmem %s375_s30, 16  ;;  %s5641_s11 = scalar_lea.vmem %s375_s30, 32 }
  0x7f   : > { %p5635_p10 = scmp.ne.s32.totalorder %s375_s30, %s5634_s27  ;;  %p5642_p13 = scmp.lt.s32.totalorder %s375_s30, %s375_s30 }
  0x80   : > { %p5643_p0 = scmp.lt.s32.totalorder %s5641_s11, %s5634_s27 }
  0x81   : > { %p5637_p11 = pnand %p5635_p10, %p6067_p8 }
  0x82   : > { %p5644_p2 = por %p5643_p0, %p5642_p13 }
  0x83   : > { %p5638_p12 = pneg %p5637_p11 }
  0x85   : > { %p5645_p5 = pnand %p5644_p2, %p5638_p12 }
  0x87   : > { %5648 = shalt.err (!%p5645_p5)
}
  0x88   : > { %5427 = dma.hbm_to_vmem [thread:$0]  (!%p6051_p6), %s8225_s7, 16, %s375_s30, [#allocation15]  }
  0x89   : > { %s8226_s4 = sld [smem:[#allocation41_spill]] }
  0x8f   : > { %s5649_s29 = scalar_lea.hbm %s8226_s4, 384 }
  0x90   : > { %p5650_p7 = scmp.ne.s32.totalorder %s8226_s4, %s5649_s29  ;;  %p5656_p1 = scmp.lt.u32.totalorder %s5649_s29, %s8226_s4 }
  0x92   : > { %p5652_p9 = pnand %p5650_p7, %p6067_p8 }
  0x94   : > { %p5653_p4 = pneg %p5652_p9 }
  0x96   : > { %p5658_p3 = pnand %p5656_p1, %p5653_p4 }
  0x98   : > { %5661 = shalt.err (!%p5658_p3)
}
  0x99   : > { %s5662_s27 = scalar_lea.vmem %s337_s26, 384  ;;  %p5670_p13 = scmp.lt.s32.totalorder %s337_s26, %s337_s26 }
  0x9a   : > { %p5663_p10 = scmp.ne.s32.totalorder %s337_s26, %s5662_s27  ;;  %p5671_p0 = scmp.lt.s32.totalorder %s5662_s27, %s5662_s27 }
  0x9c   : > { %p5665_p11 = pnand %p5663_p10, %p6067_p8  ;;  %p5672_p2 = por %p5671_p0, %p5670_p13 }
  0x9e   : > { %p5666_p12 = pneg %p5665_p11 }
  0xa0   : > { %p5673_p5 = pnand %p5672_p2, %p5666_p12 }
  0xa2   : > { %5676 = shalt.err (!%p5673_p5)
}
  0xa3   : > { %s5934_s30 = smov 64   ;;  %s5935_s11 = smov 4  }
  0xa4   : > { %5418 = dma.hbm_to_vmem [thread:$0]  (!%p6051_p6), %s8226_s4, 384, %s337_s26, [#allocation9], %s5934_s30, %s5934_s30, %s5935_s11  }
  0xa5   : > { %s5936_s2 = smov [#allocation13]   ;;  %s5937_s29 = smov [#allocation16]  }
  0xa6   : > { %s360_s28 = sshll.u32 %s5936_s2, 4  ;;  %s384_s22 = sshll.u32 %s5937_s29, 4  ;;  %s361_s28 = int_to_ptr.vmem [resolvable:$true] %s360_s28  ;;  %s385_s22 = int_to_ptr.vmem [resolvable:$true] %s384_s22 }
  0xa7   : > { %s8227_s6 = sld [smem:[#allocation43_spill]] }
  0xad   : > { %s5677_s16 = scalar_lea.hbm %s8227_s6, 192 }
  0xae   : > { %p5678_p7 = scmp.ne.s32.totalorder %s8227_s6, %s5677_s16  ;;  %p5684_p1 = scmp.lt.u32.totalorder %s5677_s16, %s8227_s6 }
  0xb0   : > { %p5680_p9 = pnand %p5678_p7, %p6067_p8 }
  0xb2   : > { %p5681_p4 = pneg %p5680_p9 }
  0xb4   : > { %p5686_p3 = pnand %p5684_p1, %p5681_p4 }
  0xb6   : > { %5689 = shalt.err (!%p5686_p3)
}
  0xb7   : > { %s5690_s26 = scalar_lea.vmem %s361_s28, 192  ;;  %p5698_p13 = scmp.lt.s32.totalorder %s361_s28, %s361_s28 }
  0xb8   : > { %p5691_p10 = scmp.ne.s32.totalorder %s361_s28, %s5690_s26  ;;  %p5699_p0 = scmp.lt.s32.totalorder %s5690_s26, %s5690_s26 }
  0xba   : > { %p5693_p11 = pnand %p5691_p10, %p6067_p8  ;;  %p5700_p2 = por %p5699_p0, %p5698_p13 }
  0xbc   : > { %p5694_p12 = pneg %p5693_p11 }
  0xbe   : > { %p5701_p5 = pnand %p5700_p2, %p5694_p12 }
  0xc0   : > { %5704 = shalt.err (!%p5701_p5)
}
  0xc1   : > { %5424 = dma.hbm_to_vmem [thread:$0]  (!%p6051_p6), %s8227_s6, 192, %s361_s28, [#allocation12], %s5934_s30, %s5934_s30, %s5935_s11  }
  0xc2   : > { %s8228_s8 = sld [smem:[#allocation45_spill]] }
  0xc8   : > { %s5705_s23 = scalar_lea.hbm %s8228_s8, 192 }
  0xc9   : > { %p5706_p7 = scmp.ne.s32.totalorder %s8228_s8, %s5705_s23  ;;  %p5712_p1 = scmp.lt.u32.totalorder %s5705_s23, %s8228_s8 }
  0xcb   : > { %p5708_p9 = pnand %p5706_p7, %p6067_p8 }
  0xcd   : > { %p5709_p4 = pneg %p5708_p9 }
  0xcf   : > { %p5714_p3 = pnand %p5712_p1, %p5709_p4 }
  0xd1   : > { %5717 = shalt.err (!%p5714_p3)
}
  0xd2   : > { %s5718_s16 = scalar_lea.vmem %s385_s22, 192  ;;  %p5726_p13 = scmp.lt.s32.totalorder %s385_s22, %s385_s22 }
  0xd3   : > { %p5719_p10 = scmp.ne.s32.totalorder %s385_s22, %s5718_s16  ;;  %p5727_p0 = scmp.lt.s32.totalorder %s5718_s16, %s5718_s16 }
  0xd5   : > { %p5721_p11 = pnand %p5719_p10, %p6067_p8  ;;  %p5728_p2 = por %p5727_p0, %p5726_p13 }
  0xd7   : > { %p5722_p12 = pneg %p5721_p11 }
  0xd9   : > { %p5729_p5 = pnand %p5728_p2, %p5722_p12 }
  0xdb   : > { %5732 = shalt.err (!%p5729_p5)
}
  0xdc   : > { %5430 = dma.hbm_to_vmem [thread:$0]  (!%p6051_p6), %s8228_s8, 192, %s385_s22, [#allocation15], %s5934_s30, %s5934_s30, %s5935_s11  }
  0xdd   : > { %s5938_s26 = smov [#allocation17]   ;;  %s5733_s12 = scalar_lea.hbm %s8193_s9, 16 }
  0xde   : > { %s398_s3 = sshll.u32 %s5938_s26, 4  ;;  %p5734_p7 = scmp.ne.s32.totalorder %s8193_s9, %s5733_s12  ;;  %s399_s3 = int_to_ptr.vmem [resolvable:$true] %s398_s3 }
  0xdf   : > { %p5740_p1 = scmp.lt.u32.totalorder %s5733_s12, %s8193_s9 }
  0xe0   : > { %p5736_p9 = pnand %p5734_p7, %p6067_p8 }
  0xe2   : > { %p5737_p4 = pneg %p5736_p9 }
  0xe4   : > { %p5742_p3 = pnand %p5740_p1, %p5737_p4 }
  0xe6   : > { %5745 = shalt.err (!%p5742_p3)
}
  0xe7   : > { %s5746_s30 = scalar_lea.vmem %s399_s3, 16  ;;  %s5753_s11 = scalar_lea.vmem %s399_s3, 32 }
  0xe8   : > { %p5747_p10 = scmp.ne.s32.totalorder %s399_s3, %s5746_s30  ;;  %p5754_p13 = scmp.lt.s32.totalorder %s399_s3, %s399_s3 }
  0xe9   : > { %p5755_p0 = scmp.lt.s32.totalorder %s5753_s11, %s5746_s30 }
  0xea   : > { %p5749_p11 = pnand %p5747_p10, %p6067_p8 }
  0xeb   : > { %p5756_p2 = por %p5755_p0, %p5754_p13 }
  0xec   : > { %p5750_p12 = pneg %p5749_p11 }
  0xee   : > { %p5757_p5 = pnand %p5756_p2, %p5750_p12 }
  0xf0   : > { %5760 = shalt.err (!%p5757_p5)
}
  0xf1   : > { %5433 = dma.hbm_to_vmem [thread:$0]  (!%p6051_p6), %s8193_s9, 16, %s399_s3, [#allocation18]  }
  0xf2   : > { %s4869_s21 = sadd.s32 4294967294, %s5927_s18   ;;  %s45_s16 = sadd.s32 1, %s5923_s17 }
  0xf3   : > { %p47_p8 = scmp.ge.s32.totalorder %s45_s16, 2  ;;  %s54_s25 = sadd.s32 1, %s5915_s15 }
  0xf4   : > { %p61_p7 = scmp.ne.s32.totalorder %s5915_s15, %s5911_s14  ;;  %p62_p9 = scmp.eq.s32.totalorder %s5927_s18, 0 }
  0xf5   : > { %s8278_s16 = smov (%p47_p8, %s45_s16), 0  ;;  %p67_p1 = scmp.ne.s32.totalorder %s5911_s14, %s5907_s13 }
  0xf6   : > { %p6238_p4 = por %p62_p9, %p61_p7  ;;  %s49_s27 = ssub.s32 %s5923_s17, %s8278_s16 }
  0xf7   : > { %p289_p6 = scmp.eq.s32.totalorder %s6037_s19, 1  ;;  %p52_p3 = scmp.eq.s32.totalorder %s49_s27, 0 }
  0xf8   : > { %p8230_p10 = scmp.eq.s32.totalorder %s6037_s19, 0  ;;  %p295_p13 = scmp.eq.s32.totalorder %s4869_s21, 1 }
  0xf9   : > { %p6253_p12 = por %p289_p6, %p61_p7  ;;  %p5453_p2 = scmp.lt.s32.totalorder %s5927_s18, 2 }
  0xfa   : > { %p6249_p11 = por %p8230_p10, %p67_p1  ;;  %p6260_p0 = por %p295_p13, %p67_p1 }
  0xfb   : > { %s8232_s3 = scalar_select %p6253_p12, 1, 0 }
  0xfc   : > { %s6258_s5 = scalar_select %p52_p3, %s5915_s15, %s54_s25  }
  0xfd   : > { %s8233_s7 = scalar_select %p6260_p0, 1, 0 }
  0xfe   : > { %s6266_s12 = sand.u32 1, %s5915_s15   ;;  %s5003_s23 = sshll.u32 %s5923_s17, 12 }
  0xff   : > { %s4880_s2 = sshll.u32 %s6266_s12, 8  ;;  %s8234_s0 = sld [smem:[#allocation38_spill]] }
 0x100   : > { %s413_s11 = scalar_lea.vmem [#allocation2], %s4880_s2  ;;  %p6277_p5 = pnand %p5453_p2, %p6238_p4 }
 0x101   : > { %s423_s22 = sshll.u32 %s413_s11, 4  ;;  %s410_s21 = scalar_lea.sflag [#allocation3], %s6266_s12  ;;  %s6281_s22 = int_to_ptr.vmem [resolvable:$true] %s423_s22 }
 0x102   : > { %p5763_p7 = pneg %p6277_p5 }
 0x105   : > { %s6273_s30 = scalar_lea.hbm %s8234_s0, %s5003_s23  ;;  %s5766_s28 = scalar_lea.hbm %s8234_s0, 8192 }
 0x106   : > { %s5761_s25 = scalar_lea.hbm %s6273_s30, 4096  ;;  %p5767_p4 = scmp.lt.u32.totalorder %s6273_s30, %s8234_s0 }
 0x107   : > { %p5762_p8 = scmp.ne.s32.totalorder %s6273_s30, %s5761_s25  ;;  %p5768_p6 = scmp.lt.u32.totalorder %s5766_s28, %s5761_s25 }
 0x108   : > { %p5770_p10 = scmp.lt.u32.totalorder %s5761_s25, %s6273_s30 }
 0x109   : > { %p5764_p9 = pnand %p5763_p7, %p5762_p8  ;;  %p5769_p3 = por %p5768_p6, %p5767_p4 }
 0x10b   : > { %p5765_p1 = pneg %p5764_p9  ;;  %p5771_p13 = por %p5770_p10, %p5769_p3 }
 0x10d   : > { %p5772_p2 = pnand %p5771_p13, %p5765_p1 }
 0x10f   : > { %5775 = shalt.err (!%p5772_p2)
}
 0x110   : > { %s5776_s24 = scalar_lea.vmem %s6281_s22, 4096  ;;  %s5939_s11 = smov [#allocation2]  }
 0x111   : > { %p5777_p8 = scmp.ne.s32.totalorder %s6281_s22, %s5776_s24  ;;  %s5781_s27 = sshll.u32 %s5939_s11, 4  ;;  %s5782_s27 = int_to_ptr.vmem [resolvable:$false] %s5781_s27 }
 0x112   : > { %s5783_s23 = scalar_lea.vmem %s5782_s27, 8192  ;;  %p5784_p12 = scmp.lt.s32.totalorder %s6281_s22, %s5782_s27 }
 0x113   : > { %p5779_p9 = pnand %p5777_p8, %p5763_p7  ;;  %p5785_p4 = scmp.lt.s32.totalorder %s5783_s23, %s5776_s24 }
 0x115   : > { %p5780_p0 = pneg %p5779_p9  ;;  %p5786_p6 = por %p5785_p4, %p5784_p12 }
 0x117   : > { %p5787_p3 = pnand %p5786_p6, %p5780_p0 }
 0x119   : > { %5790 = shalt.err (!%p5787_p3)
}
 0x11a   : > { %s5940_s25 = smov 128   ;;  %s5941_s28 = smov 8  }
 0x11b   : > { %5437 = dma.hbm_to_vmem [thread:$0]  (!%p6277_p5), %s6273_s30, 4096, %s6281_s22, %s410_s21, %s5940_s25, %s5940_s25, %s5941_s28  }
 0x11c   : > { %s433_s2 = sand.u32 1, %s5927_s18   ;;  %s4883_s29 = sshll.u32 %s6266_s12, 6 }
 0x11d   : > { %s5004_s24 = sshll.u32 %s5923_s17, 10  ;;  %s437_s11 = scalar_lea.vmem [#allocation5], %s4883_s29 }
 0x11e   : > { %s446_s27 = sshll.u32 %s437_s11, 4  ;;  %s6320_s4 = scalar_lea.hbm %s8185_s1, %s5004_s24  ;;  %s6322_s27 = int_to_ptr.vmem [resolvable:$true] %s446_s27 }
 0x11f   : > { %s6324_s6 = scalar_lea.sflag [#allocation6], %s433_s2  ;;  %s5791_s8 = scalar_lea.hbm %s6320_s4, 1024 }
 0x120   : > { %p5792_p12 = scmp.ne.s32.totalorder %s6320_s4, %s5791_s8  ;;  %s5796_s0 = scalar_lea.hbm %s8185_s1, 2048 }
 0x121   : > { %p5797_p10 = scmp.lt.u32.totalorder %s6320_s4, %s8185_s1  ;;  %p5798_p13 = scmp.lt.u32.totalorder %s5796_s0, %s5791_s8 }
 0x122   : > { %p5794_p0 = pnand %p5792_p12, %p5763_p7  ;;  %p5800_p8 = scmp.lt.u32.totalorder %s5791_s8, %s6320_s4 }
 0x123   : > { %p5799_p2 = por %p5798_p13, %p5797_p10 }
 0x124   : > { %p5795_p1 = pneg %p5794_p0 }
 0x125   : > { %p5801_p9 = por %p5800_p8, %p5799_p2 }
 0x127   : > { %p5802_p4 = pnand %p5801_p9, %p5795_p1 }
 0x129   : > { %5805 = shalt.err (!%p5802_p4)
}
 0x12a   : > { %s5806_s2 = scalar_lea.vmem %s6322_s27, 1024  ;;  %s5942_s29 = smov [#allocation5]  }
 0x12b   : > { %p5807_p6 = scmp.ne.s32.totalorder %s6322_s27, %s5806_s2  ;;  %s5811_s24 = sshll.u32 %s5942_s29, 4  ;;  %s5812_s24 = int_to_ptr.vmem [resolvable:$false] %s5811_s24 }
 0x12c   : > { %s5813_s11 = scalar_lea.vmem %s5812_s24, 2048  ;;  %p5814_p0 = scmp.lt.s32.totalorder %s6322_s27, %s5812_s24 }
 0x12d   : > { %p5809_p3 = pnand %p5807_p6, %p5763_p7  ;;  %p5815_p10 = scmp.lt.s32.totalorder %s5813_s11, %s5806_s2 }
 0x12f   : > { %p5810_p12 = pneg %p5809_p3  ;;  %p5816_p13 = por %p5815_p10, %p5814_p0 }
 0x131   : > { %p5817_p2 = pnand %p5816_p13, %p5810_p12 }
 0x133   : > { %5820 = shalt.err (!%p5817_p2)
}
 0x134   : > { %5440 = dma.hbm_to_vmem [thread:$0]  (!%p6277_p5), %s6320_s4, 1024, %s6322_s27, %s6324_s6, %s5940_s25, %s5940_s25, %s5941_s28  }
 0x135   : > { %p8236_p7 = scmp.ne.s32.totalorder %s8219_s20, 0 }
 0x137   : > { %458 = sbr.rel (%p8236_p7) target bundleno = 1875 (0x753), region = 60 }
 0x13e   : > { %s6356_s8 = sand.u32 1, %s5911_s14  }
 0x13f   : > { %s4887_s23 = sshll.u32 %s6356_s8, 8  ;;  %s461_s12 = scalar_lea.sflag [#allocation3], %s6356_s8 }
 0x140   : > { %s6362_s10 = scalar_lea.vmem [#allocation2], %s4887_s23 }
 0x141   : > { %5874 = dma.done.wait (%p6249_p11), %s461_s12, 4096  }
 0x142   : > { %5876 = vsyncadd (%p6249_p11), %s461_s12, 4294963200  ;;  %s469_s4 = sand.u32 1, %s6037_s19  }
 0x143   : > { %s470_s6 = scalar_lea.sflag [#allocation6], %s469_s4 }
 0x144   : > { %5878 = dma.done.wait (%p6249_p11), %s470_s6, 1024  }
 0x145   : > { %5880 = vsyncadd (%p6249_p11), %s470_s6, 4294966272  ;;  %p8237_p5 = scmp.eq.s32.totalorder %s6037_s19, 0 }
 0x147   : > { %5882 = dma.done.wait (%p8237_p5), [#allocation6], 16   ;;  %p8238_p1 = pmov %p8237_p5 }
 0x149   : > { %5884 = vsyncadd (%p8238_p1), [#allocation6], 4294967280  ;;  %p8239_p8 = pmov %p8238_p1 }
 0x14a   : > { %p8240_p9 = pmov %p8238_p1 }
 0x14b   : > { %5886 = dma.done.wait (%p8239_p8), [#allocation9], 400  }
 0x14c   : > { %5888 = vsyncadd (%p8240_p9), [#allocation9], 4294966896  ;;  %p8241_p4 = pmov %p8238_p1 }
 0x14d   : > { %p8242_p6 = pmov %p8238_p1 }
 0x14e   : > { %5890 = dma.done.wait (%p8241_p4), [#allocation12], 208  }
 0x14f   : > { %5892 = vsyncadd (%p8242_p6), [#allocation12], 4294967088  ;;  %p8243_p11 = pmov %p8238_p1 }
 0x150   : > { %p8244_p3 = pmov %p8238_p1 }
 0x151   : > { %5894 = dma.done.wait (%p8243_p11), [#allocation15], 208  }
 0x152   : > { %5896 = vsyncadd (%p8244_p3), [#allocation15], 4294967088  ;;  %p8245_p12 = pmov %p8238_p1 }
 0x153   : > { %p8246_p0 = pmov %p8238_p1 }
 0x154   : > { %5898 = dma.done.wait (%p8245_p12), [#allocation18], 16  }
 0x155   : > { %5900 = vsyncadd (%p8246_p0), [#allocation18], 4294967280  ;;  %v8199_v0 = vmov 0.0|0.0   ;;  %vm963_vm0 = vcmask 1043456   ;;  %s5944_s20 = smov 4   ;;  %v558_v3 = vld [vmem:[%s6362_s10] sm:$0xff] }
 0x156   : > { %v6394_v1 = vrot.slane %v8199_v0, 4  ;;  %v559_v4 = vld [vmem:[%s6362_s10 + $0x8] sm:$0xff]  ;;  %v6406_v5 = vld [vmem:[#allocation7] ss:$0 sm:$0xff]  ;;  %v6410_v8 = vld [vmem:[#allocation8] ss:$0 sm:$0xff] }
 0x157   : > { %v601_v6 = vmul.f32 %v6406_v5, %v558_v3  ;;  %v602_v7 = vmul.f32 %v6406_v5, %v559_v4  ;;  %v560_v9 = vld [vmem:[%s6362_s10 + $0x10] sm:$0xff]  ;;  %v561_v10 = vld [vmem:[%s6362_s10 + $0x18] sm:$0xff]  ;;  %v562_v13 = vld [vmem:[%s6362_s10 + $0x20] sm:$0xff]  ;;  %s5945_s19 = smov 8   ;;  %vm1647_vm1 = vcmask 1045504   ;;  %vm1168_vm2 = vcmask 31744  }
 0x158   : > { %1025 = vrot.lane.b32.xlu0 %v6394_v1, %s5944_s20  ;;  %v6400_v2 = vsel %vm963_vm0, 0, %v6394_v1  ;;  %v603_v11 = vmul.f32 %v6406_v5, %v560_v9  ;;  %v604_v12 = vmul.f32 %v6406_v5, %v561_v10  ;;  %v563_v14 = vld [vmem:[%s6362_s10 + $0x28] sm:$0xff]  ;;  %v564_v15 = vld [vmem:[%s6362_s10 + $0x30] sm:$0xff]  ;;  %v605_v18 = vmul.f32 %v6406_v5, %v562_v13  ;;  %v565_v20 = vld [vmem:[%s6362_s10 + $0x38] sm:$0xff]  ;;  %s5947_s26 = smov 16   ;;  %s5948_s25 = smov 120  }
 0x159   : > { %v648_v16 = vadd.f32 %v6410_v8, %v601_v6  ;;  %v649_v17 = vadd.f32 %v6410_v8, %v602_v7  ;;  %v606_v19 = vmul.f32 %v6406_v5, %v563_v14  ;;  %v607_v23 = vmul.f32 %v6406_v5, %v564_v15  ;;  %v566_v34 = vld [vmem:[%s6362_s10 + $0x40] sm:$0xff]  ;;  %v567_v36 = vld [vmem:[%s6362_s10 + $0x48] sm:$0xff]  ;;  %v568_v42 = vld [vmem:[%s6362_s10 + $0x50] sm:$0xff]  ;;  %s8061_s28 = scalar_lea.vmem [#allocation19], %s4887_s23  ;;  %s8266_s27 = sld [smem:[#allocation28_spill]] }
 0x15a   : > { %v650_v21 = vadd.f32 %v6410_v8, %v603_v11  ;;  %v651_v22 = vadd.f32 %v6410_v8, %v604_v12  ;;  %v608_v24 = vmul.f32 %v6406_v5, %v565_v20  ;;  %v652_v27 = vadd.f32 %v6410_v8, %v605_v18  ;;  %v569_v47 = vld [vmem:[%s6362_s10 + $0x58] sm:$0xff]  ;;  %v574_v48 = vld [vmem:[%s6362_s10 + $0x80] sm:$0xff]  ;;  %v575_v52 = vld [vmem:[%s6362_s10 + $0x88] sm:$0xff]  ;;  %s4679_s0 = sshll.u32 %s8061_s28, 4  ;;  %s8267_s2 = sld [smem:[#allocation46_spill]]  ;;  %s8132_s0 = int_to_ptr.vmem [resolvable:$true] %s4679_s0 }
 0x15b   : > { %v688_v25 = vmax.f32 %v648_v16, 0.0  ;;  %v689_v26 = vmax.f32 %v649_v17, 0.0  ;;  %v653_v28 = vadd.f32 %v6410_v8, %v606_v19  ;;  %v654_v32 = vadd.f32 %v6410_v8, %v607_v23  ;;  %v576_v59 = vld [vmem:[%s6362_s10 + $0x90] sm:$0xff]  ;;  %v577_v63 = vld [vmem:[%s6362_s10 + $0x98] sm:$0xff]  ;;  %v578_v3 = vld [vmem:[%s6362_s10 + $0xa0] sm:$0xff]  ;;  %s4663_s24 = scalar_lea.sflag [#allocation4], %s6356_s8 }
 0x15c   : > { %1023 = vrot.lane.b32.xlu0 %v6400_v2, %s5944_s20  ;;  %v690_v29 = vmax.f32 %v650_v21, 0.0  ;;  %v691_v30 = vmax.f32 %v651_v22, 0.0  ;;  %v655_v33 = vadd.f32 %v6410_v8, %v608_v24  ;;  %v692_v38 = vmax.f32 %v652_v27, 0.0  ;;  %v579_v7 = vld [vmem:[%s6362_s10 + $0xa8] sm:$0xff]  ;;  %v580_v13 = vld [vmem:[%s6362_s10 + $0xb0] sm:$0xff]  ;;  %v570_v15 = vld [vmem:[%s6362_s10 + $0x60] sm:$0xff] }
 0x15d   : > { %v6430_v31 = vpack.c.bf16 %v689_v26, %v688_v25  ;;  %v693_v39 = vmax.f32 %v653_v28, 0.0  ;;  %v609_v41 = vmul.f32 %v6406_v5, %v566_v34  ;;  %v694_v44 = vmax.f32 %v654_v32, 0.0  ;;  %v581_v23 = vld [vmem:[%s6362_s10 + $0xb8] sm:$0xff]  ;;  %v582_v28 = vld [vmem:[%s6362_s10 + $0xc0] sm:$0xff]  ;;  %s5821_s11 = scalar_lea.vmem %s8132_s0, 4096  ;;  %p8268_p13 = scmp.ne.s32.totalorder %s8232_s3, 0 }
 0x15e   : > { %v6435_v35 = vpack.c.bf16 %v691_v30, %v690_v29  ;;  %v695_v45 = vmax.f32 %v655_v33, 0.0  ;;  %v610_v46 = vmul.f32 %v6406_v5, %v567_v36  ;;  %v611_v51 = vmul.f32 %v6406_v5, %v568_v42  ;;  %v583_v29 = vld [vmem:[%s6362_s10 + $0xc8] sm:$0xff]  ;;  %v584_v36 = vld [vmem:[%s6362_s10 + $0xd0] sm:$0xff]  ;;  %p5822_p10 = scmp.ne.s32.totalorder %s8132_s0, %s5821_s11  ;;  %s5949_s23 = smov [#allocation19]  }
 0x15f   : > { %v6439_v37 = vrot.slane %v6430_v31, 4  ;;  %v6461_v50 = vpack.c.bf16 %v693_v39, %v692_v38  ;;  %v656_v53 = vadd.f32 %v6410_v8, %v609_v41  ;;  %v617_v56 = vmul.f32 %v6406_v5, %v574_v48  ;;  %s5005_s30 = sshll.u32 %s8266_s27, 12  ;;  %s5825_s12 = sshll.u32 %s5949_s23, 4  ;;  %s5826_s12 = int_to_ptr.vmem [resolvable:$false] %s5825_s12 }
 0x160   : > { %v6442_v40 = vrot.slane %v6435_v35, 4  ;;  %v6468_v54 = vpack.c.bf16 %v695_v45, %v694_v44  ;;  %v657_v55 = vadd.f32 %v6410_v8, %v610_v46  ;;  %v612_v57 = vmul.f32 %v6406_v5, %v569_v47  ;;  %v585_v44 = vld [vmem:[%s6362_s10 + $0xd8] sm:$0xff]  ;;  %s8128_s29 = scalar_lea.hbm %s8267_s2, %s5005_s30  ;;  %p5823_p2 = pnand %p5822_p10, %p8268_p13 }
 0x161   : > { %1029 = vrot.lane.b32.xlu1 %v6439_v37, %s5944_s20  ;;  %v6450_v43 = vsel %vm963_vm0, 0, %v6439_v37  ;;  %v618_v58 = vmul.f32 %v6406_v5, %v575_v52  ;;  %v6478_v60 = vrot.slane %v6461_v50, 4  ;;  %v6481_v61 = vadd.f32 %v6410_v8, %v611_v51  ;;  %v586_v51 = vld [vmem:[%s6362_s10 + $0xe0] sm:$0xff]  ;;  %v587_v52 = vld [vmem:[%s6362_s10 + $0xe8] sm:$0xff]  ;;  %p5828_p5 = scmp.lt.s32.totalorder %s8132_s0, %s5826_s12 }
 0x162   : > { %1096 = vrot.lane.b32.xlu0 %v6450_v43, %s5945_s19  ;;  %v6459_v49 = vsel %vm963_vm0, 0, %v6442_v40  ;;  %v664_v62 = vadd.f32 %v6410_v8, %v617_v56  ;;  %v696_v4 = vmax.f32 %v656_v53, 0.0  ;;  %v6491_v9 = vrot.slane %v6468_v54, 4  ;;  %p5824_p7 = pneg %p5823_p2 }
 0x163   : > { %v665_v6 = vadd.f32 %v6410_v8, %v618_v58  ;;  %v697_v10 = vmax.f32 %v657_v55, 0.0  ;;  %v619_v12 = vmul.f32 %v6406_v5, %v576_v59  ;;  %v6498_v14 = vadd.f32 %v6410_v8, %v612_v57  ;;  %v588_v58 = vld [vmem:[%s6362_s10 + $0xf0] sm:$0xff] }
 0x164   : > { %v704_v11 = vmax.f32 %v664_v62, 0.0  ;;  %v620_v17 = vmul.f32 %v6406_v5, %v577_v63  ;;  %v621_v18 = vmul.f32 %v6406_v5, %v578_v3  ;;  %v6505_v19 = vsel %vm963_vm0, 0, %v6478_v60 }
 0x165   : > { %1098 = vrot.lane.b32.xlu1 %v6439_v37, %s5945_s19  ;;  %v705_v16 = vmax.f32 %v665_v6, 0.0  ;;  %v698_v20 = vmax.f32 %v6481_v61, 0.0  ;;  %v666_v21 = vadd.f32 %v6410_v8, %v619_v12  ;;  %v622_v22 = vmul.f32 %v6406_v5, %v579_v7  ;;  %v571_v12 = vld [vmem:[%s6362_s10 + $0x68] sm:$0xff] }
 0x166   : > { %1100 = vrot.lane.b32.xlu0 %v6459_v49, %s5945_s19  ;;  %v667_v25 = vadd.f32 %v6410_v8, %v620_v17  ;;  %v668_v26 = vadd.f32 %v6410_v8, %v621_v18  ;;  %v623_v27 = vmul.f32 %v6406_v5, %v580_v13  ;;  %v6522_v30 = vsel %vm963_vm0, 0, %v6491_v9 }
 0x167   : > { %v6511_v24 = vpack.c.bf16 %v705_v16, %v704_v11  ;;  %v6525_v32 = vmul.f32 %v6406_v5, %v570_v15  ;;  %v706_v33 = vmax.f32 %v666_v21, 0.0  ;;  %v669_v34 = vadd.f32 %v6410_v8, %v622_v22  ;;  %v589_v11 = vld [vmem:[%s6362_s10 + $0xf8] sm:$0xff] }
 0x168   : > { %v707_v38 = vmax.f32 %v667_v25, 0.0  ;;  %v708_v39 = vmax.f32 %v668_v26, 0.0  ;;  %v624_v41 = vmul.f32 %v6406_v5, %v581_v23  ;;  %v670_v42 = vadd.f32 %v6410_v8, %v623_v27 }
 0x169   : > { %1102 = vrot.lane.b32.xlu1 %v6442_v40, %s5945_s19  ;;  %v6534_v45 = vpack.c.bf16 %v697_v10, %v696_v4  ;;  %v709_v46 = vmax.f32 %v669_v34, 0.0  ;;  %v625_v47 = vmul.f32 %v6406_v5, %v582_v28  ;;  %v626_v48 = vmul.f32 %v6406_v5, %v583_v29  ;;  %v5530_v29 = vld [vmem:[#allocation10] sm:$0x3f]  }
 0x16a   : > { %1031 = vrot.lane.b32.xlu0 %v6459_v49, %s5944_s20  ;;  %v6540_v53 = vpack.c.bf16 %v707_v38, %v706_v33  ;;  %v671_v55 = vadd.f32 %v6410_v8, %v624_v41  ;;  %v710_v56 = vmax.f32 %v670_v42, 0.0  ;;  %v627_v57 = vmul.f32 %v6406_v5, %v584_v36  ;;  %5365 = vmatprep.subr.msk.bf16.mxu0 %vm1647_vm1, %v5530_v29 }
 0x16b   : > { %v6547_v59 = vpack.c.bf16 %v709_v46, %v708_v39  ;;  %v672_v62 = vadd.f32 %v6410_v8, %v625_v47  ;;  %v673_v63 = vadd.f32 %v6410_v8, %v626_v48  ;;  %v628_v3 = vmul.f32 %v6406_v5, %v585_v44  ;;  %5366 = vmatprep.subr.msk.bf16.mxu1 %vm1647_vm1, %v5530_v29 }
 0x16c   : > { %v711_v4 = vmax.f32 %v671_v55, 0.0  ;;  %v674_v6 = vadd.f32 %v6410_v8, %v627_v57  ;;  %v629_v7 = vmul.f32 %v6406_v5, %v586_v51  ;;  %v630_v10 = vmul.f32 %v6406_v5, %v587_v52 }
 0x16d   : > { %1033 = vrot.lane.b32.xlu1 %v6442_v40, %s5944_s20  ;;  %v712_v13 = vmax.f32 %v672_v62, 0.0  ;;  %v713_v15 = vmax.f32 %v673_v63, 0.0  ;;  %v675_v16 = vadd.f32 %v6410_v8, %v628_v3  ;;  %v631_v17 = vmul.f32 %v6406_v5, %v588_v58  ;;  %v573_v58 = vld [vmem:[%s6362_s10 + $0x78] sm:$0xff]  ;;  %v6616_v3 = vld [vmem:[#allocation10 + $0x8] sm:$0x3f]  }
 0x16e   : > { %1035 = vrot.lane.b32.xlu0 %v6505_v19, %s5944_s20  ;;  %v6561_v18 = vpack.c.bf16 %v711_v4, %v710_v56  ;;  %v714_v21 = vmax.f32 %v674_v6, 0.0  ;;  %v676_v22 = vadd.f32 %v6410_v8, %v629_v7  ;;  %v677_v23 = vadd.f32 %v6410_v8, %v630_v10  ;;  %v572_v56 = vld [vmem:[%s6362_s10 + $0x70] sm:$0xff]  ;;  %s5827_s10 = scalar_lea.vmem %s5826_s12, 8192 }
 0x16f   : > { %v6567_v25 = vpack.c.bf16 %v713_v15, %v712_v13  ;;  %v715_v26 = vmax.f32 %v675_v16, 0.0  ;;  %v632_v27 = vmul.f32 %v6406_v5, %v589_v11  ;;  %v678_v28 = vadd.f32 %v6410_v8, %v631_v17  ;;  %p5829_p1 = scmp.lt.s32.totalorder %s5827_s10, %s5821_s11 }
 0x170   : > { %v699_v33 = vmax.f32 %v6498_v14, 0.0  ;;  %v614_v34 = vmul.f32 %v6406_v5, %v571_v12  ;;  %v716_v36 = vmax.f32 %v676_v22, 0.0  ;;  %v717_v38 = vmax.f32 %v677_v23, 0.0 }
 0x171   : > { %1027 = vrot.lane.b32.xlu1 %v6450_v43, %s5944_s20  ;;  %v6576_v39 = vrot.slane %v6534_v45, 4  ;;  %v6578_v41 = vpack.c.bf16 %v715_v26, %v714_v21  ;;  %v679_v42 = vadd.f32 %v6410_v8, %v632_v27  ;;  %v718_v44 = vmax.f32 %v678_v28, 0.0  ;;  %p5830_p8 = por %p5829_p1, %p5828_p5 }
 0x172   : > { %1104 = vrot.lane.b32.xlu0 %v6505_v19, %s5945_s19  ;;  %v6581_v46 = vpack.c.bf16 %v717_v38, %v716_v36  ;;  %v1649_v47 = vsel %vm1647_vm1, %v5530_v29, 0  ;;  %v660_v48 = vadd.f32 %v6410_v8, %v6525_v32  ;;  %v6597_v52 = vpack.c.bf16 %v699_v33, %v698_v20 }
 0x173   : > { %v719_v14 = vmax.f32 %v679_v42, 0.0  ;;  %5102 = vmatpush3.bf16.msra.mxu0 %v1649_v47  ;;  %v6593_v51 = vsel %vm963_vm0, 0, %v6576_v39  ;;  %v661_v55 = vadd.f32 %v6410_v8, %v614_v34  ;;  %5292 = vmatpush3.bf16.msra.mxu1 %v1649_v47  ;;  %v615_v32 = vmul.f32 %v6406_v5, %v572_v56  ;;  %p5831_p9 = pnand %p5830_p8, %p5824_p7 }
 0x174   : > { %v6611_v61 = vrot.slane %v6597_v52, 4  ;;  %v700_v20 = vmax.f32 %v660_v48, 0.0  ;;  %v616_v63 = vmul.f32 %v6406_v5, %v573_v58  ;;  %5367 = vmatprep.subr.msk.bf16.mxu0 %vm1647_vm1, %v6616_v3  ;;  %vm1241_vm3 = vcmask 64512  }
 0x175   : > { %1037 = vrot.lane.b32.xlu1 %v6478_v60, %s5944_s20  ;;  %v6601_v57 = vpack.c.bf16 %v719_v14, %v718_v44  ;;  %v701_v62 = vmax.f32 %v661_v55, 0.0  ;;  %v662_v7 = vadd.f32 %v6410_v8, %v615_v32  ;;  %vm1316_vm4 = vsmask.f32 4352 }
 0x176   : > { %1108 = vrot.lane.b32.xlu0 %v6522_v30, %s5945_s19  ;;  %v6622_v4 = vsel %vm963_vm0, 0, %v6611_v61  ;;  %v663_v10 = vadd.f32 %v6410_v8, %v616_v63  ;;  %vm1592_vm5 = vcmask 97280   ;;  %vm2262_vm6 = vsmask.f32 7424 }
 0x177   : > { %v6624_v6 = vpack.c.bf16 %v701_v62, %v700_v20  ;;  %v702_v11 = vmax.f32 %v662_v7, 0.0  ;;  %vm2980_vm7 = vcmask 1042432   ;;  %vm3144_vm8 = vcmask 130048  }
 0x178   : > { %v703_v12 = vmax.f32 %v663_v10, 0.0  ;;  %vm3499_vm9 = vcmask 195584  }
 0x179   : > { %1106 = vrot.lane.b32.xlu1 %v6478_v60, %s5945_s19  ;;  %v6635_v5 = vrot.slane %v6624_v6, 4 }
 0x17a   : > { %1039 = vrot.lane.b32.xlu0 %v6522_v30, %s5944_s20  ;;  %v6645_v13 = vpack.c.bf16 %v703_v12, %v702_v11 }
 0x17b   : > { %v6643_v8 = vsel %vm963_vm0, 0, %v6635_v5 }
 0x17c   : > { %v6652_v15 = vrot.slane %v6645_v13, 4 }
 0x17d   : > { %1110 = vrot.lane.b32.xlu1 %v6491_v9, %s5945_s19 }
 0x17e   : > { %1043 = vrot.lane.b32.xlu0 %v6593_v51, %s5944_s20  ;;  %v6660_v16 = vsel %vm963_vm0, 0, %v6652_v15 }
 0x181   : > { %1041 = vrot.lane.b32.xlu1 %v6491_v9, %s5944_s20 }
 0x182   : > { %1112 = vrot.lane.b32.xlu0 %v6593_v51, %s5945_s19 }
 0x185   : > { %1045 = vrot.lane.b32.xlu1 %v6576_v39, %s5944_s20 }
 0x186   : > { %1116 = vrot.lane.b32.xlu0 %v6622_v4, %s5945_s19 }
 0x189   : > { %1114 = vrot.lane.b32.xlu1 %v6576_v39, %s5945_s19 }
 0x18a   : > { %1047 = vrot.lane.b32.xlu0 %v6622_v4, %s5944_s20 }
 0x18d   : > { %1118 = vrot.lane.b32.xlu1 %v6611_v61, %s5945_s19 }
 0x18e   : > { %1051 = vrot.lane.b32.xlu0 %v6643_v8, %s5944_s20 }
 0x191   : > { %1049 = vrot.lane.b32.xlu1 %v6611_v61, %s5944_s20 }
 0x192   : > { %1120 = vrot.lane.b32.xlu0 %v6643_v8, %s5945_s19 }
 0x195   : > { %1053 = vrot.lane.b32.xlu1 %v6635_v5, %s5944_s20 }
 0x196   : > { %1124 = vrot.lane.b32.xlu0 %v6660_v16, %s5945_s19 }
 0x199   : > { %1122 = vrot.lane.b32.xlu1 %v6635_v5, %s5945_s19 }
 0x19a   : > { %1828 = vrot.lane.b32.xlu0 %v8199_v0, %s5944_s20 }
 0x19d   : > { %1126 = vrot.lane.b32.xlu1 %v6652_v15, %s5945_s19 }
 0x19e   : > { %1864 = vrot.lane.b32.xlu0 %v6430_v31, %s5945_s19 }
 0x1a1   : > { %1830 = vrot.lane.b32.xlu1 %v6430_v31, %s5944_s20 }
 0x1a2   : > { %1832 = vrot.lane.b32.xlu0 %v6435_v35, %s5944_s20 }
 0x1a5   : > { %1866 = vrot.lane.b32.xlu1 %v6435_v35, %s5945_s19 }
 0x1a6   : > { %1868 = vrot.lane.b32.xlu0 %v6461_v50, %s5945_s19 }
 0x1a9   : > { %1834 = vrot.lane.b32.xlu1 %v6461_v50, %s5944_s20 }
 0x1aa   : > { %1836 = vrot.lane.b32.xlu0 %v6468_v54, %s5944_s20 }
 0x1ad   : > { %1870 = vrot.lane.b32.xlu1 %v6468_v54, %s5945_s19 }
 0x1ae   : > { %1872 = vrot.lane.b32.xlu0 %v6534_v45, %s5945_s19 }
 0x1b1   : > { %1838 = vrot.lane.b32.xlu1 %v6534_v45, %s5944_s20 }
 0x1b2   : > { %1840 = vrot.lane.b32.xlu0 %v6597_v52, %s5944_s20 }
 0x1b5   : > { %1874 = vrot.lane.b32.xlu1 %v6597_v52, %s5945_s19 }
 0x1b6   : > { %1876 = vrot.lane.b32.xlu0 %v6624_v6, %s5945_s19 }
 0x1b9   : > { %1842 = vrot.lane.b32.xlu1 %v6624_v6, %s5944_s20 }
 0x1ba   : > { %1844 = vrot.lane.b32.xlu0 %v6645_v13, %s5944_s20 }
 0x1bd   : > { %1878 = vrot.lane.b32.xlu1 %v6645_v13, %s5945_s19 }
 0x1be   : > { %1880 = vrot.lane.b32.xlu0 %v6511_v24, %s5945_s19 }
 0x1c1   : > { %1846 = vrot.lane.b32.xlu1 %v6511_v24, %s5944_s20 }
 0x1c2   : > { %1848 = vrot.lane.b32.xlu0 %v6540_v53, %s5944_s20 }
 0x1c5   : > { %1882 = vrot.lane.b32.xlu1 %v6540_v53, %s5945_s19 }
 0x1c6   : > { %1884 = vrot.lane.b32.xlu0 %v6547_v59, %s5945_s19 }
 0x1c9   : > { %1850 = vrot.lane.b32.xlu1 %v6547_v59, %s5944_s20 }
 0x1ca   : > { %v1026_v17 = vpop.permute.xlu0 %1025  ;;  %1852 = vrot.lane.b32.xlu0 %v6561_v18, %s5944_s20 }
 0x1cb   : > { %v1172_v33 = vsel %vm1168_vm2, %v6394_v1, %v1026_v17 }
 0x1cd   : > { %1886 = vrot.lane.b32.xlu1 %v6561_v18, %s5945_s19 }
 0x1ce   : > { %v1024_v21 = vpop.permute.xlu0 %1023  ;;  %1888 = vrot.lane.b32.xlu0 %v6567_v25, %s5945_s19 }
 0x1cf   : > { %v1170_v22 = vsel %vm1168_vm2, %v6400_v2, %v1024_v21 }
 0x1d1   : > { %1854 = vrot.lane.b32.xlu1 %v6567_v25, %s5944_s20 }
 0x1d2   : > { %1856 = vrot.lane.b32.xlu0 %v6578_v41, %s5944_s20 }
 0x1d3   : > { %v1030_v23 = vpop.permute.xlu1 %1029 }
 0x1d4   : > { %v1097_v26 = vpop.permute.xlu0 %1096  ;;  %v1176_v20 = vsel %vm1168_vm2, %v6394_v1, %v1030_v23 }
 0x1d5   : > { %v1243_v27 = vsel %vm1241_vm3, %v1170_v22, %v1097_v26  ;;  %1890 = vrot.lane.b32.xlu1 %v6578_v41, %s5945_s19  ;;  %v5946_v22 = vmov 0   ;;  %v6756_v26 = vrot.slane %v6511_v24, 4 }
 0x1d6   : > { %v1317_v28 = vshrl.u32 %v1243_v27, 16  ;;  %v1320_v29 = vshll.u32 %v1243_v27, 16  ;;  %1892 = vrot.lane.b32.xlu0 %v6581_v46, %s5945_s19 }
 0x1d7   : > { %v1099_v34 = vpop.permute.xlu1 %1098 }
 0x1d8   : > { %v1319_v36 = vrot.slane %v1317_v28, 3  ;;  %v1322_v38 = vrot.slane %v1320_v29, 4  ;;  %v1245_v42 = vsel %vm1241_vm3, %v1172_v33, %v1099_v34  ;;  %v1101_v44 = vpop.permute.xlu0 %1100 }
 0x1d9   : > { %v1324_v14 = vshrl.u32 %v1245_v42, 16  ;;  %v1327_v47 = vshll.u32 %v1245_v42, 16  ;;  %1858 = vrot.lane.b32.xlu1 %v6581_v46, %s5944_s20 }
 0x1da   : > { %1860 = vrot.lane.b32.xlu0 %v6601_v57, %s5944_s20  ;;  %v1323_v58 = vor.u32 %v1322_v38, %v1319_v36 }
 0x1db   : > { %v1326_v48 = vrot.slane %v1324_v14, 3  ;;  %v1329_v55 = vrot.slane %v1327_v47, 4  ;;  %v1103_v56 = vpop.permute.xlu1 %1102 }
 0x1dc   : > { %v1032_v32 = vpop.permute.xlu0 %1031  ;;  %v1249_v63 = vsel %vm1241_vm3, %v1176_v20, %v1103_v56 }
 0x1dd   : > { %1894 = vrot.lane.b32.xlu1 %v6601_v57, %s5945_s19  ;;  %v1330_v62 = vor.u32 %v1329_v55, %v1326_v48  ;;  %v1339_v12 = vshrl.u32 %v1249_v63, 16  ;;  %v1342_v17 = vshll.u32 %v1249_v63, 16  ;;  %v1178_v21 = vsel %vm1168_vm2, %v6450_v43, %v1032_v32 }
 0x1de   : > { %1896 = vrot.lane.b32.xlu0 %v8199_v0, %s5945_s19  ;;  %v6770_v48 = vsel %vm963_vm0, 0, %v6756_v26 }
 0x1df   : > { %v1034_v7 = vpop.permute.xlu1 %1033  ;;  %v1331_v10 = vsel %vm1316_vm4, %v1323_v58, %v1330_v62  ;;  %v1341_v29 = vrot.slane %v1339_v12, 3  ;;  %v1344_v43 = vrot.slane %v1342_v17, 4  ;;  %v2035_v12 = vsel %vm1647_vm1, %v6616_v3, 0  ;;  %v6784_v17 = vld [vmem:[#allocation10 + $0x10] sm:$0x3f]  }
 0x1e0   : > { %5103 = vmatprep.mubr.msk.bf16.mxu0 %vm1592_vm5, %v1331_v10  ;;  %v1036_v11 = vpop.permute.xlu0 %1035  ;;  %v1180_v62 = vsel %vm1168_vm2, %v6439_v37, %v1034_v7 }
 0x1e1   : > { %1862 = vrot.lane.b32.xlu1 %v8199_v0, %s5944_s20  ;;  %v1182_v36 = vsel %vm1168_vm2, %v6459_v49, %v1036_v11  ;;  %v1345_v49 = vor.u32 %v1344_v43, %v1341_v29  ;;  %v6780_v11 = vrot.slane %v6540_v53, 4 }
 0x1e2   : > { %2251 = vrot.lane.b32.xlu0 %v5946_v22, %s5944_s20 }
 0x1e3   : > { %v1028_v23 = vpop.permute.xlu1 %1027 }
 0x1e4   : > { %v1174_v27 = vsel %vm1168_vm2, %v6400_v2, %v1028_v23  ;;  %v1105_v28 = vpop.permute.xlu0 %1104 }
 0x1e5   : > { %v1247_v33 = vsel %vm1241_vm3, %v1174_v27, %v1101_v44  ;;  %v1251_v34 = vsel %vm1241_vm3, %v1178_v21, %v1105_v28  ;;  %1898 = vrot.lane.b32.xlu1 %v8199_v0, %s5945_s19 }
 0x1e6   : > { %v1332_v38 = vshrl.u32 %v1247_v33, 16  ;;  %v1335_v42 = vshll.u32 %v1247_v33, 16  ;;  %1055 = vrot.lane.b32.xlu0 %v6660_v16, %s5944_s20  ;;  %v1347_v14 = vshrl.u32 %v1251_v34, 16  ;;  %v1350_v56 = vshll.u32 %v1251_v34, 16 }
 0x1e7   : > { %v1038_v47 = vpop.permute.xlu1 %1037 }
 0x1e8   : > { %v1334_v44 = vrot.slane %v1332_v38, 3  ;;  %v1337_v55 = vrot.slane %v1335_v42, 4  ;;  %v1109_v58 = vpop.permute.xlu0 %1108  ;;  %v1349_v63 = vrot.slane %v1347_v14, 3  ;;  %v1352_v21 = vrot.slane %v1350_v56, 4 }
 0x1e9   : > { %v1255_v32 = vsel %vm1241_vm3, %v1182_v36, %v1109_v58  ;;  %2253 = vrot.lane.b32.xlu1 %v5946_v22, %s5945_s19  ;;  %v1184_v3 = vsel %vm1168_vm2, %v6442_v40, %v1038_v47  ;;  %v6797_v38 = vsel %vm963_vm0, 0, %v6780_v11 }
 0x1ea   : > { %v1338_v20 = vor.u32 %v1337_v55, %v1334_v44  ;;  %1059 = vrot.lane.b32.xlu0 %v6770_v48, %s5944_s20  ;;  %v1362_v23 = vshrl.u32 %v1255_v32, 16  ;;  %v1365_v33 = vshll.u32 %v1255_v32, 16  ;;  %v1353_v42 = vor.u32 %v1352_v21, %v1349_v63 }
 0x1eb   : > { %v1107_v10 = vpop.permute.xlu1 %1106 }
 0x1ec   : > { %v1253_v27 = vsel %vm1241_vm3, %v1180_v62, %v1107_v10  ;;  %v1040_v28 = vpop.permute.xlu0 %1039  ;;  %v1346_v29 = vsel %vm1316_vm4, %v1338_v20, %v1345_v49  ;;  %v1364_v14 = vrot.slane %v1362_v23, 3  ;;  %v1367_v56 = vrot.slane %v1365_v33, 4 }
 0x1ed   : > { %v1354_v34 = vshrl.u32 %v1253_v27, 16  ;;  %v1357_v37 = vshll.u32 %v1253_v27, 16  ;;  %1057 = vrot.lane.b32.xlu1 %v6652_v15, %s5944_s20  ;;  %5104 = vmatmul.mubr.msk.bf16.vlgmr.msra.gmra.mrb[0].mxu0 %vm1592_vm5, %v1346_v29  ;;  %v1186_v40 = vsel %vm1168_vm2, %v6505_v19, %v1040_v28  ;;  %v6810_v10 = vrot.slane %v6547_v59, 4 }
 0x1ee   : > { %1128 = vrot.lane.b32.xlu0 %v6770_v48, %s5945_s19  ;;  %5140 = vmatpush3.bf16.msra.mxu0 %v2035_v12  ;;  %v1368_v21 = vor.u32 %v1367_v56, %v1364_v14 }
 0x1ef   : > { %v1356_v7 = vrot.slane %v1354_v34, 3  ;;  %v1359_v43 = vrot.slane %v1357_v37, 4  ;;  %v1111_v36 = vpop.permute.xlu1 %1110  ;;  %5368 = vmatprep.subr.msk.bf16.mxu0 %vm1647_vm1, %v6784_v17  ;;  %v6823_v33 = vsel %vm963_vm0, 0, %v6810_v10 }
 0x1f0   : > { %v1257_v44 = vsel %vm1241_vm3, %v1184_v3, %v1111_v36  ;;  %v1044_v55 = vpop.permute.xlu0 %1043  ;;  %v6834_v36 = vrot.slane %v6561_v18, 4 }
 0x1f1   : > { %v1360_v58 = vor.u32 %v1359_v43, %v1356_v7  ;;  %v1369_v32 = vshrl.u32 %v1257_v44, 16  ;;  %v1372_v49 = vshll.u32 %v1257_v44, 16  ;;  %1061 = vrot.lane.b32.xlu1 %v6756_v26, %s5944_s20  ;;  %v1190_v19 = vsel %vm1168_vm2, %v6522_v30, %v1044_v55 }
 0x1f2   : > { %1132 = vrot.lane.b32.xlu0 %v6797_v38, %s5945_s19 }
 0x1f3   : > { %v1371_v47 = vrot.slane %v1369_v32, 3  ;;  %v1374_v20 = vrot.slane %v1372_v49, 4  ;;  %v1042_v62 = vpop.permute.xlu1 %1041  ;;  %v1361_v63 = vsel %vm1316_vm4, %v1353_v42, %v1360_v58 }
 0x1f4   : > { %v1113_v12 = vpop.permute.xlu0 %1112  ;;  %5107 = vmatprep.mubr.msk.bf16.mxu0 %vm1592_vm5, %v1361_v63  ;;  %v1188_v30 = vsel %vm1168_vm2, %v6478_v60, %v1042_v62  ;;  %v6845_v62 = vsel %vm963_vm0, 0, %v6834_v36 }
 0x1f5   : > { %v1375_v23 = vor.u32 %v1374_v20, %v1371_v47  ;;  %v1259_v27 = vsel %vm1241_vm3, %v1186_v40, %v1113_v12  ;;  %1130 = vrot.lane.b32.xlu1 %v6756_v26, %s5945_s19 }
 0x1f6   : > { %1063 = vrot.lane.b32.xlu0 %v6797_v38, %s5944_s20  ;;  %v1377_v34 = vshrl.u32 %v1259_v27, 16  ;;  %v1380_v37 = vshll.u32 %v1259_v27, 16 }
 0x1f7   : > { %v1046_v28 = vpop.permute.xlu1 %1045  ;;  %v1376_v29 = vsel %vm1316_vm4, %v1368_v21, %v1375_v23 }
 0x1f8   : > { %v1117_v3 = vpop.permute.xlu0 %1116  ;;  %5108 = vmatmul.mubr.msk.bf16.gmra.mrb[4].mxu0 %vm1592_vm5, %v1376_v29  ;;  %v1379_v42 = vrot.slane %v1377_v34, 3  ;;  %v1382_v14 = vrot.slane %v1380_v37, 4  ;;  %v1192_v60 = vsel %vm1168_vm2, %v6491_v9, %v1046_v28 }
 0x1f9   : > { %v1263_v7 = vsel %vm1241_vm3, %v1190_v19, %v1117_v3  ;;  %1134 = vrot.lane.b32.xlu1 %v6780_v11, %s5945_s19 }
 0x1fa   : > { %1067 = vrot.lane.b32.xlu0 %v6823_v33, %s5944_s20  ;;  %v1392_v44 = vshrl.u32 %v1263_v7, 16  ;;  %v1395_v58 = vshll.u32 %v1263_v7, 16  ;;  %v1383_v63 = vor.u32 %v1382_v14, %v1379_v42 }
 0x1fb   : > { %v1115_v43 = vpop.permute.xlu1 %1114 }
 0x1fc   : > { %v1261_v55 = vsel %vm1241_vm3, %v1188_v30, %v1115_v43  ;;  %v1048_v56 = vpop.permute.xlu0 %1047  ;;  %v1394_v12 = vrot.slane %v1392_v44, 3  ;;  %v1397_v27 = vrot.slane %v1395_v58, 4  ;;  %v6856_v30 = vrot.slane %v6567_v25, 4 }
 0x1fd   : > { %v1384_v32 = vshrl.u32 %v1261_v55, 16  ;;  %v1387_v49 = vshll.u32 %v1261_v55, 16  ;;  %1065 = vrot.lane.b32.xlu1 %v6780_v11, %s5944_s20  ;;  %v1194_v9 = vsel %vm1168_vm2, %v6593_v51, %v1048_v56 }
 0x1fe   : > { %1136 = vrot.lane.b32.xlu0 %v6823_v33, %s5945_s19  ;;  %v1398_v42 = vor.u32 %v1397_v27, %v1394_v12  ;;  %v6869_v58 = vsel %vm963_vm0, 0, %v6856_v30 }
 0x1ff   : > { %v1386_v40 = vrot.slane %v1384_v32, 3  ;;  %v1389_v47 = vrot.slane %v1387_v49, 4  ;;  %v1119_v20 = vpop.permute.xlu1 %1118 }
 0x200   : > { %v1265_v21 = vsel %vm1241_vm3, %v1192_v60, %v1119_v20  ;;  %v1052_v23 = vpop.permute.xlu0 %1051  ;;  %v6880_v20 = vrot.slane %v6578_v41, 4 }
 0x201   : > { %v1390_v19 = vor.u32 %v1389_v47, %v1386_v40  ;;  %v1399_v29 = vshrl.u32 %v1265_v21, 16  ;;  %v1402_v34 = vshll.u32 %v1265_v21, 16  ;;  %1069 = vrot.lane.b32.xlu1 %v6810_v10, %s5944_s20  ;;  %v1198_v51 = vsel %vm1168_vm2, %v6622_v4, %v1052_v23 }
 0x202   : > { %1140 = vrot.lane.b32.xlu0 %v6845_v62, %s5945_s19 }
 0x203   : > { %v1401_v28 = vrot.slane %v1399_v29, 3  ;;  %v1404_v37 = vrot.slane %v1402_v34, 4  ;;  %v1050_v3 = vpop.permute.xlu1 %1049  ;;  %v1391_v7 = vsel %vm1316_vm4, %v1383_v63, %v1390_v19 }
 0x204   : > { %v1121_v43 = vpop.permute.xlu0 %1120  ;;  %5111 = vmatprep.mubr.msk.bf16.mxu0 %vm1592_vm5, %v1391_v7  ;;  %v1196_v4 = vsel %vm1168_vm2, %v6576_v39, %v1050_v3  ;;  %v6891_v3 = vsel %vm963_vm0, 0, %v6880_v20 }
 0x205   : > { %v1405_v14 = vor.u32 %v1404_v37, %v1401_v28  ;;  %v1267_v44 = vsel %vm1241_vm3, %v1194_v9, %v1121_v43  ;;  %1138 = vrot.lane.b32.xlu1 %v6810_v10, %s5945_s19 }
 0x206   : > { %1071 = vrot.lane.b32.xlu0 %v6845_v62, %s5944_s20  ;;  %v1407_v32 = vshrl.u32 %v1267_v44, 16  ;;  %v1410_v49 = vshll.u32 %v1267_v44, 16 }
 0x207   : > { %v1054_v55 = vpop.permute.xlu1 %1053  ;;  %v1406_v56 = vsel %vm1316_vm4, %v1398_v42, %v1405_v14 }
 0x208   : > { %v1125_v60 = vpop.permute.xlu0 %1124  ;;  %5112 = vmatmul.mubr.msk.bf16.gmra.mrb[8].mxu0 %vm1592_vm5, %v1406_v56  ;;  %v1409_v63 = vrot.slane %v1407_v32, 3  ;;  %v1412_v12 = vrot.slane %v1410_v49, 4  ;;  %v1200_v39 = vsel %vm1168_vm2, %v6611_v61, %v1054_v55 }
 0x209   : > { %v1271_v40 = vsel %vm1241_vm3, %v1198_v51, %v1125_v60  ;;  %1142 = vrot.lane.b32.xlu1 %v6834_v36, %s5945_s19 }
 0x20a   : > { %1075 = vrot.lane.b32.xlu0 %v6869_v58, %s5944_s20  ;;  %v1422_v21 = vshrl.u32 %v1271_v40, 16  ;;  %v1425_v19 = vshll.u32 %v1271_v40, 16  ;;  %v1413_v7 = vor.u32 %v1412_v12, %v1409_v63  ;;  %v6900_v40 = vrot.slane %v6581_v46, 4 }
 0x20b   : > { %v1123_v47 = vpop.permute.xlu1 %1122 }
 0x20c   : > { %v1269_v23 = vsel %vm1241_vm3, %v1196_v4, %v1123_v47  ;;  %v1829_v27 = vpop.permute.xlu0 %1828  ;;  %v1424_v43 = vrot.slane %v1422_v21, 3  ;;  %v1427_v44 = vrot.slane %v1425_v19, 4  ;;  %v6911_v19 = vsel %vm963_vm0, 0, %v6900_v40 }
 0x20d   : > { %v1414_v29 = vshrl.u32 %v1269_v23, 16  ;;  %v1417_v34 = vshll.u32 %v1269_v23, 16  ;;  %1073 = vrot.lane.b32.xlu1 %v6834_v36, %s5944_s20  ;;  %v1902_v12 = vsel %vm1168_vm2, 0.0|0.0, %v1829_v27 }
 0x20e   : > { %1144 = vrot.lane.b32.xlu0 %v6869_v58, %s5945_s19  ;;  %v1428_v47 = vor.u32 %v1427_v44, %v1424_v43 }
 0x20f   : > { %v1416_v9 = vrot.slane %v1414_v29, 3  ;;  %v1419_v28 = vrot.slane %v1417_v34, 4  ;;  %v1127_v37 = vpop.permute.xlu1 %1126 }
 0x210   : > { %v1273_v42 = vsel %vm1241_vm3, %v1200_v39, %v1127_v37  ;;  %v1865_v14 = vpop.permute.xlu0 %1864  ;;  %v6924_v39 = vrot.slane %v6601_v57, 4 }
 0x211   : > { %v1420_v51 = vor.u32 %v1419_v28, %v1416_v9  ;;  %v1429_v56 = vshrl.u32 %v1273_v42, 16  ;;  %v1432_v32 = vshll.u32 %v1273_v42, 16  ;;  %1077 = vrot.lane.b32.xlu1 %v6856_v30, %s5944_s20  ;;  %v6914_v29 = vsel %vm1241_vm3, %v1902_v12, %v1865_v14 }
 0x212   : > { %1148 = vrot.lane.b32.xlu0 %v6891_v3, %s5945_s19  ;;  %v6940_v14 = vsel %vm963_vm0, 0, %v6924_v39 }
 0x213   : > { %v1431_v61 = vrot.slane %v1429_v56, 3  ;;  %v1434_v55 = vrot.slane %v1432_v32, 4  ;;  %v1831_v49 = vpop.permute.xlu1 %1830  ;;  %v1421_v60 = vsel %vm1316_vm4, %v1413_v7, %v1420_v51  ;;  %v2452_v7 = vsel %vm1647_vm1, %v6784_v17, 0 }
 0x214   : > { %5115 = vmatprep.mubr.msk.bf16.mxu0 %vm1592_vm5, %v1421_v60  ;;  %v1833_v4 = vpop.permute.xlu0 %1832  ;;  %v1905_v9 = vsel %vm1168_vm2, 0.0|0.0, %v1831_v49 }
 0x215   : > { %v1435_v63 = vor.u32 %v1434_v55, %v1431_v61  ;;  %1146 = vrot.lane.b32.xlu1 %v6856_v30, %s5945_s19  ;;  %v1908_v37 = vsel %vm1168_vm2, %v6430_v31, %v1833_v4 }
 0x216   : > { %1079 = vrot.lane.b32.xlu0 %v6891_v3, %s5944_s20 }
 0x217   : > { %v1867_v21 = vpop.permute.xlu1 %1866  ;;  %v1436_v23 = vsel %vm1316_vm4, %v1428_v47, %v1435_v63 }
 0x218   : > { %5116 = vmatmul.mubr.msk.bf16.gmra.mrb[12].mxu0 %vm1592_vm5, %v1436_v23  ;;  %v1869_v34 = vpop.permute.xlu0 %1868  ;;  %v6936_v43 = vsel %vm1241_vm3, %v1905_v9, %v1867_v21 }
 0x219   : > { %1150 = vrot.lane.b32.xlu1 %v6880_v20, %s5945_s19  ;;  %5141 = vmatprep.mubr.msk.bf16.mxu0 %vm1592_vm5, %v6914_v29  ;;  %v6945_v31 = vsel %vm1241_vm3, %v1908_v37, %v1869_v34 }
 0x21a   : > { %1083 = vrot.lane.b32.xlu0 %v6911_v19, %s5944_s20 }
 0x21b   : > { %v1835_v27 = vpop.permute.xlu1 %1834 }
 0x21c   : > { %v1837_v28 = vpop.permute.xlu0 %1836  ;;  %v1911_v51 = vsel %vm1168_vm2, %v6435_v35, %v1835_v27 }
 0x21d   : > { %1081 = vrot.lane.b32.xlu1 %v6880_v20, %s5944_s20  ;;  %v1914_v32 = vsel %vm1168_vm2, %v6461_v50, %v1837_v28 }
 0x21e   : > { %1152 = vrot.lane.b32.xlu0 %v6911_v19, %s5945_s19 }
 0x21f   : > { %v1871_v42 = vpop.permute.xlu1 %1870 }
 0x220   : > { %5142 = vmatmul.mubr.msk.bf16.vlgmr.msra.gmra.mrb[0].mxu0 %vm1592_vm5, %v6936_v43  ;;  %v1873_v44 = vpop.permute.xlu0 %1872  ;;  %v6962_v61 = vsel %vm1241_vm3, %v1911_v51, %v1871_v42 }
 0x221   : > { %5178 = vmatpush3.bf16.msra.mxu0 %v2452_v7  ;;  %1085 = vrot.lane.b32.xlu1 %v6900_v40, %s5944_s20  ;;  %v6965_v49 = vsel %vm1241_vm3, %v1914_v32, %v1873_v44 }
 0x222   : > { %5145 = vmatprep.mubr.msk.bf16.mxu0 %vm1592_vm5, %v6945_v31  ;;  %1156 = vrot.lane.b32.xlu0 %v6940_v14, %s5945_s19 }
 0x223   : > { %v1839_v17 = vpop.permute.xlu1 %1838 }
 0x224   : > { %v1841_v56 = vpop.permute.xlu0 %1840  ;;  %v1917_v60 = vsel %vm1168_vm2, %v6468_v54, %v1839_v17 }
 0x225   : > { %1154 = vrot.lane.b32.xlu1 %v6900_v40, %s5945_s19  ;;  %v1920_v47 = vsel %vm1168_vm2, %v6534_v45, %v1841_v56 }
 0x226   : > { %1087 = vrot.lane.b32.xlu0 %v6940_v14, %s5944_s20 }
 0x227   : > { %v1875_v55 = vpop.permute.xlu1 %1874 }
 0x228   : > { %5146 = vmatmul.mubr.msk.bf16.gmra.mrb[4].mxu0 %vm1592_vm5, %v6962_v61  ;;  %v1877_v35 = vpop.permute.xlu0 %1876  ;;  %v6984_v63 = vsel %vm1241_vm3, %v1917_v60, %v1875_v55 }
 0x229   : > { %1158 = vrot.lane.b32.xlu1 %v6924_v39, %s5945_s19  ;;  %5149 = vmatprep.mubr.msk.bf16.mxu0 %vm1592_vm5, %v6965_v49  ;;  %v6987_v21 = vsel %vm1241_vm3, %v1920_v47, %v1877_v35 }
 0x22a   : > { %1091 = vrot.lane.b32.xlu0 %v6400_v2, %s5944_s20 }
 0x22b   : > { %v1843_v50 = vpop.permute.xlu1 %1842 }
 0x22c   : > { %v1845_v4 = vpop.permute.xlu0 %1844  ;;  %v1923_v23 = vsel %vm1168_vm2, %v6597_v52, %v1843_v50 }
 0x22d   : > { %1089 = vrot.lane.b32.xlu1 %v6924_v39, %s5944_s20  ;;  %v1926_v27 = vsel %vm1168_vm2, %v6624_v6, %v1845_v4 }
 0x22e   : > { %1160 = vrot.lane.b32.xlu0 %v6400_v2, %s5945_s19 }
 0x22f   : > { %v1879_v12 = vpop.permute.xlu1 %1878 }
 0x230   : > { %5150 = vmatmul.mubr.msk.bf16.gmra.mrb[8].mxu0 %vm1592_vm5, %v6984_v63  ;;  %v1881_v54 = vpop.permute.xlu0 %1880  ;;  %v7004_v9 = vsel %vm1241_vm3, %v1923_v23, %v1879_v12 }
 0x231   : > { %1093 = vrot.lane.b32.xlu1 %v6394_v1, %s5944_s20  ;;  %5153 = vmatprep.mubr.msk.bf16.mxu0 %vm1592_vm5, %v6987_v21  ;;  %v7007_v37 = vsel %vm1241_vm3, %v1926_v27, %v1881_v54 }
 0x232   : > { %1164 = vrot.lane.b32.xlu0 %v6400_v2, %s5945_s19 }
 0x233   : > { %v1847_v45 = vpop.permute.xlu1 %1846 }
 0x234   : > { %v1849_v34 = vpop.permute.xlu0 %1848  ;;  %v1929_v6 = vsel %vm1168_vm2, %v6645_v13, %v1847_v45 }
 0x235   : > { %1162 = vrot.lane.b32.xlu1 %v6394_v1, %s5945_s19  ;;  %v1932_v42 = vsel %vm1168_vm2, %v6511_v24, %v1849_v34 }
 0x237   : > { %v1883_v28 = vpop.permute.xlu1 %1882 }
 0x238   : > { %5154 = vmatmul.mubr.msk.bf16.gmra.mrb[12].mxu0 %vm1592_vm5, %v7004_v9  ;;  %v1885_v2 = vpop.permute.xlu0 %1884  ;;  %v7020_v44 = vsel %vm1241_vm3, %v1929_v6, %v1883_v28  ;;  %v2265_v28 = vshll.u32 %v6914_v29, 16 }
 0x239   : > { %1166 = vrot.lane.b32.xlu1 %v6394_v1, %s5945_s19  ;;  %5157 = vmatprep.mubr.msk.bf16.mxu0 %vm1592_vm5, %v7007_v37  ;;  %v7023_v51 = vsel %vm1241_vm3, %v1932_v42, %v1885_v2 }
 0x23b   : > { %v1851_v52 = vpop.permute.xlu1 %1850 }
 0x23c   : > { %v1853_v7 = vpop.permute.xlu0 %1852  ;;  %v1935_v13 = vsel %vm1168_vm2, %v6540_v53, %v1851_v52 }
 0x23d   : > { %v1938_v24 = vsel %vm1168_vm2, %v6547_v59, %v1853_v7 }
 0x23f   : > { %v1887_v17 = vpop.permute.xlu1 %1886 }
 0x240   : > { %5158 = vmatmul.mubr.msk.bf16.gmra.mrb[16].mxu0 %vm1592_vm5, %v7020_v44  ;;  %v1889_v1 = vpop.permute.xlu0 %1888  ;;  %v7034_v55 = vsel %vm1241_vm3, %v1935_v13, %v1887_v17  ;;  %v2263_v17 = vshrl.u32 %v6914_v29, 16  ;;  %v2275_v13 = vshll.u32 %v6936_v43, 16  ;;  %v2280_v29 = vshrl.u32 %v6945_v31, 16 }
 0x241   : > { %5161 = vmatprep.mubr.msk.bf16.mxu0 %vm1592_vm5, %v7023_v51  ;;  %v7037_v50 = vsel %vm1241_vm3, %v1938_v24, %v1889_v1  ;;  %v2267_v1 = vrot.slane %v2265_v28, 1 }
 0x243   : > { %v1855_v56 = vpop.permute.xlu1 %1854 }
 0x244   : > { %v1857_v32 = vpop.permute.xlu0 %1856  ;;  %v1941_v53 = vsel %vm1168_vm2, %v6561_v18, %v1855_v56 }
 0x245   : > { %v1944_v59 = vsel %vm1168_vm2, %v6567_v25, %v1857_v32 }
 0x247   : > { %v1891_v35 = vpop.permute.xlu1 %1890 }
 0x248   : > { %5162 = vmatmul.mubr.msk.bf16.gmra.mrb[20].mxu0 %vm1592_vm5, %v7034_v55  ;;  %v1893_v60 = vpop.permute.xlu0 %1892  ;;  %v7048_v12 = vsel %vm1241_vm3, %v1941_v53, %v1891_v35 }
 0x249   : > { %5165 = vmatprep.mubr.msk.bf16.mxu0 %vm1592_vm5, %v7037_v50  ;;  %v7051_v45 = vsel %vm1241_vm3, %v1944_v59, %v1893_v60  ;;  %v2273_v59 = vshrl.u32 %v6936_v43, 16 }
 0x24b   : > { %v1859_v4 = vpop.permute.xlu1 %1858 }
 0x24c   : > { %v1861_v47 = vpop.permute.xlu0 %1860  ;;  %v1947_v18 = vsel %vm1168_vm2, %v6578_v41, %v1859_v4 }
 0x24d   : > { %v1950_v25 = vsel %vm1168_vm2, %v6581_v46, %v1861_v47  ;;  %v2268_v47 = vor.u32 %v2267_v1, %v2263_v17 }
 0x24f   : > { %v1895_v54 = vpop.permute.xlu1 %1894 }
 0x250   : > { %5166 = vmatmul.mubr.msk.bf16.gmra.mrb[24].mxu0 %vm1592_vm5, %v7048_v12  ;;  %v1897_v23 = vpop.permute.xlu0 %1896  ;;  %v7063_v2 = vsel %vm1241_vm3, %v1947_v18, %v1895_v54 }
 0x251   : > { %5169 = vmatprep.mubr.msk.bf16.mxu0 %vm1592_vm5, %v7051_v45  ;;  %v1987_v7 = vsel %vm1241_vm3, %v1950_v25, %v1897_v23 }
 0x252   : > { %v2380_v32 = vshll.u32 %v1987_v7, 16 }
 0x253   : > { %v1863_v34 = vpop.permute.xlu1 %1862 }
 0x254   : > { %v2252_v27 = vpop.permute.xlu0 %2251  ;;  %v1953_v52 = vsel %vm1168_vm2, %v6601_v57, %v1863_v34  ;;  %v2282_v57 = vshll.u32 %v6945_v31, 16  ;;  %v2277_v34 = vrot.slane %v2275_v13, 1  ;;  %v2382_v25 = vrot.slane %v2380_v32, 1 }
 0x255   : > { %v2256_v41 = vsel %vm1168_vm2, 0, %v2252_v27  ;;  %v2378_v27 = vshrl.u32 %v1987_v7, 16 }
 0x256   : > { %v2284_v18 = vrot.slane %v2282_v57, 1 }
 0x257   : > { %v1899_v6 = vpop.permute.xlu1 %1898 }
 0x258   : > { %5170 = vmatmul.mubr.msk.bf16.gmra.mrb[28].mxu0 %vm1592_vm5, %v7063_v2  ;;  %v1056_v42 = vpop.permute.xlu0 %1055  ;;  %v1989_v46 = vsel %vm1241_vm3, %v1953_v52, %v1899_v6  ;;  %v2285_v1 = vor.u32 %v2284_v18, %v2280_v29 }
 0x259   : > { %5173 = vmatprep.mubr.msk.bf16.mxu0 %vm1592_vm5, %v1987_v7  ;;  %v2387_v60 = vshll.u32 %v1989_v46, 16  ;;  %v1202_v53 = vsel %vm1168_vm2, %v6643_v8, %v1056_v42  ;;  %v2385_v52 = vshrl.u32 %v1989_v46, 16  ;;  %v2278_v7 = vor.u32 %v2277_v34, %v2273_v59 }
 0x25b   : > { %v2254_v56 = vpop.permute.xlu1 %2253  ;;  %v2389_v6 = vrot.slane %v2387_v60, 1  ;;  %v2296_v60 = vshll.u32 %v6965_v49, 16 }
 0x25c   : > { %v2258_v24 = vsel %vm1241_vm3, %v2256_v41, %v2254_v56  ;;  %v1060_v35 = vpop.permute.xlu0 %1059  ;;  %v2289_v56 = vshll.u32 %v6962_v61, 16 }
 0x25d   : > { %v2269_v4 = vshll.u32 %v2258_v24, 16  ;;  %v1206_v43 = vsel %vm1168_vm2, %v6660_v16, %v1060_v35  ;;  %v2390_v57 = vor.u32 %v2389_v6, %v2385_v52 }
 0x25f   : > { %v7081_v54 = vrot.slane %v2269_v4, 1  ;;  %v1058_v23 = vpop.permute.xlu1 %1057 }
 0x260   : > { %5174 = vmatmul.mubr.msk.bf16.gmra.mrb[32].mxu0 %vm1592_vm5, %v1989_v46  ;;  %v1129_v28 = vpop.permute.xlu0 %1128  ;;  %v2383_v46 = vor.u32 %v2382_v25, %v2378_v27  ;;  %v1204_v32 = vsel %vm1168_vm2, %v6635_v5, %v1058_v23  ;;  %v2287_v5 = vshrl.u32 %v6962_v61, 16  ;;  %v2291_v23 = vrot.slane %v2289_v56, 1 }
 0x261   : > { %v2272_v8 = vsel %vm2262_vm6, %v2268_v47, %v7081_v54  ;;  %v1275_v42 = vsel %vm1241_vm3, %v1202_v53, %v1129_v28  ;;  %v2279_v16 = vsel %vm2262_vm6, %v2278_v7, %v7081_v54  ;;  %v7103_v34 = vsel %vm2262_vm6, %v2390_v57, %v7081_v54 }
 0x262   : > { %5179 = vmatprep.mubr.msk.bf16.mxu0 %vm1592_vm5, %v2272_v8  ;;  %v1437_v31 = vshrl.u32 %v1275_v42, 16  ;;  %v1440_v41 = vshll.u32 %v1275_v42, 16  ;;  %v7099_v29 = vsel %vm2262_vm6, %v2383_v46, %v7081_v54  ;;  %v2286_v27 = vsel %vm2262_vm6, %v2285_v1, %v7081_v54 }
 0x263   : > { %v1062_v17 = vpop.permute.xlu1 %1061  ;;  %v2294_v8 = vshrl.u32 %v6965_v49, 16  ;;  %v2298_v42 = vrot.slane %v2296_v60, 1  ;;  %v2303_v57 = vshll.u32 %v6984_v63, 16 }
 0x264   : > { %v1133_v13 = vpop.permute.xlu0 %1132  ;;  %v1439_v4 = vrot.slane %v1437_v31, 3  ;;  %v1442_v53 = vrot.slane %v1440_v41, 4  ;;  %v1208_v28 = vsel %vm1168_vm2, %v6652_v15, %v1062_v17 }
 0x265   : > { %v1279_v24 = vsel %vm1241_vm3, %v1206_v43, %v1133_v13  ;;  %v2292_v13 = vor.u32 %v2291_v23, %v2287_v5  ;;  %v2301_v5 = vshrl.u32 %v6984_v63, 16 }
 0x266   : > { %v1452_v47 = vshrl.u32 %v1279_v24, 16  ;;  %v1455_v59 = vshll.u32 %v1279_v24, 16  ;;  %v1443_v61 = vor.u32 %v1442_v53, %v1439_v4  ;;  %v2299_v24 = vor.u32 %v2298_v42, %v2294_v8 }
 0x267   : > { %v1131_v35 = vpop.permute.xlu1 %1130  ;;  %v2293_v60 = vsel %vm2262_vm6, %v2292_v13, %v7081_v54  ;;  %v2324_v13 = vshll.u32 %v7007_v37, 16 }
 0x268   : > { %v1277_v18 = vsel %vm1241_vm3, %v1204_v32, %v1131_v35  ;;  %5180 = vmatmul.mubr.msk.bf16.vlgmr.msra.gmra.mrb[0].mxu0 %vm1592_vm5, %v2279_v16  ;;  %v1064_v25 = vpop.permute.xlu0 %1063  ;;  %v1454_v41 = vrot.slane %v1452_v47, 3  ;;  %v1457_v7 = vrot.slane %v1455_v59, 4  ;;  %v2310_v16 = vshll.u32 %v6987_v21, 16 }
 0x269   : > { %v1444_v52 = vshrl.u32 %v1277_v18, 16  ;;  %v1447_v6 = vshll.u32 %v1277_v18, 16  ;;  %5183 = vmatprep.mubr.msk.bf16.mxu0 %vm1592_vm5, %v2286_v27  ;;  %v1210_v49 = vsel %vm1168_vm2, %v6770_v48, %v1064_v25  ;;  %v2300_v23 = vsel %vm2262_vm6, %v2299_v24, %v7081_v54 }
 0x26a   : > { %v1458_v4 = vor.u32 %v1457_v7, %v1454_v41  ;;  %v2305_v48 = vrot.slane %v2303_v57, 1  ;;  %v2308_v27 = vshrl.u32 %v6987_v21, 16 }
 0x26b   : > { %v1446_v43 = vrot.slane %v1444_v52, 3  ;;  %v1449_v31 = vrot.slane %v1447_v6, 4  ;;  %v1135_v56 = vpop.permute.xlu1 %1134  ;;  %v2312_v52 = vrot.slane %v2310_v16, 1 }
 0x26c   : > { %v1281_v1 = vsel %vm1241_vm3, %v1208_v28, %v1135_v56  ;;  %v1068_v46 = vpop.permute.xlu0 %1067  ;;  %v2306_v21 = vor.u32 %v2305_v48, %v2301_v5 }
 0x26d   : > { %v1459_v15 = vshrl.u32 %v1281_v1, 16  ;;  %v1462_v17 = vshll.u32 %v1281_v1, 16  ;;  %v1450_v32 = vor.u32 %v1449_v31, %v1446_v43  ;;  %v1214_v63 = vsel %vm1168_vm2, %v6797_v38, %v1068_v46 }
 0x26e   : > { %v2317_v43 = vshll.u32 %v7004_v9, 16  ;;  %v2313_v56 = vor.u32 %v2312_v52, %v2308_v27  ;;  %v2307_v57 = vsel %vm2262_vm6, %v2306_v21, %v7081_v54  ;;  %v2331_v52 = vshll.u32 %v7020_v44, 16 }
 0x26f   : > { %v1461_v53 = vrot.slane %v1459_v15, 3  ;;  %v1464_v35 = vrot.slane %v1462_v17, 4  ;;  %v1066_v47 = vpop.permute.xlu1 %1065  ;;  %v1451_v59 = vsel %vm1316_vm4, %v1443_v61, %v1450_v32  ;;  %v2315_v32 = vshrl.u32 %v7004_v9, 16 }
 0x270   : > { %5184 = vmatmul.mubr.msk.bf16.gmra.mrb[4].mxu0 %vm1592_vm5, %v2293_v60  ;;  %v1137_v18 = vpop.permute.xlu0 %1136  ;;  %5119 = vmatprep.mubr.msk.bf16.mxu1 %vm1592_vm5, %v1451_v59  ;;  %v1212_v41 = vsel %vm1168_vm2, %v6756_v26, %v1066_v47  ;;  %v2319_v24 = vrot.slane %v2317_v43, 1  ;;  %v2314_v26 = vsel %vm2262_vm6, %v2313_v56, %v7081_v54  ;;  %v2326_v47 = vrot.slane %v2324_v13, 1 }
 0x271   : > { %v1465_v25 = vor.u32 %v1464_v35, %v1461_v53  ;;  %5187 = vmatprep.mubr.msk.bf16.mxu0 %vm1592_vm5, %v2300_v23  ;;  %v1283_v28 = vsel %vm1241_vm3, %v1210_v49, %v1137_v18  ;;  %v2322_v35 = vshrl.u32 %v7007_v37, 16  ;;  %v2329_v56 = vshrl.u32 %v7020_v44, 16 }
 0x272   : > { %v1467_v6 = vshrl.u32 %v1283_v28, 16  ;;  %v1470_v8 = vshll.u32 %v1283_v28, 16  ;;  %v2320_v27 = vor.u32 %v2319_v24, %v2315_v32 }
 0x273   : > { %v1070_v42 = vpop.permute.xlu1 %1069  ;;  %v1466_v61 = vsel %vm1316_vm4, %v1458_v4, %v1465_v25 }
 0x274   : > { %v1141_v31 = vpop.permute.xlu0 %1140  ;;  %5120 = vmatmul.mubr.msk.bf16.vlgmr.msra.gmra.mrb[0].mxu1 %vm1592_vm5, %v1466_v61  ;;  %v1469_v38 = vrot.slane %v1467_v6, 3  ;;  %v1472_v1 = vrot.slane %v1470_v8, 4  ;;  %v1216_v60 = vsel %vm1168_vm2, %v6780_v11, %v1070_v42  ;;  %v2327_v8 = vor.u32 %v2326_v47, %v2322_v35 }
 0x275   : > { %v1287_v7 = vsel %vm1241_vm3, %v1214_v63, %v1141_v31  ;;  %v2338_v42 = vshll.u32 %v7023_v51, 16  ;;  %v2321_v61 = vsel %vm2262_vm6, %v2320_v27, %v7081_v54  ;;  %v2352_v35 = vshll.u32 %v7037_v50, 16 }
 0x276   : > { %v1482_v15 = vshrl.u32 %v1287_v7, 16  ;;  %v1485_v17 = vshll.u32 %v1287_v7, 16  ;;  %v1473_v9 = vor.u32 %v1472_v1, %v1469_v38  ;;  %v2328_v13 = vsel %vm2262_vm6, %v2327_v8, %v7081_v54 }
 0x277   : > { %v1139_v46 = vpop.permute.xlu1 %1138  ;;  %v2336_v1 = vshrl.u32 %v7023_v51, 16 }
 0x278   : > { %v1285_v16 = vsel %vm1241_vm3, %v1212_v41, %v1139_v46  ;;  %5188 = vmatmul.mubr.msk.bf16.gmra.mrb[8].mxu0 %vm1592_vm5, %v2307_v57  ;;  %v1072_v49 = vpop.permute.xlu0 %1071  ;;  %v1484_v23 = vrot.slane %v1482_v15, 3  ;;  %v1487_v18 = vrot.slane %v1485_v17, 4  ;;  %v2340_v15 = vrot.slane %v2338_v42, 1 }
 0x279   : > { %v1474_v4 = vshrl.u32 %v1285_v16, 16  ;;  %v1477_v53 = vshll.u32 %v1285_v16, 16  ;;  %5191 = vmatprep.mubr.msk.bf16.mxu0 %vm1592_vm5, %v2314_v26  ;;  %v1218_v37 = vsel %vm1168_vm2, %v6823_v33, %v1072_v49  ;;  %v2333_v33 = vrot.slane %v2331_v52, 1 }
 0x27a   : > { %v1488_v43 = vor.u32 %v1487_v18, %v1484_v23  ;;  %v2345_v26 = vshll.u32 %v7034_v55, 16  ;;  %v2343_v18 = vshrl.u32 %v7034_v55, 16 }
 0x27b   : > { %v1476_v59 = vrot.slane %v1474_v4, 3  ;;  %v1479_v5 = vrot.slane %v1477_v53, 4  ;;  %v1143_v48 = vpop.permute.xlu1 %1142  ;;  %v2334_v51 = vor.u32 %v2333_v33, %v2329_v56  ;;  %v2341_v53 = vor.u32 %v2340_v15, %v2336_v1 }
 0x27c   : > { %v1289_v25 = vsel %vm1241_vm3, %v1216_v60, %v1143_v48  ;;  %v1076_v28 = vpop.permute.xlu0 %1075  ;;  %v2347_v48 = vrot.slane %v2345_v26, 1  ;;  %v2366_v33 = vshll.u32 %v7051_v45, 16  ;;  %v2364_v26 = vshrl.u32 %v7051_v45, 16 }
 0x27d   : > { %v1480_v11 = vor.u32 %v1479_v5, %v1476_v59  ;;  %v1489_v63 = vshrl.u32 %v1289_v25, 16  ;;  %v1492_v6 = vshll.u32 %v1289_v25, 16  ;;  %v1222_v44 = vsel %vm1168_vm2, %v6845_v62, %v1076_v28 }
 0x27e   : > { %v2335_v59 = vsel %vm2262_vm6, %v2334_v51, %v7081_v54 }
 0x27f   : > { %v1491_v31 = vrot.slane %v1489_v63, 3  ;;  %v1494_v21 = vrot.slane %v1492_v6, 4  ;;  %v1074_v41 = vpop.permute.xlu1 %1073  ;;  %v1481_v7 = vsel %vm1316_vm4, %v1473_v9, %v1480_v11  ;;  %v2350_v63 = vshrl.u32 %v7037_v50, 16 }
 0x280   : > { %5192 = vmatmul.mubr.msk.bf16.gmra.mrb[12].mxu0 %vm1592_vm5, %v2321_v61  ;;  %v1145_v38 = vpop.permute.xlu0 %1144  ;;  %5123 = vmatprep.mubr.msk.bf16.mxu1 %vm1592_vm5, %v1481_v7  ;;  %v1220_v60 = vsel %vm1168_vm2, %v6810_v10, %v1074_v41  ;;  %v2342_v10 = vsel %vm2262_vm6, %v2341_v53, %v7081_v54  ;;  %v2354_v6 = vrot.slane %v2352_v35, 1  ;;  %v2359_v7 = vshll.u32 %v7048_v12, 16 }
 0x281   : > { %v1495_v46 = vor.u32 %v1494_v21, %v1491_v31  ;;  %5195 = vmatprep.mubr.msk.bf16.mxu0 %vm1592_vm5, %v2328_v13  ;;  %v1291_v57 = vsel %vm1241_vm3, %v1218_v37, %v1145_v38  ;;  %v2348_v31 = vor.u32 %v2347_v48, %v2343_v18 }
 0x282   : > { %v1497_v17 = vshrl.u32 %v1291_v57, 16  ;;  %v1500_v32 = vshll.u32 %v1291_v57, 16  ;;  %v2355_v38 = vor.u32 %v2354_v6, %v2350_v63 }
 0x283   : > { %v1078_v24 = vpop.permute.xlu1 %1077  ;;  %v1496_v16 = vsel %vm1316_vm4, %v1488_v43, %v1495_v46  ;;  %v2349_v1 = vsel %vm2262_vm6, %v2348_v31, %v7081_v54 }
 0x284   : > { %v1149_v49 = vpop.permute.xlu0 %1148  ;;  %5124 = vmatmul.mubr.msk.bf16.gmra.mrb[4].mxu1 %vm1592_vm5, %v1496_v16  ;;  %v1499_v62 = vrot.slane %v1497_v17, 3  ;;  %v1502_v47 = vrot.slane %v1500_v32, 4  ;;  %v1224_v28 = vsel %vm1168_vm2, %v6834_v36, %v1078_v24  ;;  %v2357_v32 = vshrl.u32 %v7048_v12, 16 }
 0x285   : > { %v1295_v4 = vsel %vm1241_vm3, %v1222_v44, %v1149_v49  ;;  %v2356_v24 = vsel %vm2262_vm6, %v2355_v38, %v7081_v54 }
 0x286   : > { %v1512_v5 = vshrl.u32 %v1295_v4, 16  ;;  %v1515_v23 = vshll.u32 %v1295_v4, 16  ;;  %v1503_v55 = vor.u32 %v1502_v47, %v1499_v62  ;;  %v2373_v47 = vshll.u32 %v7063_v2, 16 }
 0x287   : > { %v1147_v9 = vpop.permute.xlu1 %1146 }
 0x288   : > { %v1293_v27 = vsel %vm1241_vm3, %v1220_v60, %v1147_v9  ;;  %5196 = vmatmul.mubr.msk.bf16.gmra.mrb[16].mxu0 %vm1592_vm5, %v2335_v59  ;;  %v1080_v25 = vpop.permute.xlu0 %1079  ;;  %v1514_v37 = vrot.slane %v1512_v5, 3  ;;  %v1517_v61 = vrot.slane %v1515_v23, 4  ;;  %v2368_v60 = vrot.slane %v2366_v33, 1 }
 0x289   : > { %v1504_v52 = vshrl.u32 %v1293_v27, 16  ;;  %v1507_v11 = vshll.u32 %v1293_v27, 16  ;;  %5199 = vmatprep.mubr.msk.bf16.mxu0 %vm1592_vm5, %v2342_v10  ;;  %v1226_v50 = vsel %vm1168_vm2, %v6869_v58, %v1080_v25  ;;  %v2361_v58 = vrot.slane %v2359_v7, 1 }
 0x28a   : > { %v1518_v46 = vor.u32 %v1517_v61, %v1514_v37  ;;  %v2369_v23 = vor.u32 %v2368_v60, %v2364_v26 }
 0x28b   : > { %v1506_v8 = vrot.slane %v1504_v52, 3  ;;  %v1509_v42 = vrot.slane %v1507_v11, 4  ;;  %v1151_v43 = vpop.permute.xlu1 %1150  ;;  %v2362_v45 = vor.u32 %v2361_v58, %v2357_v32  ;;  %v2375_v52 = vrot.slane %v2373_v47, 1 }
 0x28c   : > { %v1297_v21 = vsel %vm1241_vm3, %v1224_v28, %v1151_v43  ;;  %v1084_v41 = vpop.permute.xlu0 %1083  ;;  %v2371_v28 = vshrl.u32 %v7063_v2, 16 }
 0x28d   : > { %v1510_v36 = vor.u32 %v1509_v42, %v1506_v8  ;;  %v1519_v56 = vshrl.u32 %v1297_v21, 16  ;;  %v1522_v13 = vshll.u32 %v1297_v21, 16  ;;  %v1230_v12 = vsel %vm1168_vm2, %v6891_v3, %v1084_v41 }
 0x28e   : > { %v2363_v27 = vsel %vm2262_vm6, %v2362_v45, %v7081_v54  ;;  %v2376_v21 = vor.u32 %v2375_v52, %v2371_v28 }
 0x28f   : > { %v1521_v57 = vrot.slane %v1519_v56, 3  ;;  %v1524_v15 = vrot.slane %v1522_v13, 4  ;;  %v1082_v44 = vpop.permute.xlu1 %1081  ;;  %v1511_v17 = vsel %vm1316_vm4, %v1503_v55, %v1510_v36 }
 0x290   : > { %5200 = vmatmul.mubr.msk.bf16.gmra.mrb[20].mxu0 %vm1592_vm5, %v2349_v1  ;;  %v1153_v16 = vpop.permute.xlu0 %1152  ;;  %5127 = vmatprep.mubr.msk.bf16.mxu1 %vm1592_vm5, %v1511_v17  ;;  %v1228_v59 = vsel %vm1168_vm2, %v6856_v30, %v1082_v44  ;;  %v2370_v30 = vsel %vm2262_vm6, %v2369_v23, %v7081_v54  ;;  %v2377_v38 = vsel %vm2262_vm6, %v2376_v21, %v7081_v54 }
 0x291   : > { %v1525_v49 = vor.u32 %v1524_v15, %v1521_v57  ;;  %5203 = vmatprep.mubr.msk.bf16.mxu0 %vm1592_vm5, %v2356_v24  ;;  %v1299_v51 = vsel %vm1241_vm3, %v1226_v50, %v1153_v16 }
 0x292   : > { %v1527_v4 = vshrl.u32 %v1299_v51, 16  ;;  %v1530_v53 = vshll.u32 %v1299_v51, 16 }
 0x293   : > { %v1086_v35 = vpop.permute.xlu1 %1085  ;;  %v1526_v62 = vsel %vm1316_vm4, %v1518_v46, %v1525_v49 }
 0x294   : > { %5128 = vmatmul.mubr.msk.bf16.gmra.mrb[8].mxu1 %vm1592_vm5, %v1526_v62  ;;  %v1157_v9 = vpop.permute.xlu0 %1156  ;;  %v1529_v18 = vrot.slane %v1527_v4, 3  ;;  %v1532_v48 = vrot.slane %v1530_v53, 4  ;;  %v1232_v6 = vsel %vm1168_vm2, %v6880_v20, %v1086_v35 }
 0x295   : > { %v1303_v5 = vsel %vm1241_vm3, %v1230_v12, %v1157_v9 }
 0x296   : > { %v1542_v10 = vshrl.u32 %v1303_v5, 16  ;;  %v1545_v25 = vshll.u32 %v1303_v5, 16  ;;  %v1533_v42 = vor.u32 %v1532_v48, %v1529_v18 }
 0x297   : > { %v1155_v3 = vpop.permute.xlu1 %1154 }
 0x298   : > { %v1301_v11 = vsel %vm1241_vm3, %v1228_v59, %v1155_v3  ;;  %5204 = vmatmul.mubr.msk.bf16.gmra.mrb[24].mxu0 %vm1592_vm5, %v2363_v27  ;;  %v1088_v63 = vpop.permute.xlu0 %1087  ;;  %v1544_v2 = vrot.slane %v1542_v10, 3  ;;  %v1547_v43 = vrot.slane %v1545_v25, 4 }
 0x299   : > { %v1534_v55 = vshrl.u32 %v1301_v11, 16  ;;  %v1537_v8 = vshll.u32 %v1301_v11, 16  ;;  %5207 = vmatprep.mubr.msk.bf16.mxu0 %vm1592_vm5, %v2370_v30  ;;  %v1234_v20 = vsel %vm1168_vm2, %v6911_v19, %v1088_v63  ;;  %v7248_v11 = vld [vmem:[#allocation11] ss:$0 sm:$0xff] }
 0x29a   : > { %v1548_v33 = vor.u32 %v1547_v43, %v1544_v2 }
 0x29b   : > { %v1536_v37 = vrot.slane %v1534_v55, 3  ;;  %v1539_v61 = vrot.slane %v1537_v8, 4  ;;  %v1159_v31 = vpop.permute.xlu1 %1158 }
 0x29c   : > { %v1305_v41 = vsel %vm1241_vm3, %v1232_v6, %v1159_v31  ;;  %v1092_v7 = vpop.permute.xlu0 %1091 }
 0x29d   : > { %v1540_v36 = vor.u32 %v1539_v61, %v1536_v37  ;;  %v1549_v56 = vshrl.u32 %v1305_v41, 16  ;;  %v1552_v13 = vshll.u32 %v1305_v41, 16  ;;  %v1238_v54 = vsel %vm1168_vm2, %v6940_v14, %v1092_v7 }
 0x29e   : > { %v7259_v61 = vrot.slane %v5946_v22, 5  ;;  %v5533_v22 = vld [vmem:[#allocation13] sm:$0xff]  }
 0x29f   : > { %v1551_v50 = vrot.slane %v1549_v56, 3  ;;  %v1554_v1 = vrot.slane %v1552_v13, 4  ;;  %v1090_v46 = vpop.permute.xlu1 %1089  ;;  %v1541_v57 = vsel %vm1316_vm4, %v1533_v42, %v1540_v36  ;;  %5215 = vmatprep.subr.bf16.mxu1 %v5533_v22 }
 0x2a0   : > { %5208 = vmatmul.mubr.msk.bf16.gmra.mrb[28].mxu0 %vm1592_vm5, %v2377_v38  ;;  %5131 = vmatprep.mubr.msk.bf16.mxu1 %vm1592_vm5, %v1541_v57  ;;  %v1161_v15 = vpop.permute.xlu0 %1160  ;;  %v1236_v26 = vsel %vm1168_vm2, %v6900_v40, %v1090_v46 }
 0x2a1   : > { %v1555_v44 = vor.u32 %v1554_v1, %v1551_v50  ;;  %5211 = vmatprep.mubr.msk.bf16.mxu0 %vm1592_vm5, %v7099_v29  ;;  %v1307_v19 = vsel %vm1241_vm3, %v1234_v20, %v1161_v15  ;;  %5216 = vmatpush3.bf16.msra.mxu1 %v5533_v22 }
 0x2a2   : > { %v1557_v17 = vshrl.u32 %v1307_v19, 16  ;;  %v1560_v32 = vshll.u32 %v1307_v19, 16 }
 0x2a3   : > { %v1094_v24 = vpop.permute.xlu1 %1093  ;;  %v1556_v16 = vsel %vm1316_vm4, %v1548_v33, %v1555_v44 }
 0x2a4   : > { %5132 = vmatmul.mubr.msk.bf16.gmra.mrb[12].mxu1 %vm1592_vm5, %v1556_v16  ;;  %v1165_v58 = vpop.permute.xlu0 %1164  ;;  %v1559_v51 = vrot.slane %v1557_v17, 3  ;;  %v1562_v29 = vrot.slane %v1560_v32, 4  ;;  %v1240_v53 = vsel %vm1168_vm2, %v6924_v39, %v1094_v24 }
 0x2a5   : > { %v1311_v49 = vsel %vm1241_vm3, %v1238_v54, %v1165_v58 }
 0x2a6   : > { %v1572_v12 = vshrl.u32 %v1311_v49, 16  ;;  %v1575_v4 = vshll.u32 %v1311_v49, 16  ;;  %v1563_v47 = vor.u32 %v1562_v29, %v1559_v51 }
 0x2a7   : > { %v1163_v60 = vpop.permute.xlu1 %1162 }
 0x2a8   : > { %v1309_v14 = vsel %vm1241_vm3, %v1236_v26, %v1163_v60  ;;  %5212 = vmatmul.mubr.msk.bf16.gmra.mrb[32].mxu0 %vm1592_vm5, %v7103_v34  ;;  %v1574_v45 = vrot.slane %v1572_v12, 3  ;;  %v1577_v59 = vrot.slane %v1575_v4, 4  ;;  %v5534_v26 = vld [vmem:[#allocation13 + $0x8] ss:$0 sps:$4 sm:$0xff]  }
 0x2a9   : > { %v1564_v35 = vshrl.u32 %v1309_v14, 16  ;;  %v1567_v62 = vshll.u32 %v1309_v14, 16  ;;  %5369 = vmatprep.subr.msk.bf16.mxu1 %vm963_vm0, %v5534_v26  ;;  %v3555_v12 = vsel %vm963_vm0, %v5534_v26, 0 }
 0x2aa   : > { %v1578_v27 = vor.u32 %v1577_v59, %v1574_v45  ;;  %5218 = vmatpush3.bf16.msra.mxu1 %v3555_v12 }
 0x2ab   : > { %v1566_v9 = vrot.slane %v1564_v35, 3  ;;  %v1569_v40 = vrot.slane %v1567_v62, 4  ;;  %v1167_v5 = vpop.permute.xlu1 %1166 }
 0x2ac   : > { %v1313_v23 = vsel %vm1241_vm3, %v1240_v53, %v1167_v5 }
 0x2ad   : > { %v1570_v18 = vor.u32 %v1569_v40, %v1566_v9  ;;  %v1579_v48 = vshrl.u32 %v1313_v23, 16  ;;  %v1582_v3 = vshll.u32 %v1313_v23, 16 }
 0x2af   : > { %v1581_v10 = vrot.slane %v1579_v48, 3  ;;  %v1584_v25 = vrot.slane %v1582_v3, 4  ;;  %v1571_v34 = vsel %vm1316_vm4, %v1563_v47, %v1570_v18 }
 0x2b0   : > { %5135 = vmatprep.mubr.msk.bf16.mxu1 %vm1592_vm5, %v1571_v34 }
 0x2b1   : > { %v1585_v39 = vor.u32 %v1584_v25, %v1581_v10 }
 0x2b3   : > { %v1586_v28 = vsel %vm1316_vm4, %v1578_v27, %v1585_v39 }
 0x2b4   : > { %5136 = vmatmul.mubr.msk.bf16.gmra.mrb[16].mxu1 %vm1592_vm5, %v1586_v28 }
 0x33b   : > { %v5181_v52 = vpop.f32.mrb[0].mxu0 }
 0x33c   : > { %v2488_v30 = vpop.f32.mrb[1].mxu0  ;;  %v7251_v6 = vadd.f32 %v5181_v52, %v7248_v11 }
 0x33d   : > { %v5182_v63 = vpop.f32.mrb[2].mxu0  ;;  %v2674_v42 = vadd.f32 %v7248_v11, %v2488_v30 }
 0x33e   : > { %v7254_v55 = vadd.f32 %v5182_v63, %v7248_v11  ;;  %v2491_v8 = vpop.f32.mrb[3].mxu0 }
 0x33f   : > { %v2675_v37 = vadd.f32 %v7248_v11, %v2491_v8 }
 0x340   : > { %v7263_v2 = vpack.c.bf16 %v7254_v55, %v7251_v6 }
 0x341   : > { %v7265_v43 = vpack.c.bf16 %v2675_v37, %v2674_v42 }
 0x342   : > { %v2984_v31 = vrot.slane %v7263_v2, 5  ;;  %v2809_v36 = vshrl.u32 %v7263_v2, 16  ;;  %v2812_v56 = vshll.u32 %v7263_v2, 16 }
 0x343   : > { %v5185_v21 = vpop.f32.mrb[4].mxu0  ;;  %v2801_v41 = vshrl.u32 %v7265_v43, 16  ;;  %v2804_v7 = vshll.u32 %v7265_v43, 16  ;;  %v2981_v38 = vrot.slane %v7265_v43, 5 }
 0x344   : > { %3022 = vrot.lane.b32.xlu0 %v2984_v31, %s5947_s26  ;;  %v2504_v13 = vpop.f32.mrb[5].mxu0  ;;  %v2985_v20 = vsel %vm2980_vm7, %v2984_v31, %v7259_v61  ;;  %v7278_v50 = vadd.f32 %v5185_v21, %v7248_v11  ;;  %v2811_v19 = vrot.slane %v2809_v36, 4  ;;  %v2814_v54 = vrot.slane %v2812_v56, 5 }
 0x345   : > { %3024 = vrot.lane.b32.xlu1 %v2985_v20, %s5947_s26  ;;  %v5186_v33 = vpop.f32.mrb[6].mxu0  ;;  %v2803_v57 = vrot.slane %v2801_v41, 4  ;;  %v2806_v15 = vrot.slane %v2804_v7, 5  ;;  %v7289_v32 = vadd.f32 %v7248_v11, %v2504_v13  ;;  %v2983_v16 = vsel %vm2980_vm7, %v2981_v38, %v7259_v61 }
 0x346   : > { %v7281_v1 = vadd.f32 %v5186_v33, %v7248_v11  ;;  %v2507_v46 = vpop.f32.mrb[7].mxu0  ;;  %v2815_v14 = vor.u32 %v2814_v54, %v2811_v19 }
 0x347   : > { %v7284_v44 = vadd.f32 %v7248_v11, %v2507_v46  ;;  %v7286_v17 = vpop.f32.mrb[0].mxu1  ;;  %v2807_v29 = vor.u32 %v2806_v15, %v2803_v57 }
 0x348   : > { %v7293_v24 = vpack.c.bf16 %v7281_v1, %v7278_v50  ;;  %3018 = vrot.lane.b32.xlu0 %v2981_v38, %s5947_s26  ;;  %v7298_v58 = vpop.f32.mrb[1].mxu1 }
 0x349   : > { %3020 = vrot.lane.b32.xlu1 %v2983_v16, %s5947_s26  ;;  %v7301_v49 = vpop.f32.mrb[2].mxu1  ;;  %v7305_v51 = vpack.c.bf16 %v7284_v44, %v7289_v32 }
 0x34a   : > { %v7307_v60 = vpop.f32.mrb[3].mxu1  ;;  %v2988_v35 = vrot.slane %v7293_v24, 5  ;;  %v2825_v45 = vshrl.u32 %v7293_v24, 16  ;;  %v2828_v59 = vshll.u32 %v7293_v24, 16 }
 0x34b   : > { %v5189_v4 = vpop.f32.mrb[8].mxu0  ;;  %v2817_v9 = vshrl.u32 %v7305_v51, 16  ;;  %v2820_v40 = vshll.u32 %v7305_v51, 16  ;;  %v2986_v18 = vrot.slane %v7305_v51, 5 }
 0x34c   : > { %2944 = vrot.lane.b32.xlu0 %v2807_v29, %s5945_s19  ;;  %v2520_v53 = vpop.f32.mrb[9].mxu0  ;;  %v2989_v23 = vsel %vm2980_vm7, %v2988_v35, %v7259_v61  ;;  %v7327_v48 = vadd.f32 %v5189_v4, %v7248_v11  ;;  %v2827_v34 = vrot.slane %v2825_v45, 4  ;;  %v2830_v39 = vrot.slane %v2828_v59, 5 }
 0x34d   : > { %2946 = vrot.lane.b32.xlu1 %v2815_v14, %s5945_s19  ;;  %v5190_v62 = vpop.f32.mrb[10].mxu0  ;;  %v2819_v27 = vrot.slane %v2817_v9, 4  ;;  %v2822_v10 = vrot.slane %v2820_v40, 5  ;;  %v7333_v28 = vadd.f32 %v7248_v11, %v2520_v53  ;;  %v2987_v63 = vsel %vm2980_vm7, %v2986_v18, %v7259_v61 }
 0x34e   : > { %v2523_v47 = vpop.f32.mrb[11].mxu0  ;;  %v7319_v5 = vadd.f32 %v5190_v62, %v7248_v11  ;;  %v2831_v21 = vor.u32 %v2830_v39, %v2827_v34 }
 0x34f   : > { %v7330_v3 = vadd.f32 %v7248_v11, %v2523_v47  ;;  %v2823_v31 = vor.u32 %v2822_v10, %v2819_v27 }
 0x350   : > { %3030 = vrot.lane.b32.xlu0 %v2988_v35, %s5947_s26  ;;  %v7337_v52 = vpack.c.bf16 %v7319_v5, %v7327_v48 }
 0x351   : > { %3032 = vrot.lane.b32.xlu1 %v2989_v23, %s5947_s26  ;;  %v7345_v42 = vpack.c.bf16 %v7330_v3, %v7333_v28 }
 0x352   : > { %v2992_v7 = vrot.slane %v7337_v52, 5  ;;  %v2841_v33 = vshrl.u32 %v7337_v52, 16  ;;  %v2844_v46 = vshll.u32 %v7337_v52, 16 }
 0x353   : > { %v5193_v25 = vpop.f32.mrb[12].mxu0  ;;  %v2833_v13 = vshrl.u32 %v7345_v42, 16  ;;  %v2836_v20 = vshll.u32 %v7345_v42, 16  ;;  %v2990_v16 = vrot.slane %v7345_v42, 5 }
 0x354   : > { %3026 = vrot.lane.b32.xlu0 %v2986_v18, %s5947_s26  ;;  %v2536_v30 = vpop.f32.mrb[13].mxu0  ;;  %v2993_v54 = vsel %vm2980_vm7, %v2992_v7, %v7259_v61  ;;  %v7363_v26 = vadd.f32 %v5193_v25, %v7248_v11  ;;  %v2843_v47 = vrot.slane %v2841_v33, 4  ;;  %v2846_v9 = vrot.slane %v2844_v46, 5 }
 0x355   : > { %3028 = vrot.lane.b32.xlu1 %v2987_v63, %s5947_s26  ;;  %v5194_v8 = vpop.f32.mrb[14].mxu0  ;;  %v2835_v53 = vrot.slane %v2833_v13, 4  ;;  %v2838_v35 = vrot.slane %v2836_v20, 5  ;;  %v7373_v40 = vadd.f32 %v7248_v11, %v2536_v30  ;;  %v2991_v45 = vsel %vm2980_vm7, %v2990_v16, %v7259_v61 }
 0x356   : > { %v2539_v37 = vpop.f32.mrb[15].mxu0  ;;  %v7355_v57 = vadd.f32 %v5194_v8, %v7248_v11  ;;  %v2847_v23 = vor.u32 %v2846_v9, %v2843_v47 }
 0x357   : > { %v5125_v41 = vpop.f32.mrb[4].mxu1  ;;  %v7368_v4 = vadd.f32 %v7248_v11, %v2539_v37 }
 0x358   : > { %2948 = vrot.lane.b32.xlu0 %v2823_v31, %s5945_s19  ;;  %v1765_v36 = vpop.f32.mrb[5].mxu1 }
 0x359   : > { %2950 = vrot.lane.b32.xlu1 %v2831_v21, %s5945_s19  ;;  %v5126_v56 = vpop.f32.mrb[6].mxu1 }
 0x35a   : > { %v1768_v22 = vpop.f32.mrb[7].mxu1 }
 0x35b   : > { %v5197_v38 = vpop.f32.mrb[16].mxu0 }
 0x35c   : > { %v5293_v15 = vadd.f32 %v5197_v38, %v7286_v17  ;;  %3038 = vrot.lane.b32.xlu0 %v2992_v7, %s5947_s26  ;;  %v2552_v19 = vpop.f32.mrb[17].mxu0 }
 0x35d   : > { %v5294_v29 = vadd.f32 %v2552_v19, %v7298_v58  ;;  %3040 = vrot.lane.b32.xlu1 %v2993_v54, %s5947_s26  ;;  %v5198_v12 = vpop.f32.mrb[18].mxu0  ;;  %v7377_v58 = vpack.c.bf16 %v7355_v57, %v7363_v26 }
 0x35e   : > { %v5295_v17 = vadd.f32 %v5198_v12, %v7301_v49  ;;  %v2555_v14 = vpop.f32.mrb[19].mxu0  ;;  %v7385_v49 = vpack.c.bf16 %v7368_v4, %v7373_v40 }
 0x35f   : > { %v5296_v62 = vadd.f32 %v2555_v14, %v7307_v60  ;;  %v2839_v60 = vor.u32 %v2838_v35, %v2835_v53  ;;  %v2996_v10 = vrot.slane %v7377_v58, 5  ;;  %v2857_v21 = vshrl.u32 %v7377_v58, 16 }
 0x360   : > { %3034 = vrot.lane.b32.xlu0 %v2990_v16, %s5947_s26  ;;  %v2849_v63 = vshrl.u32 %v7385_v49, 16  ;;  %v2852_v8 = vshll.u32 %v7385_v49, 16  ;;  %v7397_v7 = vadd.f32 %v5295_v17, %v7248_v11  ;;  %v7411_v17 = vadd.f32 %v5294_v29, %v7248_v11 }
 0x361   : > { %3036 = vrot.lane.b32.xlu1 %v2991_v45, %s5947_s26  ;;  %v7408_v38 = vadd.f32 %v5296_v62, %v7248_v11  ;;  %v2859_v16 = vrot.slane %v2857_v21, 4 }
 0x362   : > { %v2851_v46 = vrot.slane %v2849_v63, 4  ;;  %v2854_v19 = vrot.slane %v2852_v8, 5 }
 0x363   : > { %v5201_v59 = vpop.f32.mrb[20].mxu0  ;;  %v7427_v29 = vpack.c.bf16 %v7408_v38, %v7411_v17 }
 0x364   : > { %v5297_v18 = vadd.f32 %v5201_v59, %v5125_v41  ;;  %2952 = vrot.lane.b32.xlu0 %v2839_v60, %s5945_s19  ;;  %v2568_v27 = vpop.f32.mrb[21].mxu0  ;;  %v2860_v41 = vshll.u32 %v7377_v58, 16  ;;  %v2855_v60 = vor.u32 %v2854_v19, %v2851_v46 }
 0x365   : > { %v7389_v25 = vadd.f32 %v2568_v27, %v1765_v36  ;;  %2954 = vrot.lane.b32.xlu1 %v2847_v23, %s5945_s19  ;;  %v5202_v34 = vpop.f32.mrb[22].mxu0  ;;  %v2997_v36 = vsel %vm2980_vm7, %v2996_v10, %v7259_v61 }
 0x366   : > { %v5299_v39 = vadd.f32 %v5202_v34, %v5126_v56  ;;  %v2571_v30 = vpop.f32.mrb[23].mxu0  ;;  %v2994_v56 = vrot.slane %v7385_v49, 5  ;;  %v2862_v12 = vrot.slane %v2860_v41, 5  ;;  %v2868_v34 = vshll.u32 %v7427_v29, 16 }
 0x367   : > { %v5300_v37 = vadd.f32 %v2571_v30, %v1768_v22  ;;  %v5129_v31 = vpop.f32.mrb[8].mxu1  ;;  %v7405_v22 = vadd.f32 %v5293_v15, %v7248_v11 }
 0x368   : > { %3046 = vrot.lane.b32.xlu0 %v2996_v10, %s5947_s26  ;;  %v1781_v13 = vpop.f32.mrb[9].mxu1  ;;  %v2995_v35 = vsel %vm2980_vm7, %v2994_v56, %v7259_v61  ;;  %v2863_v23 = vor.u32 %v2862_v12, %v2859_v16  ;;  %v2865_v10 = vshrl.u32 %v7427_v29, 16  ;;  %v2870_v46 = vrot.slane %v2868_v34, 5 }
 0x369   : > { %3048 = vrot.lane.b32.xlu1 %v2997_v36, %s5947_s26  ;;  %v5130_v20 = vpop.f32.mrb[10].mxu1  ;;  %v7415_v14 = vpack.c.bf16 %v7397_v7, %v7405_v22  ;;  %v2998_v36 = vrot.slane %v7427_v29, 5  ;;  %v7452_v12 = vadd.f32 %v7389_v25, %v7248_v11 }
 0x36a   : > { %v1784_v33 = vpop.f32.mrb[11].mxu1 }
 0x36b   : > { %v5205_v54 = vpop.f32.mrb[24].mxu0  ;;  %v3000_v27 = vrot.slane %v7415_v14, 5  ;;  %v2873_v63 = vshrl.u32 %v7415_v14, 16  ;;  %v2876_v8 = vshll.u32 %v7415_v14, 16 }
 0x36c   : > { %v7417_v53 = vadd.f32 %v5205_v54, %v5129_v31  ;;  %3042 = vrot.lane.b32.xlu0 %v2994_v56, %s5947_s26  ;;  %v2584_v15 = vpop.f32.mrb[25].mxu0  ;;  %v7437_v31 = vadd.f32 %v5299_v39, %v7248_v11  ;;  %v2867_v39 = vrot.slane %v2865_v10, 4 }
 0x36d   : > { %v7422_v62 = vadd.f32 %v2584_v15, %v1781_v13  ;;  %3044 = vrot.lane.b32.xlu1 %v2995_v35, %s5947_s26  ;;  %v5206_v47 = vpop.f32.mrb[26].mxu0  ;;  %v3001_v41 = vsel %vm2980_vm7, %v3000_v27, %v7259_v61  ;;  %v7445_v13 = vadd.f32 %v5297_v18, %v7248_v11  ;;  %v2875_v54 = vrot.slane %v2873_v63, 4 }
 0x36e   : > { %v5303_v9 = vadd.f32 %v5206_v47, %v5130_v20  ;;  %v2587_v45 = vpop.f32.mrb[27].mxu0  ;;  %8247 = vst [vmem:[#allocation29_spill] sm:$0xff] %v7437_v31  ;;  %v7448_v20 = vadd.f32 %v5300_v37, %v7248_v11  ;;  %v2878_v16 = vrot.slane %v2876_v8, 5  ;;  %v2999_v37 = vsel %vm2980_vm7, %v2998_v36, %v7259_v61 }
 0x36f   : > { %v5304_v59 = vadd.f32 %v2587_v45, %v1784_v33  ;;  %v7456_v15 = vpack.c.bf16 %v7437_v31, %v7445_v13 }
 0x370   : > { %2956 = vrot.lane.b32.xlu0 %v2855_v60, %s5945_s19  ;;  %v7468_v25 = vpack.c.bf16 %v7448_v20, %v7452_v12 }
 0x371   : > { %2958 = vrot.lane.b32.xlu1 %v2863_v23, %s5945_s19  ;;  %v3004_v8 = vrot.slane %v7456_v15, 5 }
 0x373   : > { %v5209_v30 = vpop.f32.mrb[28].mxu0 }
 0x374   : > { %v2600_v21 = vpop.f32.mrb[29].mxu0  ;;  %3054 = vrot.lane.b32.xlu0 %v3000_v27, %s5947_s26  ;;  %v2871_v27 = vor.u32 %v2870_v46, %v2867_v39  ;;  %v2892_v39 = vshll.u32 %v7456_v15, 16  ;;  %v3005_v46 = vsel %vm2980_vm7, %v3004_v8, %v7259_v61 }
 0x375   : > { %v5210_v56 = vpop.f32.mrb[30].mxu0  ;;  %3056 = vrot.lane.b32.xlu1 %v3001_v41, %s5947_s26 }
 0x376   : > { %v2603_v33 = vpop.f32.mrb[31].mxu0 }
 0x377   : > { %v5133_v19 = vpop.f32.mrb[12].mxu1 }
 0x378   : > { %v7458_v35 = vadd.f32 %v5209_v30, %v5133_v19  ;;  %3050 = vrot.lane.b32.xlu0 %v2998_v36, %s5947_s26  ;;  %v1797_v18 = vpop.f32.mrb[13].mxu1  ;;  %v2879_v30 = vor.u32 %v2878_v16, %v2875_v54  ;;  %v2881_v36 = vshrl.u32 %v7468_v25, 16  ;;  %v2884_v19 = vshll.u32 %v7468_v25, 16 }
 0x379   : > { %v7463_v47 = vadd.f32 %v2600_v21, %v1797_v18  ;;  %3052 = vrot.lane.b32.xlu1 %v2999_v37, %s5947_s26  ;;  %v5134_v45 = vpop.f32.mrb[14].mxu1  ;;  %v3002_v54 = vrot.slane %v7468_v25, 5  ;;  %v7485_v16 = vadd.f32 %v5304_v59, %v7248_v11  ;;  %v7490_v18 = vadd.f32 %v7417_v53, %v7248_v11 }
 0x37a   : > { %v5307_v60 = vadd.f32 %v5210_v56, %v5134_v45  ;;  %v1800_v23 = vpop.f32.mrb[15].mxu1  ;;  %v2889_v56 = vshrl.u32 %v7456_v15, 16  ;;  %v2883_v37 = vrot.slane %v2881_v36, 4  ;;  %v2886_v45 = vrot.slane %v2884_v19, 5 }
 0x37b   : > { %v5308_v10 = vadd.f32 %v2603_v33, %v1800_v23  ;;  %v5213_v34 = vpop.f32.mrb[32].mxu0  ;;  %v7478_v33 = vadd.f32 %v5303_v9, %v7248_v11  ;;  %8249 = vst [vmem:[#allocation31_spill] sm:$0xff] %v7490_v18  ;;  %v7494_v9 = vadd.f32 %v7422_v62, %v7248_v11  ;;  %v3003_v59 = vsel %vm2980_vm7, %v3002_v54, %v7259_v61 }
 0x37c   : > { %v2616_v63 = vpop.f32.mrb[33].mxu0  ;;  %2960 = vrot.lane.b32.xlu0 %v2871_v27, %s5945_s19  ;;  %v2891_v23 = vrot.slane %v2889_v56, 4  ;;  %v2894_v27 = vrot.slane %v2892_v39, 5 }
 0x37d   : > { %v5214_v21 = vpop.f32.mrb[34].mxu0  ;;  %2962 = vrot.lane.b32.xlu1 %v2879_v30, %s5945_s19  ;;  %8248 = vst [vmem:[#allocation30_spill] sm:$0xff] %v7478_v33  ;;  %v7498_v30 = vpack.c.bf16 %v7478_v33, %v7490_v18  ;;  %v7505_v53 = vpack.c.bf16 %v7485_v16, %v7494_v9 }
 0x37e   : > { %v2619_v41 = vpop.f32.mrb[35].mxu0  ;;  %v2895_v36 = vor.u32 %v2894_v27, %v2891_v23  ;;  %v7517_v23 = vadd.f32 %v5307_v60, %v7248_v11 }
 0x37f   : > { %v3008_v39 = vrot.slane %v7498_v30, 5  ;;  %v2900_v31 = vshll.u32 %v7505_v53, 16 }
 0x380   : > { %3062 = vrot.lane.b32.xlu0 %v3004_v8, %s5947_s26  ;;  %v2887_v8 = vor.u32 %v2886_v45, %v2883_v37  ;;  %v3006_v37 = vrot.slane %v7505_v53, 5  ;;  %v2908_v45 = vshll.u32 %v7498_v30, 16  ;;  %8250 = vst [vmem:[#allocation32_spill] sm:$0xff] %v7517_v23 }
 0x381   : > { %3064 = vrot.lane.b32.xlu1 %v3005_v46, %s5947_s26 }
 0x384   : > { %3058 = vrot.lane.b32.xlu0 %v3002_v54, %s5947_s26  ;;  %v2897_v54 = vshrl.u32 %v7505_v53, 16 }
 0x385   : > { %3060 = vrot.lane.b32.xlu1 %v3003_v59, %s5947_s26 }
 0x387   : > { %v5137_v62 = vpop.f32.mrb[16].mxu1 }
 0x388   : > { %v5309_v19 = vadd.f32 %v5213_v34, %v5137_v62  ;;  %2964 = vrot.lane.b32.xlu0 %v2887_v8, %s5945_s19  ;;  %v1813_v56 = vpop.f32.mrb[17].mxu1  ;;  %v2905_v34 = vshrl.u32 %v7498_v30, 16  ;;  %v2902_v8 = vrot.slane %v2900_v31, 5 }
 0x389   : > { %v5310_v46 = vadd.f32 %v2616_v63, %v1813_v56  ;;  %2966 = vrot.lane.b32.xlu1 %v2895_v36, %s5945_s19  ;;  %v5138_v0 = vpop.f32.mrb[18].mxu1  ;;  %v7536_v36 = vadd.f32 %v7463_v47, %v7248_v11 }
 0x38a   : > { %v5311_v33 = vadd.f32 %v5214_v21, %v5138_v0  ;;  %v1816_v18 = vpop.f32.mrb[19].mxu1  ;;  %v2708_v63 = vadd.f32 %v5309_v19, %v7248_v11  ;;  %v3009_v0 = vsel %vm2980_vm7, %v3008_v39, %v7259_v61  ;;  %v2899_v21 = vrot.slane %v2897_v54, 4 }
 0x38b   : > { %v5312_v59 = vadd.f32 %v2619_v41, %v1816_v18  ;;  %v7527_v41 = vadd.f32 %v7458_v35, %v7248_v11  ;;  %v7530_v18 = vadd.f32 %v5308_v10, %v7248_v11  ;;  %v2907_v62 = vrot.slane %v2905_v34, 4  ;;  %8253 = vst [vmem:[#allocation35_spill] sm:$0xff] %v7536_v36 }
 0x38c   : > { %v2709_v27 = vadd.f32 %v5311_v33, %v7248_v11  ;;  %3070 = vrot.lane.b32.xlu0 %v3008_v39, %s5947_s26  ;;  %v2910_v33 = vrot.slane %v2908_v45, 5  ;;  %v3007_v35 = vsel %vm2980_vm7, %v3006_v37, %v7259_v61  ;;  %v2903_v10 = vor.u32 %v2902_v8, %v2899_v21 }
 0x38d   : > { %3072 = vrot.lane.b32.xlu1 %v3009_v0, %s5947_s26  ;;  %8251 = vst [vmem:[#allocation33_spill] sm:$0xff] %v7527_v41  ;;  %8252 = vst [vmem:[#allocation34_spill] sm:$0xff] %v7530_v18  ;;  %v7540_v19 = vpack.c.bf16 %v7517_v23, %v7527_v41  ;;  %v7548_v31 = vpack.c.bf16 %v7530_v18, %v7536_v36  ;;  %v7554_v39 = vadd.f32 %v5312_v59, %v7248_v11 }
 0x38e   : > { %v7532_v60 = vpack.c.bf16 %v2709_v27, %v2708_v63  ;;  %v2911_v56 = vor.u32 %v2910_v33, %v2907_v62  ;;  %v7561_v63 = vadd.f32 %v5310_v46, %v7248_v11 }
 0x38f   : > { %v3012_v47 = vrot.slane %v7540_v19, 5  ;;  %8254 = vst [vmem:[#allocation36_spill] sm:$0xff] %v7554_v39  ;;  %v2913_v54 = vshrl.u32 %v7548_v31, 16  ;;  %v2921_v34 = vshrl.u32 %v7540_v19, 16  ;;  %v2924_v45 = vshll.u32 %v7540_v19, 16 }
 0x390   : > { %3066 = vrot.lane.b32.xlu0 %v3006_v37, %s5947_s26  ;;  %v2916_v37 = vshll.u32 %v7548_v31, 16  ;;  %8255 = vst [vmem:[#allocation37_spill] sm:$0xff] %v7561_v63  ;;  %v3010_v0 = vrot.slane %v7548_v31, 5  ;;  %v7570_v59 = vpack.c.bf16 %v7554_v39, %v7561_v63 }
 0x391   : > { %3068 = vrot.lane.b32.xlu1 %v3007_v35, %s5947_s26  ;;  %v3013_v27 = vsel %vm2980_vm7, %v3012_v47, %v7259_v61  ;;  %v2915_v21 = vrot.slane %v2913_v54, 4  ;;  %v2923_v62 = vrot.slane %v2921_v34, 4  ;;  %v2926_v33 = vrot.slane %v2924_v45, 5 }
 0x392   : > { %v2918_v8 = vrot.slane %v2916_v37, 5  ;;  %v3011_v11 = vsel %vm2980_vm7, %v3010_v0, %v7259_v61  ;;  %v2929_v35 = vshrl.u32 %v7570_v59, 16  ;;  %v2940_v54 = vshll.u32 %v7532_v60, 16 }
 0x393   : > { %v3014_v37 = vrot.slane %v7570_v59, 5 }
 0x394   : > { %2968 = vrot.lane.b32.xlu0 %v2903_v10, %s5945_s19  ;;  %v2919_v46 = vor.u32 %v2918_v8, %v2915_v21  ;;  %v2932_v10 = vshll.u32 %v7570_v59, 16  ;;  %v2931_v34 = vrot.slane %v2929_v35, 4 }
 0x395   : > { %2970 = vrot.lane.b32.xlu1 %v2911_v56, %s5945_s19  ;;  %v2927_v56 = vor.u32 %v2926_v33, %v2923_v62  ;;  %v3015_v21 = vsel %vm2980_vm7, %v3014_v37, %v7259_v61  ;;  %v3016_v33 = vrot.slane %v7532_v60, 5 }
 0x396   : > { %v2934_v45 = vrot.slane %v2932_v10, 5 }
 0x398   : > { %3078 = vrot.lane.b32.xlu0 %v3012_v47, %s5947_s26  ;;  %v2937_v47 = vshrl.u32 %v7532_v60, 16  ;;  %v2935_v8 = vor.u32 %v2934_v45, %v2931_v34 }
 0x399   : > { %3080 = vrot.lane.b32.xlu1 %v3013_v27, %s5947_s26 }
 0x39a   : > { %v2939_v27 = vrot.slane %v2937_v47, 4 }
 0x39c   : > { %3074 = vrot.lane.b32.xlu0 %v3010_v0, %s5947_s26  ;;  %v2942_v0 = vrot.slane %v2940_v54, 5  ;;  %v2747_v54 = vrot.slane %v7263_v2, 4 }
 0x39d   : > { %3076 = vrot.lane.b32.xlu1 %v3011_v11, %s5947_s26  ;;  %v3017_v11 = vsel %vm2980_vm7, %v3016_v33, %v7259_v61 }
 0x39e   : > { %v2943_v62 = vor.u32 %v2942_v0, %v2939_v27  ;;  %v2767_v61 = vsel %vm963_vm0, 0, %v2747_v54 }
 0x3a0   : > { %2972 = vrot.lane.b32.xlu0 %v2919_v46, %s5945_s19 }
 0x3a1   : > { %2974 = vrot.lane.b32.xlu1 %v2927_v56, %s5945_s19  ;;  %v2746_v56 = vrot.slane %v7265_v43, 4 }
 0x3a3   : > { %v2765_v34 = vsel %vm963_vm0, 0, %v2746_v56 }
 0x3a4   : > { %3082 = vrot.lane.b32.xlu0 %v3014_v37, %s5947_s26 }
 0x3a5   : > { %3084 = vrot.lane.b32.xlu1 %v3015_v21, %s5947_s26 }
 0x3a8   : > { %2976 = vrot.lane.b32.xlu0 %v2935_v8, %s5945_s19 }
 0x3a9   : > { %2978 = vrot.lane.b32.xlu1 %v2943_v62, %s5945_s19 }
 0x3ac   : > { %3086 = vrot.lane.b32.xlu0 %v3016_v33, %s5947_s26 }
 0x3ad   : > { %3088 = vrot.lane.b32.xlu1 %v3017_v11, %s5947_s26 }
 0x3b6   : > { %v3023_v46 = vpop.permute.xlu0 %3022 }
 0x3b7   : > { %v3025_v35 = vpop.permute.xlu1 %3024 }
 0x3ba   : > { %v3019_v10 = vpop.permute.xlu0 %3018 }
 0x3bb   : > { %v3021_v47 = vpop.permute.xlu1 %3020 }
 0x3be   : > { %v2945_v37 = vpop.permute.xlu0 %2944 }
 0x3bf   : > { %v3091_v45 = vsel %vm1241_vm3, %v2765_v34, %v2945_v37  ;;  %v3092_v27 = vsel %vm1241_vm3, %v2746_v56, %v2945_v37  ;;  %v2947_v0 = vpop.permute.xlu1 %2946 }
 0x3c0   : > { %v3146_v21 = vsel %vm3144_vm8, %v3091_v45, %v3019_v10  ;;  %v3148_v8 = vsel %vm3144_vm8, %v3092_v27, %v3021_v47  ;;  %v3094_v43 = vsel %vm1241_vm3, %v2767_v61, %v2947_v0  ;;  %v3095_v62 = vsel %vm1241_vm3, %v2747_v54, %v2947_v0 }
 0x3c1   : > { %v3220_v2 = vshrl.u32 %v3146_v21, 16  ;;  %v3223_v33 = vshll.u32 %v3146_v21, 16  ;;  %v3227_v11 = vshrl.u32 %v3148_v8, 16  ;;  %v3230_v39 = vshll.u32 %v3148_v8, 16 }
 0x3c2   : > { %v3150_v63 = vsel %vm3144_vm8, %v3094_v43, %v3023_v46  ;;  %v3152_v34 = vsel %vm3144_vm8, %v3095_v62, %v3025_v35  ;;  %v3031_v56 = vpop.permute.xlu0 %3030  ;;  %v2748_v0 = vrot.slane %v7305_v51, 4 }
 0x3c3   : > { %v3222_v37 = vrot.slane %v3220_v2, 3  ;;  %v3225_v23 = vrot.slane %v3223_v33, 4  ;;  %v3229_v41 = vrot.slane %v3227_v11, 3  ;;  %v3232_v18 = vrot.slane %v3230_v39, 4  ;;  %v3033_v10 = vpop.permute.xlu1 %3032 }
 0x3c4   : > { %v3235_v45 = vshrl.u32 %v3150_v63, 16  ;;  %v3238_v47 = vshll.u32 %v3150_v63, 16  ;;  %v3242_v27 = vshrl.u32 %v3152_v34, 16  ;;  %v3245_v61 = vshll.u32 %v3152_v34, 16 }
 0x3c5   : > { %v3226_v36 = vor.u32 %v3225_v23, %v3222_v37  ;;  %v3233_v54 = vor.u32 %v3232_v18, %v3229_v41  ;;  %v2749_v39 = vrot.slane %v7293_v24, 4  ;;  %v2769_v18 = vsel %vm963_vm0, 0, %v2748_v0 }
 0x3c6   : > { %v3237_v21 = vrot.slane %v3235_v45, 3  ;;  %v3240_v8 = vrot.slane %v3238_v47, 4  ;;  %v3244_v46 = vrot.slane %v3242_v27, 3  ;;  %v3247_v43 = vrot.slane %v3245_v61, 4  ;;  %v3027_v35 = vpop.permute.xlu0 %3026 }
 0x3c7   : > { %v3029_v62 = vpop.permute.xlu1 %3028  ;;  %v3234_v2 = vsel %vm1316_vm4, %v3226_v36, %v3233_v54  ;;  %v2771_v34 = vsel %vm963_vm0, 0, %v2749_v39 }
 0x3c8   : > { %v3241_v33 = vor.u32 %v3240_v8, %v3237_v21  ;;  %v3248_v11 = vor.u32 %v3247_v43, %v3244_v46  ;;  %5219 = vmatprep.mubr.msk.bf16.mxu1 %vm3499_vm9, %v3234_v2 }
 0x3ca   : > { %v3249_v23 = vsel %vm1316_vm4, %v3241_v33, %v3248_v11  ;;  %v2949_v41 = vpop.permute.xlu0 %2948 }
 0x3cb   : > { %5220 = vmatmul.mubr.msk.bf16.vlgmr.msra.gmra.mrb[20].mxu1 %vm3499_vm9, %v3249_v23  ;;  %v3097_v51 = vsel %vm1241_vm3, %v2769_v18, %v2949_v41  ;;  %v3098_v63 = vsel %vm1241_vm3, %v2748_v0, %v2949_v41  ;;  %v2951_v36 = vpop.permute.xlu1 %2950 }
 0x3cc   : > { %v3154_v24 = vsel %vm3144_vm8, %v3097_v51, %v3027_v35  ;;  %v3156_v37 = vsel %vm3144_vm8, %v3098_v63, %v3029_v62  ;;  %v3100_v45 = vsel %vm1241_vm3, %v2771_v34, %v2951_v36  ;;  %v3101_v47 = vsel %vm1241_vm3, %v2749_v39, %v2951_v36 }
 0x3cd   : > { %v3250_v27 = vshrl.u32 %v3154_v24, 16  ;;  %v3253_v61 = vshll.u32 %v3154_v24, 16  ;;  %v3257_v54 = vshrl.u32 %v3156_v37, 16  ;;  %v3260_v21 = vshll.u32 %v3156_v37, 16 }
 0x3ce   : > { %v3158_v8 = vsel %vm3144_vm8, %v3100_v45, %v3031_v56  ;;  %v3160_v46 = vsel %vm3144_vm8, %v3101_v47, %v3033_v10  ;;  %v3039_v0 = vpop.permute.xlu0 %3038  ;;  %v2750_v63 = vrot.slane %v7345_v42, 4  ;;  %v2751_v47 = vrot.slane %v7337_v52, 4 }
 0x3cf   : > { %v3252_v43 = vrot.slane %v3250_v27, 3  ;;  %v3255_v2 = vrot.slane %v3253_v61, 4  ;;  %v3259_v33 = vrot.slane %v3257_v54, 3  ;;  %v3262_v11 = vrot.slane %v3260_v21, 4  ;;  %v3041_v35 = vpop.permute.xlu1 %3040 }
 0x3d0   : > { %v3265_v23 = vshrl.u32 %v3158_v8, 16  ;;  %v3268_v62 = vshll.u32 %v3158_v8, 16  ;;  %v3272_v41 = vshrl.u32 %v3160_v46, 16  ;;  %v3275_v18 = vshll.u32 %v3160_v46, 16 }
 0x3d1   : > { %v3256_v51 = vor.u32 %v3255_v2, %v3252_v43  ;;  %v3263_v39 = vor.u32 %v3262_v11, %v3259_v33  ;;  %v2773_v8 = vsel %vm963_vm0, 0, %v2750_v63  ;;  %v2775_v43 = vsel %vm963_vm0, 0, %v2751_v47 }
 0x3d2   : > { %v3267_v34 = vrot.slane %v3265_v23, 3  ;;  %v3270_v36 = vrot.slane %v3268_v62, 4  ;;  %v3274_v24 = vrot.slane %v3272_v41, 3  ;;  %v3277_v56 = vrot.slane %v3275_v18, 4  ;;  %v3035_v37 = vpop.permute.xlu0 %3034 }
 0x3d3   : > { %v3037_v10 = vpop.permute.xlu1 %3036  ;;  %v3264_v45 = vsel %vm1316_vm4, %v3256_v51, %v3263_v39 }
 0x3d4   : > { %5223 = vmatprep.mubr.msk.bf16.mxu1 %vm3499_vm9, %v3264_v45  ;;  %v3271_v27 = vor.u32 %v3270_v36, %v3267_v34  ;;  %v3278_v61 = vor.u32 %v3277_v56, %v3274_v24 }
 0x3d6   : > { %v3279_v54 = vsel %vm1316_vm4, %v3271_v27, %v3278_v61  ;;  %v2953_v21 = vpop.permute.xlu0 %2952 }
 0x3d7   : > { %5224 = vmatmul.mubr.msk.bf16.gmra.mrb[24].mxu1 %vm3499_vm9, %v3279_v54  ;;  %v3103_v42 = vsel %vm1241_vm3, %v2773_v8, %v2953_v21  ;;  %v3104_v46 = vsel %vm1241_vm3, %v2750_v63, %v2953_v21  ;;  %v2955_v2 = vpop.permute.xlu1 %2954  ;;  %v2752_v8 = vrot.slane %v7385_v49, 4 }
 0x3d8   : > { %v3162_v52 = vsel %vm3144_vm8, %v3103_v42, %v3035_v37  ;;  %v3164_v33 = vsel %vm3144_vm8, %v3104_v46, %v3037_v10  ;;  %v3106_v11 = vsel %vm1241_vm3, %v2775_v43, %v2955_v2  ;;  %v3107_v23 = vsel %vm1241_vm3, %v2751_v47, %v2955_v2 }
 0x3d9   : > { %v3280_v62 = vshrl.u32 %v3162_v52, 16  ;;  %v3283_v41 = vshll.u32 %v3162_v52, 16  ;;  %v3287_v18 = vshrl.u32 %v3164_v33, 16  ;;  %v3290_v51 = vshll.u32 %v3164_v33, 16 }
 0x3da   : > { %v3166_v39 = vsel %vm3144_vm8, %v3106_v11, %v3039_v0  ;;  %v3168_v34 = vsel %vm3144_vm8, %v3107_v23, %v3041_v35  ;;  %v3047_v63 = vpop.permute.xlu0 %3046  ;;  %v2753_v33 = vrot.slane %v7377_v58, 4 }
 0x3db   : > { %v3282_v36 = vrot.slane %v3280_v62, 3  ;;  %v3285_v24 = vrot.slane %v3283_v41, 4  ;;  %v3289_v56 = vrot.slane %v3287_v18, 3  ;;  %v3292_v45 = vrot.slane %v3290_v51, 4  ;;  %v3049_v37 = vpop.permute.xlu1 %3048 }
 0x3dc   : > { %v3295_v27 = vshrl.u32 %v3166_v39, 16  ;;  %v3298_v10 = vshll.u32 %v3166_v39, 16  ;;  %v3302_v61 = vshrl.u32 %v3168_v34, 16  ;;  %v3305_v54 = vshll.u32 %v3168_v34, 16 }
 0x3dd   : > { %v3286_v21 = vor.u32 %v3285_v24, %v3282_v36  ;;  %v3293_v47 = vor.u32 %v3292_v45, %v3289_v56  ;;  %v2777_v18 = vsel %vm963_vm0, 0, %v2752_v8  ;;  %v2779_v39 = vsel %vm963_vm0, 0, %v2753_v33 }
 0x3de   : > { %v3297_v42 = vrot.slane %v3295_v27, 3  ;;  %v3300_v46 = vrot.slane %v3298_v10, 4  ;;  %v3304_v43 = vrot.slane %v3302_v61, 3  ;;  %v3307_v0 = vrot.slane %v3305_v54, 4  ;;  %v3043_v2 = vpop.permute.xlu0 %3042 }
 0x3df   : > { %v3045_v35 = vpop.permute.xlu1 %3044  ;;  %v3294_v52 = vsel %vm1316_vm4, %v3286_v21, %v3293_v47 }
 0x3e0   : > { %5227 = vmatprep.mubr.msk.bf16.mxu1 %vm3499_vm9, %v3294_v52  ;;  %v3301_v11 = vor.u32 %v3300_v46, %v3297_v42  ;;  %v3308_v23 = vor.u32 %v3307_v0, %v3304_v43 }
 0x3e2   : > { %v3309_v62 = vsel %vm1316_vm4, %v3301_v11, %v3308_v23  ;;  %v2957_v41 = vpop.permute.xlu0 %2956 }
 0x3e3   : > { %5228 = vmatmul.mubr.msk.bf16.gmra.mrb[28].mxu1 %vm3499_vm9, %v3309_v62  ;;  %v3109_v49 = vsel %vm1241_vm3, %v2777_v18, %v2957_v41  ;;  %v3110_v51 = vsel %vm1241_vm3, %v2752_v8, %v2957_v41  ;;  %v2959_v34 = vpop.permute.xlu1 %2958  ;;  %v2754_v62 = vrot.slane %v7427_v29, 4 }
 0x3e4   : > { %v3170_v58 = vsel %vm3144_vm8, %v3109_v49, %v3043_v2  ;;  %v3172_v36 = vsel %vm3144_vm8, %v3110_v51, %v3045_v35  ;;  %v3112_v24 = vsel %vm1241_vm3, %v2779_v39, %v2959_v34  ;;  %v3113_v56 = vsel %vm1241_vm3, %v2753_v33, %v2959_v34 }
 0x3e5   : > { %v3310_v45 = vshrl.u32 %v3170_v58, 16  ;;  %v3313_v27 = vshll.u32 %v3170_v58, 16  ;;  %v3317_v10 = vshrl.u32 %v3172_v36, 16  ;;  %v3320_v61 = vshll.u32 %v3172_v36, 16 }
 0x3e6   : > { %v3174_v54 = vsel %vm3144_vm8, %v3112_v24, %v3047_v63  ;;  %v3176_v21 = vsel %vm3144_vm8, %v3113_v56, %v3049_v37  ;;  %v3055_v47 = vpop.permute.xlu0 %3054  ;;  %v2755_v34 = vrot.slane %v7415_v14, 4 }
 0x3e7   : > { %v3312_v8 = vrot.slane %v3310_v45, 3  ;;  %v3315_v42 = vrot.slane %v3313_v27, 4  ;;  %v3319_v46 = vrot.slane %v3317_v10, 3  ;;  %v3322_v43 = vrot.slane %v3320_v61, 4  ;;  %v3057_v0 = vpop.permute.xlu1 %3056 }
 0x3e8   : > { %v3325_v2 = vshrl.u32 %v3174_v54, 16  ;;  %v3328_v35 = vshll.u32 %v3174_v54, 16  ;;  %v3332_v52 = vshrl.u32 %v3176_v21, 16  ;;  %v3335_v11 = vshll.u32 %v3176_v21, 16 }
 0x3e9   : > { %v3316_v23 = vor.u32 %v3315_v42, %v3312_v8  ;;  %v3323_v33 = vor.u32 %v3322_v43, %v3319_v46  ;;  %v2781_v45 = vsel %vm963_vm0, 0, %v2754_v62  ;;  %v2783_v10 = vsel %vm963_vm0, 0, %v2755_v34 }
 0x3ea   : > { %v3327_v41 = vrot.slane %v3325_v2, 3  ;;  %v3330_v18 = vrot.slane %v3328_v35, 4  ;;  %v3334_v49 = vrot.slane %v3332_v52, 3  ;;  %v3337_v63 = vrot.slane %v3335_v11, 4  ;;  %v3051_v51 = vpop.permute.xlu0 %3050 }
 0x3eb   : > { %v3053_v37 = vpop.permute.xlu1 %3052  ;;  %v3324_v39 = vsel %vm1316_vm4, %v3316_v23, %v3323_v33 }
 0x3ec   : > { %5231 = vmatprep.mubr.msk.bf16.mxu1 %vm3499_vm9, %v3324_v39  ;;  %v3331_v58 = vor.u32 %v3330_v18, %v3327_v41  ;;  %v3338_v36 = vor.u32 %v3337_v63, %v3334_v49 }
 0x3ee   : > { %v3339_v24 = vsel %vm1316_vm4, %v3331_v58, %v3338_v36  ;;  %v2961_v56 = vpop.permute.xlu0 %2960  ;;  %v2756_v58 = vrot.slane %v7468_v25, 4 }
 0x3ef   : > { %5232 = vmatmul.mubr.msk.bf16.gmra.mrb[32].mxu1 %vm3499_vm9, %v3339_v24  ;;  %v3115_v29 = vsel %vm1241_vm3, %v2781_v45, %v2961_v56  ;;  %v3116_v27 = vsel %vm1241_vm3, %v2754_v62, %v2961_v56  ;;  %v2963_v61 = vpop.permute.xlu1 %2962 }
 0x3f0   : > { %v3178_v14 = vsel %vm3144_vm8, %v3115_v29, %v3051_v51  ;;  %v3180_v54 = vsel %vm3144_vm8, %v3116_v27, %v3053_v37  ;;  %v3118_v21 = vsel %vm1241_vm3, %v2783_v10, %v2963_v61  ;;  %v3119_v8 = vsel %vm1241_vm3, %v2755_v34, %v2963_v61 }
 0x3f1   : > { %v3340_v42 = vshrl.u32 %v3178_v14, 16  ;;  %v3343_v46 = vshll.u32 %v3178_v14, 16  ;;  %v3347_v43 = vshrl.u32 %v3180_v54, 16  ;;  %v3350_v2 = vshll.u32 %v3180_v54, 16 }
 0x3f2   : > { %v3182_v35 = vsel %vm3144_vm8, %v3118_v21, %v3055_v47  ;;  %v3184_v52 = vsel %vm3144_vm8, %v3119_v8, %v3057_v0  ;;  %v3063_v11 = vpop.permute.xlu0 %3062  ;;  %v2757_v27 = vrot.slane %v7456_v15, 4  ;;  %v2785_v21 = vsel %vm963_vm0, 0, %v2756_v58 }
 0x3f3   : > { %v3342_v23 = vrot.slane %v3340_v42, 3  ;;  %v3345_v33 = vrot.slane %v3343_v46, 4  ;;  %v3349_v62 = vrot.slane %v3347_v43, 3  ;;  %v3352_v41 = vrot.slane %v3350_v2, 4  ;;  %v3065_v18 = vpop.permute.xlu1 %3064 }
 0x3f4   : > { %v3355_v49 = vshrl.u32 %v3182_v35, 16  ;;  %v3358_v63 = vshll.u32 %v3182_v35, 16  ;;  %v3362_v51 = vshrl.u32 %v3184_v52, 16  ;;  %v3365_v37 = vshll.u32 %v3184_v52, 16 }
 0x3f5   : > { %v3346_v39 = vor.u32 %v3345_v33, %v3342_v23  ;;  %v3353_v34 = vor.u32 %v3352_v41, %v3349_v62  ;;  %v2787_v42 = vsel %vm963_vm0, 0, %v2757_v27 }
 0x3f6   : > { %v3357_v36 = vrot.slane %v3355_v49, 3  ;;  %v3360_v24 = vrot.slane %v3358_v63, 4  ;;  %v3364_v56 = vrot.slane %v3362_v51, 3  ;;  %v3367_v47 = vrot.slane %v3365_v37, 4  ;;  %v3059_v45 = vpop.permute.xlu0 %3058 }
 0x3f7   : > { %v3061_v0 = vpop.permute.xlu1 %3060  ;;  %v3354_v29 = vsel %vm1316_vm4, %v3346_v39, %v3353_v34 }
 0x3f8   : > { %5235 = vmatprep.mubr.msk.bf16.mxu1 %vm3499_vm9, %v3354_v29  ;;  %v3361_v10 = vor.u32 %v3360_v24, %v3357_v36  ;;  %v3368_v61 = vor.u32 %v3367_v47, %v3364_v56  ;;  %v2758_v29 = vrot.slane %v7505_v53, 4 }
 0x3fa   : > { %v3369_v14 = vsel %vm1316_vm4, %v3361_v10, %v3368_v61  ;;  %v2965_v54 = vpop.permute.xlu0 %2964 }
 0x3fb   : > { %5236 = vmatmul.mubr.msk.bf16.gmra.mrb[36].mxu1 %vm3499_vm9, %v3369_v14  ;;  %v3121_v25 = vsel %vm1241_vm3, %v2785_v21, %v2965_v54  ;;  %v3122_v8 = vsel %vm1241_vm3, %v2756_v58, %v2965_v54  ;;  %v2967_v46 = vpop.permute.xlu1 %2966  ;;  %v2759_v21 = vrot.slane %v7498_v30, 4 }
 0x3fc   : > { %v3186_v15 = vsel %vm3144_vm8, %v3121_v25, %v3059_v45  ;;  %v3188_v43 = vsel %vm3144_vm8, %v3122_v8, %v3061_v0  ;;  %v3124_v2 = vsel %vm1241_vm3, %v2787_v42, %v2967_v46  ;;  %v3125_v35 = vsel %vm1241_vm3, %v2757_v27, %v2967_v46 }
 0x3fd   : > { %v3370_v52 = vshrl.u32 %v3186_v15, 16  ;;  %v3373_v23 = vshll.u32 %v3186_v15, 16  ;;  %v3377_v33 = vshrl.u32 %v3188_v43, 16  ;;  %v3380_v62 = vshll.u32 %v3188_v43, 16 }
 0x3fe   : > { %v3190_v41 = vsel %vm3144_vm8, %v3124_v2, %v3063_v11  ;;  %v3192_v49 = vsel %vm3144_vm8, %v3125_v35, %v3065_v18  ;;  %v3071_v63 = vpop.permute.xlu0 %3070  ;;  %v2789_v15 = vsel %vm963_vm0, 0, %v2758_v29  ;;  %v2791_v2 = vsel %vm963_vm0, 0, %v2759_v21 }
 0x3ff   : > { %v3372_v51 = vrot.slane %v3370_v52, 3  ;;  %v3375_v37 = vrot.slane %v3373_v23, 4  ;;  %v3379_v39 = vrot.slane %v3377_v33, 3  ;;  %v3382_v34 = vrot.slane %v3380_v62, 4  ;;  %v3073_v58 = vpop.permute.xlu1 %3072 }
 0x400   : > { %v3385_v36 = vshrl.u32 %v3190_v41, 16  ;;  %v3388_v24 = vshll.u32 %v3190_v41, 16  ;;  %v3392_v56 = vshrl.u32 %v3192_v49, 16  ;;  %v3395_v47 = vshll.u32 %v3192_v49, 16 }
 0x401   : > { %v3376_v45 = vor.u32 %v3375_v37, %v3372_v51  ;;  %v3383_v0 = vor.u32 %v3382_v34, %v3379_v39 }
 0x402   : > { %v3387_v27 = vrot.slane %v3385_v36, 3  ;;  %v3390_v10 = vrot.slane %v3388_v24, 4  ;;  %v3394_v61 = vrot.slane %v3392_v56, 3  ;;  %v3397_v11 = vrot.slane %v3395_v47, 4  ;;  %v3067_v14 = vpop.permute.xlu0 %3066 }
 0x403   : > { %v3069_v18 = vpop.permute.xlu1 %3068  ;;  %v3384_v54 = vsel %vm1316_vm4, %v3376_v45, %v3383_v0 }
 0x404   : > { %5239 = vmatprep.mubr.msk.bf16.mxu1 %vm3499_vm9, %v3384_v54  ;;  %v3391_v25 = vor.u32 %v3390_v10, %v3387_v27  ;;  %v3398_v8 = vor.u32 %v3397_v11, %v3394_v61 }
 0x406   : > { %v3399_v42 = vsel %vm1316_vm4, %v3391_v25, %v3398_v8  ;;  %v2969_v46 = vpop.permute.xlu0 %2968 }
 0x407   : > { %5240 = vmatmul.mubr.msk.bf16.gmra.mrb[40].mxu1 %vm3499_vm9, %v3399_v42  ;;  %v3127_v53 = vsel %vm1241_vm3, %v2789_v15, %v2969_v46  ;;  %v3128_v43 = vsel %vm1241_vm3, %v2758_v29, %v2969_v46  ;;  %v2971_v35 = vpop.permute.xlu1 %2970  ;;  %v2761_v42 = vrot.slane %v7540_v19, 4  ;;  %v2762_v19 = vrot.slane %v7570_v59, 4 }
 0x408   : > { %v3194_v30 = vsel %vm3144_vm8, %v3127_v53, %v3067_v14  ;;  %v3196_v52 = vsel %vm3144_vm8, %v3128_v43, %v3069_v18  ;;  %v3130_v23 = vsel %vm1241_vm3, %v2791_v2, %v2971_v35  ;;  %v3131_v33 = vsel %vm1241_vm3, %v2759_v21, %v2971_v35 }
 0x409   : > { %v3400_v62 = vshrl.u32 %v3194_v30, 16  ;;  %v3403_v41 = vshll.u32 %v3194_v30, 16  ;;  %v3407_v49 = vshrl.u32 %v3196_v52, 16  ;;  %v3410_v51 = vshll.u32 %v3196_v52, 16 }
 0x40a   : > { %v3198_v37 = vsel %vm3144_vm8, %v3130_v23, %v3071_v63  ;;  %v3200_v39 = vsel %vm3144_vm8, %v3131_v33, %v3073_v58  ;;  %v3079_v34 = vpop.permute.xlu0 %3078  ;;  %v2760_v14 = vrot.slane %v7548_v31, 4  ;;  %v2795_v30 = vsel %vm963_vm0, 0, %v2761_v42 }
 0x40b   : > { %v3402_v36 = vrot.slane %v3400_v62, 3  ;;  %v3405_v24 = vrot.slane %v3403_v41, 4  ;;  %v3409_v56 = vrot.slane %v3407_v49, 3  ;;  %v3412_v47 = vrot.slane %v3410_v51, 4  ;;  %v3081_v45 = vpop.permute.xlu1 %3080 }
 0x40c   : > { %v3415_v0 = vshrl.u32 %v3198_v37, 16  ;;  %v3418_v29 = vshll.u32 %v3198_v37, 16  ;;  %v3422_v27 = vshrl.u32 %v3200_v39, 16  ;;  %v3425_v10 = vshll.u32 %v3200_v39, 16 }
 0x40d   : > { %v3406_v61 = vor.u32 %v3405_v24, %v3402_v36  ;;  %v3413_v11 = vor.u32 %v3412_v47, %v3409_v56  ;;  %v2793_v2 = vsel %vm963_vm0, 0, %v2760_v14  ;;  %v2763_v47 = vrot.slane %v7532_v60, 4 }
 0x40e   : > { %v3417_v18 = vrot.slane %v3415_v0, 3  ;;  %v3420_v54 = vrot.slane %v3418_v29, 4  ;;  %v3424_v21 = vrot.slane %v3422_v27, 3  ;;  %v3427_v63 = vrot.slane %v3425_v10, 4  ;;  %v3075_v25 = vpop.permute.xlu0 %3074 }
 0x40f   : > { %v3077_v58 = vpop.permute.xlu1 %3076  ;;  %v3414_v8 = vsel %vm1316_vm4, %v3406_v61, %v3413_v11 }
 0x410   : > { %5243 = vmatprep.mubr.msk.bf16.mxu1 %vm3499_vm9, %v3414_v8  ;;  %v3421_v46 = vor.u32 %v3420_v54, %v3417_v18  ;;  %v3428_v15 = vor.u32 %v3427_v63, %v3424_v21  ;;  %v2797_v54 = vsel %vm963_vm0, 0, %v2762_v19 }
 0x412   : > { %v3429_v53 = vsel %vm1316_vm4, %v3421_v46, %v3428_v15  ;;  %v2973_v43 = vpop.permute.xlu0 %2972 }
 0x413   : > { %5244 = vmatmul.mubr.msk.bf16.gmra.mrb[44].mxu1 %vm3499_vm9, %v3429_v53  ;;  %v3133_v31 = vsel %vm1241_vm3, %v2793_v2, %v2973_v43  ;;  %v3134_v35 = vsel %vm1241_vm3, %v2760_v14, %v2973_v43  ;;  %v2975_v52 = vpop.permute.xlu1 %2974  ;;  %v2799_v2 = vsel %vm963_vm0, 0, %v2763_v47 }
 0x414   : > { %v3202_v23 = vsel %vm3144_vm8, %v3133_v31, %v3075_v25  ;;  %v3204_v33 = vsel %vm3144_vm8, %v3134_v35, %v3077_v58  ;;  %v3136_v62 = vsel %vm1241_vm3, %v2795_v30, %v2975_v52  ;;  %v3137_v41 = vsel %vm1241_vm3, %v2761_v42, %v2975_v52 }
 0x415   : > { %v3430_v49 = vshrl.u32 %v3202_v23, 16  ;;  %v3433_v51 = vshll.u32 %v3202_v23, 16  ;;  %v3437_v37 = vshrl.u32 %v3204_v33, 16  ;;  %v3440_v39 = vshll.u32 %v3204_v33, 16 }
 0x416   : > { %v3206_v36 = vsel %vm3144_vm8, %v3136_v62, %v3079_v34  ;;  %v3208_v24 = vsel %vm3144_vm8, %v3137_v41, %v3081_v45  ;;  %v3083_v56 = vpop.permute.xlu0 %3082 }
 0x417   : > { %v3432_v59 = vrot.slane %v3430_v49, 3  ;;  %v3435_v0 = vrot.slane %v3433_v51, 4  ;;  %v3439_v29 = vrot.slane %v3437_v37, 3  ;;  %v3442_v27 = vrot.slane %v3440_v39, 4  ;;  %v3085_v10 = vpop.permute.xlu1 %3084 }
 0x418   : > { %v3445_v61 = vshrl.u32 %v3206_v36, 16  ;;  %v3448_v11 = vshll.u32 %v3206_v36, 16  ;;  %v3452_v14 = vshrl.u32 %v3208_v24, 16  ;;  %v3455_v18 = vshll.u32 %v3208_v24, 16 }
 0x419   : > { %v3436_v21 = vor.u32 %v3435_v0, %v3432_v59  ;;  %v3443_v63 = vor.u32 %v3442_v27, %v3439_v29 }
 0x41a   : > { %v3447_v25 = vrot.slane %v3445_v61, 3  ;;  %v3450_v34 = vrot.slane %v3448_v11, 4  ;;  %v3454_v58 = vrot.slane %v3452_v14, 3  ;;  %v3457_v45 = vrot.slane %v3455_v18, 4  ;;  %v2977_v8 = vpop.permute.xlu0 %2976 }
 0x41b   : > { %v3139_v60 = vsel %vm1241_vm3, %v2797_v54, %v2977_v8  ;;  %v3140_v42 = vsel %vm1241_vm3, %v2762_v19, %v2977_v8  ;;  %v2979_v46 = vpop.permute.xlu1 %2978  ;;  %v3444_v15 = vsel %vm1316_vm4, %v3436_v21, %v3443_v63 }
 0x41c   : > { %v3210_v53 = vsel %vm3144_vm8, %v3139_v60, %v3083_v56  ;;  %v3212_v43 = vsel %vm3144_vm8, %v3140_v42, %v3085_v10  ;;  %5247 = vmatprep.mubr.msk.bf16.mxu1 %vm3499_vm9, %v3444_v15  ;;  %v3142_v23 = vsel %vm1241_vm3, %v2799_v2, %v2979_v46  ;;  %v3143_v33 = vsel %vm1241_vm3, %v2763_v47, %v2979_v46  ;;  %v7740_v42 = vld [vmem:[#allocation14] ss:$0 sm:$0xff] }
 0x41d   : > { %v3460_v31 = vshrl.u32 %v3210_v53, 16  ;;  %v3463_v35 = vshll.u32 %v3210_v53, 16  ;;  %v3467_v30 = vshrl.u32 %v3212_v43, 16  ;;  %v3470_v52 = vshll.u32 %v3212_v43, 16 }
 0x41e   : > { %v3451_v19 = vor.u32 %v3450_v34, %v3447_v25  ;;  %v3458_v62 = vor.u32 %v3457_v45, %v3454_v58  ;;  %v3087_v41 = vpop.permute.xlu0 %3086  ;;  %v5535_v58 = vld [vmem:[#allocation16] sm:$0xff]   ;;  %v5536_v45 = vld [vmem:[#allocation16 + $0x8] ss:$0 sps:$4 sm:$0xff]  }
 0x41f   : > { %v3462_v49 = vrot.slane %v3460_v31, 3  ;;  %v3465_v51 = vrot.slane %v3463_v35, 4  ;;  %v3469_v37 = vrot.slane %v3467_v30, 3  ;;  %v3472_v39 = vrot.slane %v3470_v52, 4  ;;  %v3089_v36 = vpop.permute.xlu1 %3088  ;;  %5255 = vmatprep.subr.bf16.mxu1 %v5535_v58 }
 0x420   : > { %v3459_v24 = vsel %vm1316_vm4, %v3451_v19, %v3458_v62  ;;  %v3214_v56 = vsel %vm3144_vm8, %v3142_v23, %v3087_v41  ;;  %v3216_v59 = vsel %vm3144_vm8, %v3143_v33, %v3089_v36  ;;  %5256 = vmatpush3.bf16.msra.mxu1 %v5535_v58  ;;  %v4140_v8 = vsel %vm963_vm0, %v5536_v45, 0 }
 0x421   : > { %5248 = vmatmul.mubr.msk.bf16.gmra.mrb[48].mxu1 %vm3499_vm9, %v3459_v24  ;;  %v3475_v0 = vshrl.u32 %v3214_v56, 16  ;;  %v3478_v29 = vshll.u32 %v3214_v56, 16  ;;  %v3482_v27 = vshrl.u32 %v3216_v59, 16  ;;  %v3485_v47 = vshll.u32 %v3216_v59, 16  ;;  %5370 = vmatprep.subr.msk.bf16.mxu1 %vm963_vm0, %v5536_v45 }
 0x422   : > { %v3466_v10 = vor.u32 %v3465_v51, %v3462_v49  ;;  %v3473_v61 = vor.u32 %v3472_v39, %v3469_v37 }
 0x423   : > { %v3477_v11 = vrot.slane %v3475_v0, 3  ;;  %v3480_v14 = vrot.slane %v3478_v29, 4  ;;  %v3484_v18 = vrot.slane %v3482_v27, 3  ;;  %v3487_v54 = vrot.slane %v3485_v47, 4 }
 0x424   : > { %v3474_v21 = vsel %vm1316_vm4, %v3466_v10, %v3473_v61  ;;  %5258 = vmatpush3.bf16.msra.mxu1 %v4140_v8 }
 0x425   : > { %v3481_v63 = vor.u32 %v3480_v14, %v3477_v11  ;;  %v3488_v25 = vor.u32 %v3487_v54, %v3484_v18  ;;  %5251 = vmatprep.mubr.msk.bf16.mxu1 %vm3499_vm9, %v3474_v21 }
 0x427   : > { %v3489_v34 = vsel %vm1316_vm4, %v3481_v63, %v3488_v25 }
 0x429   : > { %5252 = vmatmul.mubr.msk.bf16.gmra.mrb[52].mxu1 %vm3499_vm9, %v3489_v34 }
 0x49e   : > { %v5221_v60 = vpop.f32.mrb[20].mxu1 }
 0x49f   : > { %v3591_v46 = vpop.f32.mrb[21].mxu1  ;;  %v3743_v53 = vadd.f32 %v5221_v60, %v7740_v42 }
 0x4a0   : > { %v5222_v15 = vpop.f32.mrb[22].mxu1 }
 0x4a1   : > { %v3744_v43 = vadd.f32 %v5222_v15, %v7740_v42  ;;  %v3594_v2 = vpop.f32.mrb[23].mxu1 }
 0x4a3   : > { %v7744_v31 = vpack.c.bf16 %v3744_v43, %v3743_v53 }
 0x4a5   : > { %3950 = vrot.lane.b32.xlu0 %v7744_v31, %s5945_s19 }
 0x4aa   : > { %v5225_v35 = vpop.f32.mrb[24].mxu1 }
 0x4ab   : > { %v3607_v30 = vpop.f32.mrb[25].mxu1  ;;  %v3747_v23 = vadd.f32 %v5225_v35, %v7740_v42 }
 0x4ac   : > { %v5226_v52 = vpop.f32.mrb[26].mxu1  ;;  %v3745_v62 = vadd.f32 %v7740_v42, %v3607_v30 }
 0x4ad   : > { %v3748_v33 = vadd.f32 %v5226_v52, %v7740_v42  ;;  %v3610_v19 = vpop.f32.mrb[27].mxu1 }
 0x4ae   : > { %v3746_v41 = vadd.f32 %v7740_v42, %v3610_v19 }
 0x4af   : > { %v7752_v49 = vpack.c.bf16 %v3748_v33, %v3747_v23 }
 0x4b0   : > { %v7754_v51 = vpack.c.bf16 %v3746_v41, %v3745_v62 }
 0x4b2   : > { %3983 = vrot.lane.b32.xlu0 %v7754_v51, %s5947_s26  ;;  %3952 = vrot.lane.b32.xlu1 %v7754_v51, %s5945_s19 }
 0x4b6   : > { %3954 = vrot.lane.b32.xlu0 %v7752_v49, %s5945_s19  ;;  %3985 = vrot.lane.b32.xlu1 %v7752_v49, %s5947_s26  ;;  %v5229_v37 = vpop.f32.mrb[28].mxu1 }
 0x4b7   : > { %v3623_v39 = vpop.f32.mrb[29].mxu1  ;;  %v3751_v24 = vadd.f32 %v5229_v37, %v7740_v42 }
 0x4b8   : > { %v5230_v36 = vpop.f32.mrb[30].mxu1  ;;  %v3749_v0 = vadd.f32 %v7740_v42, %v3623_v39 }
 0x4b9   : > { %v3752_v56 = vadd.f32 %v5230_v36, %v7740_v42  ;;  %v3626_v59 = vpop.f32.mrb[31].mxu1 }
 0x4ba   : > { %v3750_v29 = vadd.f32 %v7740_v42, %v3626_v59 }
 0x4bb   : > { %v7768_v27 = vpack.c.bf16 %v3752_v56, %v3751_v24 }
 0x4bc   : > { %v7770_v47 = vpack.c.bf16 %v3750_v29, %v3749_v0 }
 0x4be   : > { %3987 = vrot.lane.b32.xlu0 %v7770_v47, %s5947_s26  ;;  %3956 = vrot.lane.b32.xlu1 %v7770_v47, %s5945_s19 }
 0x4c2   : > { %3958 = vrot.lane.b32.xlu0 %v7768_v27, %s5945_s19  ;;  %3989 = vrot.lane.b32.xlu1 %v7768_v27, %s5947_s26  ;;  %v5233_v10 = vpop.f32.mrb[32].mxu1 }
 0x4c3   : > { %v3639_v61 = vpop.f32.mrb[33].mxu1  ;;  %v3755_v14 = vadd.f32 %v5233_v10, %v7740_v42 }
 0x4c4   : > { %v5234_v11 = vpop.f32.mrb[34].mxu1  ;;  %v3753_v21 = vadd.f32 %v7740_v42, %v3639_v61 }
 0x4c5   : > { %v3756_v18 = vadd.f32 %v5234_v11, %v7740_v42  ;;  %v3642_v54 = vpop.f32.mrb[35].mxu1 }
 0x4c6   : > { %v3754_v63 = vadd.f32 %v7740_v42, %v3642_v54 }
 0x4c7   : > { %v7784_v25 = vpack.c.bf16 %v3756_v18, %v3755_v14 }
 0x4c8   : > { %v7786_v34 = vpack.c.bf16 %v3754_v63, %v3753_v21 }
 0x4ca   : > { %3991 = vrot.lane.b32.xlu0 %v7786_v34, %s5947_s26  ;;  %3960 = vrot.lane.b32.xlu1 %v7786_v34, %s5945_s19 }
 0x4ce   : > { %3962 = vrot.lane.b32.xlu0 %v7784_v25, %s5945_s19  ;;  %3993 = vrot.lane.b32.xlu1 %v7784_v25, %s5947_s26  ;;  %v5237_v58 = vpop.f32.mrb[36].mxu1 }
 0x4cf   : > { %v3655_v45 = vpop.f32.mrb[37].mxu1  ;;  %v3759_v60 = vadd.f32 %v5237_v58, %v7740_v42 }
 0x4d0   : > { %v5238_v8 = vpop.f32.mrb[38].mxu1  ;;  %v3757_v53 = vadd.f32 %v7740_v42, %v3655_v45 }
 0x4d1   : > { %v3760_v46 = vadd.f32 %v5238_v8, %v7740_v42  ;;  %v3658_v15 = vpop.f32.mrb[39].mxu1 }
 0x4d2   : > { %v3758_v43 = vadd.f32 %v7740_v42, %v3658_v15 }
 0x4d3   : > { %v7800_v2 = vpack.c.bf16 %v3760_v46, %v3759_v60 }
 0x4d4   : > { %v7802_v35 = vpack.c.bf16 %v3758_v43, %v3757_v53 }
 0x4d6   : > { %3995 = vrot.lane.b32.xlu0 %v7802_v35, %s5947_s26  ;;  %3964 = vrot.lane.b32.xlu1 %v7802_v35, %s5945_s19 }
 0x4da   : > { %3966 = vrot.lane.b32.xlu0 %v7800_v2, %s5945_s19  ;;  %3997 = vrot.lane.b32.xlu1 %v7800_v2, %s5947_s26  ;;  %v5241_v30 = vpop.f32.mrb[40].mxu1 }
 0x4db   : > { %v3671_v52 = vpop.f32.mrb[41].mxu1  ;;  %v3763_v33 = vadd.f32 %v5241_v30, %v7740_v42 }
 0x4dc   : > { %v5242_v23 = vpop.f32.mrb[42].mxu1  ;;  %v3761_v41 = vadd.f32 %v7740_v42, %v3671_v52 }
 0x4dd   : > { %v3764_v19 = vadd.f32 %v5242_v23, %v7740_v42  ;;  %v3674_v62 = vpop.f32.mrb[43].mxu1 }
 0x4de   : > { %v3762_v37 = vadd.f32 %v7740_v42, %v3674_v62 }
 0x4df   : > { %v7816_v39 = vpack.c.bf16 %v3764_v19, %v3763_v33 }
 0x4e0   : > { %v7818_v36 = vpack.c.bf16 %v3762_v37, %v3761_v41  ;;  %v8256_v41 = vmov 0.0|0.0  }
 0x4e2   : > { %3999 = vrot.lane.b32.xlu0 %v7818_v36, %s5947_s26  ;;  %3968 = vrot.lane.b32.xlu1 %v7818_v36, %s5945_s19 }
 0x4e6   : > { %3970 = vrot.lane.b32.xlu0 %v7816_v39, %s5945_s19  ;;  %4001 = vrot.lane.b32.xlu1 %v7816_v39, %s5947_s26  ;;  %v5245_v24 = vpop.f32.mrb[44].mxu1 }
 0x4e7   : > { %v3687_v56 = vpop.f32.mrb[45].mxu1  ;;  %v3767_v0 = vadd.f32 %v5245_v24, %v7740_v42 }
 0x4e8   : > { %v5246_v59 = vpop.f32.mrb[46].mxu1  ;;  %v3765_v61 = vadd.f32 %v7740_v42, %v3687_v56 }
 0x4e9   : > { %v3768_v29 = vadd.f32 %v5246_v59, %v7740_v42  ;;  %v3690_v10 = vpop.f32.mrb[47].mxu1 }
 0x4ea   : > { %v3766_v11 = vadd.f32 %v7740_v42, %v3690_v10 }
 0x4eb   : > { %v7832_v14 = vpack.c.bf16 %v3768_v29, %v3767_v0 }
 0x4ec   : > { %v7834_v18 = vpack.c.bf16 %v3766_v11, %v3765_v61 }
 0x4ee   : > { %4003 = vrot.lane.b32.xlu0 %v7834_v18, %s5947_s26  ;;  %3972 = vrot.lane.b32.xlu1 %v7834_v18, %s5945_s19 }
 0x4f2   : > { %3974 = vrot.lane.b32.xlu0 %v7832_v14, %s5945_s19  ;;  %4005 = vrot.lane.b32.xlu1 %v7832_v14, %s5947_s26 }
 0x4f4   : > { %v5249_v54 = vpop.f32.mrb[48].mxu1 }
 0x4f5   : > { %v3703_v21 = vpop.f32.mrb[49].mxu1  ;;  %v3771_v58 = vadd.f32 %v5249_v54, %v7740_v42 }
 0x4f6   : > { %v5250_v63 = vpop.f32.mrb[50].mxu1  ;;  %v3769_v60 = vadd.f32 %v7740_v42, %v3703_v21 }
 0x4f7   : > { %v3772_v45 = vadd.f32 %v5250_v63, %v7740_v42  ;;  %v3706_v8 = vpop.f32.mrb[51].mxu1 }
 0x4f8   : > { %v3770_v46 = vadd.f32 %v7740_v42, %v3706_v8 }
 0x4f9   : > { %v7848_v15 = vpack.c.bf16 %v3772_v45, %v3771_v58 }
 0x4fa   : > { %v7850_v53 = vpack.c.bf16 %v3770_v46, %v3769_v60 }
 0x4fc   : > { %4007 = vrot.lane.b32.xlu0 %v7850_v53, %s5947_s26  ;;  %3976 = vrot.lane.b32.xlu1 %v7850_v53, %s5945_s19  ;;  %v5253_v43 = vpop.f32.mrb[52].mxu1 }
 0x4fd   : > { %v3719_v30 = vpop.f32.mrb[53].mxu1 }
 0x4fe   : > { %v5254_v52 = vpop.f32.mrb[54].mxu1  ;;  %v3773_v33 = vadd.f32 %v7740_v42, %v3719_v30 }
 0x4ff   : > { %v3722_v23 = vpop.f32.mrb[55].mxu1 }
 0x500   : > { %3978 = vrot.lane.b32.xlu0 %v7848_v15, %s5945_s19  ;;  %4009 = vrot.lane.b32.xlu1 %v7848_v15, %s5947_s26  ;;  %v3774_v19 = vadd.f32 %v7740_v42, %v3722_v23 }
 0x502   : > { %v3932_v62 = vpack.c.bf16 %v3774_v19, %v3773_v33 }
 0x504   : > { %4011 = vrot.lane.b32.xlu0 %v3932_v62, %s5947_s26  ;;  %3980 = vrot.lane.b32.xlu1 %v3932_v62, %s5945_s19 }
 0x508   : > { %4013 = vrot.lane.b32.xlu1 %v8256_v41, %s5947_s26 }
 0x517   : > { %v3951_v37 = vpop.permute.xlu0 %3950 }
 0x518   : > { %v4017_v24 = vsel %vm1241_vm3, 0.0|0.0, %v3951_v37 }
 0x524   : > { %v3984_v56 = vpop.permute.xlu0 %3983  ;;  %v3953_v59 = vpop.permute.xlu1 %3952 }
 0x525   : > { %v4064_v0 = vsel %vm3144_vm8, %v4017_v24, %v3984_v56  ;;  %v4020_v42 = vsel %vm1241_vm3, %v7744_v31, %v3953_v59 }
 0x526   : > { %5259 = vmatprep.mubr.msk.bf16.mxu1 %vm3499_vm9, %v4064_v0 }
 0x528   : > { %v3986_v29 = vpop.permute.xlu1 %3985  ;;  %v3955_v61 = vpop.permute.xlu0 %3954 }
 0x529   : > { %v4066_v10 = vsel %vm3144_vm8, %v4020_v42, %v3986_v29  ;;  %v4023_v11 = vsel %vm1241_vm3, %v7754_v51, %v3955_v61 }
 0x52a   : > { %5260 = vmatmul.mubr.msk.bf16.vlgmr.msra.gmra.mrb[56].mxu1 %vm3499_vm9, %v4066_v10 }
 0x530   : > { %v3988_v54 = vpop.permute.xlu0 %3987  ;;  %v3957_v21 = vpop.permute.xlu1 %3956 }
 0x531   : > { %v4068_v63 = vsel %vm3144_vm8, %v4023_v11, %v3988_v54  ;;  %v4026_v58 = vsel %vm1241_vm3, %v7752_v49, %v3957_v21 }
 0x532   : > { %5263 = vmatprep.mubr.msk.bf16.mxu1 %vm3499_vm9, %v4068_v63 }
 0x534   : > { %v3990_v45 = vpop.permute.xlu1 %3989  ;;  %v3959_v8 = vpop.permute.xlu0 %3958 }
 0x535   : > { %v4070_v31 = vsel %vm3144_vm8, %v4026_v58, %v3990_v45  ;;  %v4029_v60 = vsel %vm1241_vm3, %v7770_v47, %v3959_v8 }
 0x536   : > { %5264 = vmatmul.mubr.msk.bf16.gmra.mrb[60].mxu1 %vm3499_vm9, %v4070_v31 }
 0x53c   : > { %v3992_v46 = vpop.permute.xlu0 %3991  ;;  %v3961_v51 = vpop.permute.xlu1 %3960 }
 0x53d   : > { %v4072_v43 = vsel %vm3144_vm8, %v4029_v60, %v3992_v46  ;;  %v4032_v30 = vsel %vm1241_vm3, %v7768_v27, %v3961_v51 }
 0x53e   : > { %5267 = vmatprep.mubr.msk.bf16.mxu1 %vm3499_vm9, %v4072_v43 }
 0x540   : > { %v3994_v52 = vpop.permute.xlu1 %3993  ;;  %v3963_v23 = vpop.permute.xlu0 %3962 }
 0x541   : > { %v4074_v49 = vsel %vm3144_vm8, %v4032_v30, %v3994_v52  ;;  %v4035_v33 = vsel %vm1241_vm3, %v7786_v34, %v3963_v23 }
 0x542   : > { %5268 = vmatmul.mubr.msk.bf16.gmra.mrb[64].mxu1 %vm3499_vm9, %v4074_v49 }
 0x548   : > { %v3996_v19 = vpop.permute.xlu0 %3995  ;;  %v3965_v47 = vpop.permute.xlu1 %3964 }
 0x549   : > { %v4076_v62 = vsel %vm3144_vm8, %v4035_v33, %v3996_v19  ;;  %v4038_v41 = vsel %vm1241_vm3, %v7784_v25, %v3965_v47  ;;  %v7929_v33 = vld [vmem:[#allocation17] ss:$0 sm:$0xff] }
 0x54a   : > { %5271 = vmatprep.mubr.msk.bf16.mxu1 %vm3499_vm9, %v4076_v62 }
 0x54c   : > { %v3998_v37 = vpop.permute.xlu1 %3997  ;;  %v3967_v24 = vpop.permute.xlu0 %3966 }
 0x54d   : > { %v4078_v27 = vsel %vm3144_vm8, %v4038_v41, %v3998_v37  ;;  %v4041_v56 = vsel %vm1241_vm3, %v7802_v35, %v3967_v24 }
 0x54e   : > { %5272 = vmatmul.mubr.msk.bf16.gmra.mrb[68].mxu1 %vm3499_vm9, %v4078_v27 }
 0x554   : > { %v4000_v59 = vpop.permute.xlu0 %3999  ;;  %v3969_v34 = vpop.permute.xlu1 %3968 }
 0x555   : > { %v4080_v0 = vsel %vm3144_vm8, %v4041_v56, %v4000_v59  ;;  %v4044_v42 = vsel %vm1241_vm3, %v7800_v2, %v3969_v34 }
 0x556   : > { %5275 = vmatprep.mubr.msk.bf16.mxu1 %vm3499_vm9, %v4080_v0 }
 0x558   : > { %v4002_v29 = vpop.permute.xlu1 %4001  ;;  %v3971_v10 = vpop.permute.xlu0 %3970 }
 0x559   : > { %v4082_v25 = vsel %vm3144_vm8, %v4044_v42, %v4002_v29  ;;  %v4047_v61 = vsel %vm1241_vm3, %v7818_v36, %v3971_v10 }
 0x55a   : > { %5276 = vmatmul.mubr.msk.bf16.gmra.mrb[72].mxu1 %vm3499_vm9, %v4082_v25 }
 0x560   : > { %v4004_v11 = vpop.permute.xlu0 %4003  ;;  %v3973_v35 = vpop.permute.xlu1 %3972 }
 0x561   : > { %v4084_v54 = vsel %vm3144_vm8, %v4047_v61, %v4004_v11  ;;  %v4050_v21 = vsel %vm1241_vm3, %v7816_v39, %v3973_v35 }
 0x562   : > { %5279 = vmatprep.mubr.msk.bf16.mxu1 %vm3499_vm9, %v4084_v54 }
 0x564   : > { %v4006_v63 = vpop.permute.xlu1 %4005  ;;  %v3975_v58 = vpop.permute.xlu0 %3974 }
 0x565   : > { %v4086_v2 = vsel %vm3144_vm8, %v4050_v21, %v4006_v63  ;;  %v4053_v45 = vsel %vm1241_vm3, %v7834_v18, %v3975_v58 }
 0x566   : > { %5280 = vmatmul.mubr.msk.bf16.gmra.mrb[76].mxu1 %vm3499_vm9, %v4086_v2 }
 0x56e   : > { %v4008_v31 = vpop.permute.xlu0 %4007  ;;  %v3977_v36 = vpop.permute.xlu1 %3976 }
 0x56f   : > { %v4088_v8 = vsel %vm3144_vm8, %v4053_v45, %v4008_v31  ;;  %v4056_v60 = vsel %vm1241_vm3, %v7832_v14, %v3977_v36 }
 0x570   : > { %5283 = vmatprep.mubr.msk.bf16.mxu1 %vm3499_vm9, %v4088_v8 }
 0x572   : > { %v3979_v46 = vpop.permute.xlu0 %3978  ;;  %v4010_v39 = vpop.permute.xlu1 %4009 }
 0x573   : > { %v4090_v51 = vsel %vm3144_vm8, %v4056_v60, %v4010_v39  ;;  %v4059_v43 = vsel %vm1241_vm3, %v7850_v53, %v3979_v46 }
 0x574   : > { %5284 = vmatmul.mubr.msk.bf16.gmra.mrb[80].mxu1 %vm3499_vm9, %v4090_v51 }
 0x576   : > { %v4012_v30 = vpop.permute.xlu0 %4011  ;;  %v3981_v18 = vpop.permute.xlu1 %3980 }
 0x577   : > { %v4092_v52 = vsel %vm3144_vm8, %v4059_v43, %v4012_v30  ;;  %v4062_v49 = vsel %vm1241_vm3, %v7848_v15, %v3981_v18 }
 0x578   : > { %5287 = vmatprep.mubr.msk.bf16.mxu1 %vm3499_vm9, %v4092_v52 }
 0x57a   : > { %v4014_v23 = vpop.permute.xlu1 %4013 }
 0x57b   : > { %v4094_v14 = vsel %vm3144_vm8, %v4062_v49, %v4014_v23 }
 0x57c   : > { %5288 = vmatmul.mubr.msk.bf16.gmra.mrb[84].mxu1 %vm3499_vm9, %v4094_v14 }
 0x5fd   : > { %v5261_v19 = vpop.f32.mrb[56].mxu1 }
 0x5fe   : > { %v4312_v47 = vadd.f32 %v5261_v19, %v7929_v33  ;;  %v4176_v53 = vpop.f32.mrb[57].mxu1 }
 0x5ff   : > { %v5262_v62 = vpop.f32.mrb[58].mxu1  ;;  %v4310_v27 = vadd.f32 %v7929_v33, %v4176_v53 }
 0x600   : > { %v4313_v41 = vadd.f32 %v5262_v62, %v7929_v33  ;;  %4378 = vrot.lane.b32.xlu0 %v4312_v47, %s5945_s19  ;;  %v4179_v37 = vpop.f32.mrb[59].mxu1 }
 0x601   : > { %v4311_v15 = vadd.f32 %v7929_v33, %v4179_v37 }
 0x602   : > { %4380 = vrot.lane.b32.xlu1 %v4313_v41, %s5945_s19 }
 0x604   : > { %4374 = vrot.lane.b32.xlu0 %v4310_v27, %s5945_s19 }
 0x606   : > { %4376 = vrot.lane.b32.xlu1 %v4311_v15, %s5945_s19 }
 0x609   : > { %v5265_v24 = vpop.f32.mrb[60].mxu1 }
 0x60a   : > { %v4316_v56 = vadd.f32 %v5265_v24, %v7929_v33  ;;  %v4192_v59 = vpop.f32.mrb[61].mxu1 }
 0x60b   : > { %v5266_v34 = vpop.f32.mrb[62].mxu1  ;;  %v4314_v29 = vadd.f32 %v7929_v33, %v4192_v59 }
 0x60c   : > { %v4317_v0 = vadd.f32 %v5266_v34, %v7929_v33  ;;  %4386 = vrot.lane.b32.xlu0 %v4316_v56, %s5945_s19  ;;  %v4195_v42 = vpop.f32.mrb[63].mxu1 }
 0x60d   : > { %v4315_v25 = vadd.f32 %v7929_v33, %v4195_v42 }
 0x60e   : > { %4388 = vrot.lane.b32.xlu1 %v4317_v0, %s5945_s19 }
 0x610   : > { %4382 = vrot.lane.b32.xlu0 %v4314_v29, %s5945_s19 }
 0x612   : > { %4384 = vrot.lane.b32.xlu1 %v4315_v25, %s5945_s19 }
 0x615   : > { %v5269_v10 = vpop.f32.mrb[64].mxu1 }
 0x616   : > { %v4320_v61 = vadd.f32 %v5269_v10, %v7929_v33  ;;  %v4208_v11 = vpop.f32.mrb[65].mxu1 }
 0x617   : > { %v5270_v35 = vpop.f32.mrb[66].mxu1  ;;  %v4318_v63 = vadd.f32 %v7929_v33, %v4208_v11 }
 0x618   : > { %v4321_v54 = vadd.f32 %v5270_v35, %v7929_v33  ;;  %4394 = vrot.lane.b32.xlu0 %v4320_v61, %s5945_s19  ;;  %v4211_v21 = vpop.f32.mrb[67].mxu1 }
 0x619   : > { %v4319_v2 = vadd.f32 %v7929_v33, %v4211_v21 }
 0x61a   : > { %4396 = vrot.lane.b32.xlu1 %v4321_v54, %s5945_s19 }
 0x61c   : > { %4390 = vrot.lane.b32.xlu0 %v4318_v63, %s5945_s19 }
 0x61e   : > { %4392 = vrot.lane.b32.xlu1 %v4319_v2, %s5945_s19 }
 0x621   : > { %v5273_v58 = vpop.f32.mrb[68].mxu1 }
 0x622   : > { %v4324_v45 = vadd.f32 %v5273_v58, %v7929_v33  ;;  %v4224_v31 = vpop.f32.mrb[69].mxu1 }
 0x623   : > { %v5274_v36 = vpop.f32.mrb[70].mxu1  ;;  %v4322_v46 = vadd.f32 %v7929_v33, %v4224_v31 }
 0x624   : > { %v4325_v8 = vadd.f32 %v5274_v36, %v7929_v33  ;;  %4402 = vrot.lane.b32.xlu0 %v4324_v45, %s5945_s19  ;;  %v4227_v60 = vpop.f32.mrb[71].mxu1 }
 0x625   : > { %v4323_v39 = vadd.f32 %v7929_v33, %v4227_v60 }
 0x626   : > { %4404 = vrot.lane.b32.xlu1 %v4325_v8, %s5945_s19 }
 0x628   : > { %4398 = vrot.lane.b32.xlu0 %v4322_v46, %s5945_s19 }
 0x62a   : > { %4400 = vrot.lane.b32.xlu1 %v4323_v39, %s5945_s19 }
 0x62d   : > { %v5277_v51 = vpop.f32.mrb[72].mxu1 }
 0x62e   : > { %v4328_v43 = vadd.f32 %v5277_v51, %v7929_v33  ;;  %v4240_v30 = vpop.f32.mrb[73].mxu1 }
 0x62f   : > { %v5278_v18 = vpop.f32.mrb[74].mxu1  ;;  %v4326_v23 = vadd.f32 %v7929_v33, %v4240_v30 }
 0x630   : > { %v4329_v52 = vadd.f32 %v5278_v18, %v7929_v33  ;;  %4410 = vrot.lane.b32.xlu0 %v4328_v43, %s5945_s19  ;;  %v4243_v49 = vpop.f32.mrb[75].mxu1 }
 0x631   : > { %v4327_v14 = vadd.f32 %v7929_v33, %v4243_v49 }
 0x632   : > { %4412 = vrot.lane.b32.xlu1 %v4329_v52, %s5945_s19 }
 0x634   : > { %4406 = vrot.lane.b32.xlu0 %v4326_v23, %s5945_s19 }
 0x636   : > { %4408 = vrot.lane.b32.xlu1 %v4327_v14, %s5945_s19 }
 0x639   : > { %v5281_v19 = vpop.f32.mrb[76].mxu1 }
 0x63a   : > { %v4332_v47 = vadd.f32 %v5281_v19, %v7929_v33  ;;  %v4256_v53 = vpop.f32.mrb[77].mxu1 }
 0x63b   : > { %v5282_v62 = vpop.f32.mrb[78].mxu1  ;;  %v4330_v27 = vadd.f32 %v7929_v33, %v4256_v53 }
 0x63c   : > { %v4333_v41 = vadd.f32 %v5282_v62, %v7929_v33  ;;  %4418 = vrot.lane.b32.xlu0 %v4332_v47, %s5945_s19  ;;  %v4259_v37 = vpop.f32.mrb[79].mxu1 }
 0x63d   : > { %v4331_v15 = vadd.f32 %v7929_v33, %v4259_v37 }
 0x63e   : > { %4420 = vrot.lane.b32.xlu1 %v4333_v41, %s5945_s19 }
 0x640   : > { %4414 = vrot.lane.b32.xlu0 %v4330_v27, %s5945_s19 }
 0x642   : > { %4416 = vrot.lane.b32.xlu1 %v4331_v15, %s5945_s19 }
 0x647   : > { %v5285_v24 = vpop.f32.mrb[80].mxu1 }
 0x648   : > { %v4336_v56 = vadd.f32 %v5285_v24, %v7929_v33  ;;  %v4272_v59 = vpop.f32.mrb[81].mxu1 }
 0x649   : > { %v5286_v34 = vpop.f32.mrb[82].mxu1  ;;  %v4334_v29 = vadd.f32 %v7929_v33, %v4272_v59 }
 0x64a   : > { %v4337_v0 = vadd.f32 %v5286_v34, %v7929_v33  ;;  %4426 = vrot.lane.b32.xlu0 %v4336_v56, %s5945_s19  ;;  %v4275_v42 = vpop.f32.mrb[83].mxu1  ;;  %v8257_v34 = vld [vmem:[#allocation29_spill] sm:$0xff] }
 0x64b   : > { %v4335_v25 = vadd.f32 %v7929_v33, %v4275_v42  ;;  %v8258_v42 = vld [vmem:[#allocation35_spill] sm:$0xff] }
 0x64c   : > { %4428 = vrot.lane.b32.xlu1 %v4337_v0, %s5945_s19 }
 0x64e   : > { %4422 = vrot.lane.b32.xlu0 %v4334_v29, %s5945_s19 }
 0x64f   : > { %v5289_v10 = vpop.f32.mrb[84].mxu1 }
 0x650   : > { %4424 = vrot.lane.b32.xlu1 %v4335_v25, %s5945_s19  ;;  %v4340_v61 = vadd.f32 %v5289_v10, %v7929_v33  ;;  %v4288_v11 = vpop.f32.mrb[85].mxu1  ;;  %v8259_v25 = vld [vmem:[#allocation34_spill] sm:$0xff] }
 0x651   : > { %v5290_v35 = vpop.f32.mrb[86].mxu1  ;;  %v4338_v63 = vadd.f32 %v7929_v33, %v4288_v11 }
 0x652   : > { %v4341_v54 = vadd.f32 %v5290_v35, %v7929_v33  ;;  %4434 = vrot.lane.b32.xlu0 %v4340_v61, %s5945_s19  ;;  %v4291_v21 = vpop.f32.mrb[87].mxu1  ;;  %v8260_v61 = vld [vmem:[#allocation31_spill] sm:$0xff]  ;;  %v8261_v35 = vld [vmem:[#allocation30_spill] sm:$0xff] }
 0x653   : > { %v4339_v2 = vadd.f32 %v7929_v33, %v4291_v21 }
 0x654   : > { %4436 = vrot.lane.b32.xlu1 %v4341_v54, %s5945_s19 }
 0x656   : > { %4430 = vrot.lane.b32.xlu0 %v4338_v63, %s5945_s19 }
 0x658   : > { %4432 = vrot.lane.b32.xlu1 %v4339_v2, %s5945_s19 }
 0x672   : > { %v4379_v58 = vpop.permute.xlu0 %4378 }
 0x673   : > { %v4472_v45 = vadd.f32 %v4379_v58, %v7289_v32  ;;  %v8262_v58 = vld [vmem:[#allocation33_spill] sm:$0xff] }
 0x674   : > { %v4381_v31 = vpop.permute.xlu1 %4380 }
 0x675   : > { %v4473_v36 = vadd.f32 %v4381_v31, %v7284_v44  ;;  %4538 = vrot.lane.b32.xlu0 %v4472_v45, %s5948_s25 }
 0x676   : > { %v4375_v8 = vpop.permute.xlu0 %4374 }
 0x677   : > { %v4470_v60 = vadd.f32 %v4375_v8, %v7251_v6  ;;  %4540 = vrot.lane.b32.xlu1 %v4473_v36, %s5948_s25  ;;  %v8263_v36 = vld [vmem:[#allocation32_spill] sm:$0xff] }
 0x678   : > { %v4377_v46 = vpop.permute.xlu1 %4376 }
 0x679   : > { %v4471_v33 = vadd.f32 %v4377_v46, %v7254_v55  ;;  %4534 = vrot.lane.b32.xlu0 %v4470_v60, %s5948_s25  ;;  %v8264_v60 = vld [vmem:[#allocation37_spill] sm:$0xff] }
 0x67b   : > { %4536 = vrot.lane.b32.xlu1 %v4471_v33, %s5948_s25  ;;  %v8265_v33 = vld [vmem:[#allocation36_spill] sm:$0xff] }
 0x67e   : > { %v4387_v39 = vpop.permute.xlu0 %4386 }
 0x67f   : > { %v4476_v32 = vadd.f32 %v4387_v39, %v7333_v28 }
 0x680   : > { %v4389_v51 = vpop.permute.xlu1 %4388 }
 0x681   : > { %v4477_v44 = vadd.f32 %v4389_v51, %v7330_v3  ;;  %4546 = vrot.lane.b32.xlu0 %v4476_v32, %s5948_s25 }
 0x682   : > { %v4383_v43 = vpop.permute.xlu0 %4382 }
 0x683   : > { %v4474_v6 = vadd.f32 %v4383_v43, %v7278_v50  ;;  %4548 = vrot.lane.b32.xlu1 %v4477_v44, %s5948_s25 }
 0x684   : > { %v4385_v30 = vpop.permute.xlu1 %4384 }
 0x685   : > { %v4475_v55 = vadd.f32 %v4385_v30, %v7281_v1  ;;  %4542 = vrot.lane.b32.xlu0 %v4474_v6, %s5948_s25 }
 0x687   : > { %4544 = vrot.lane.b32.xlu1 %v4475_v55, %s5948_s25 }
 0x68a   : > { %v4395_v18 = vpop.permute.xlu0 %4394 }
 0x68b   : > { %v4480_v28 = vadd.f32 %v4395_v18, %v7373_v40 }
 0x68c   : > { %v4397_v52 = vpop.permute.xlu1 %4396 }
 0x68d   : > { %v4481_v3 = vadd.f32 %v4397_v52, %v7368_v4  ;;  %4554 = vrot.lane.b32.xlu0 %v4480_v28, %s5948_s25 }
 0x68e   : > { %v4391_v49 = vpop.permute.xlu0 %4390 }
 0x68f   : > { %v4478_v50 = vadd.f32 %v4391_v49, %v7327_v48  ;;  %4556 = vrot.lane.b32.xlu1 %v4481_v3, %s5948_s25 }
 0x690   : > { %v4393_v23 = vpop.permute.xlu1 %4392 }
 0x691   : > { %v4479_v1 = vadd.f32 %v4393_v23, %v7319_v5  ;;  %4550 = vrot.lane.b32.xlu0 %v4478_v50, %s5948_s25 }
 0x693   : > { %4552 = vrot.lane.b32.xlu1 %v4479_v1, %s5948_s25 }
 0x696   : > { %v4403_v14 = vpop.permute.xlu0 %4402 }
 0x697   : > { %v4484_v40 = vadd.f32 %v4403_v14, %v7411_v17 }
 0x698   : > { %v4405_v19 = vpop.permute.xlu1 %4404 }
 0x699   : > { %v4485_v4 = vadd.f32 %v4405_v19, %v7408_v38  ;;  %4562 = vrot.lane.b32.xlu0 %v4484_v40, %s5948_s25 }
 0x69a   : > { %v4399_v47 = vpop.permute.xlu0 %4398 }
 0x69b   : > { %v4482_v48 = vadd.f32 %v4399_v47, %v7363_v26  ;;  %4564 = vrot.lane.b32.xlu1 %v4485_v4, %s5948_s25 }
 0x69c   : > { %v4401_v53 = vpop.permute.xlu1 %4400 }
 0x69d   : > { %v4483_v5 = vadd.f32 %v4401_v53, %v7355_v57  ;;  %4558 = vrot.lane.b32.xlu0 %v4482_v48, %s5948_s25 }
 0x69f   : > { %4560 = vrot.lane.b32.xlu1 %v4483_v5, %s5948_s25 }
 0x6a2   : > { %v4411_v62 = vpop.permute.xlu0 %4410 }
 0x6a3   : > { %v4488_v17 = vadd.f32 %v4411_v62, %v7452_v12 }
 0x6a4   : > { %v4413_v41 = vpop.permute.xlu1 %4412 }
 0x6a5   : > { %v4489_v38 = vadd.f32 %v4413_v41, %v7448_v20  ;;  %4570 = vrot.lane.b32.xlu0 %v4488_v17, %s5948_s25 }
 0x6a6   : > { %v4407_v37 = vpop.permute.xlu0 %4406 }
 0x6a7   : > { %v4486_v26 = vadd.f32 %v4407_v37, %v7405_v22  ;;  %4572 = vrot.lane.b32.xlu1 %v4489_v38, %s5948_s25 }
 0x6a8   : > { %v4409_v27 = vpop.permute.xlu1 %4408 }
 0x6a9   : > { %v4487_v57 = vadd.f32 %v4409_v27, %v7397_v7  ;;  %4566 = vrot.lane.b32.xlu0 %v4486_v26, %s5948_s25 }
 0x6ab   : > { %4568 = vrot.lane.b32.xlu1 %v4487_v57, %s5948_s25 }
 0x6ae   : > { %v4419_v15 = vpop.permute.xlu0 %4418 }
 0x6af   : > { %v4492_v12 = vadd.f32 %v4419_v15, %v7494_v9 }
 0x6b0   : > { %v4421_v24 = vpop.permute.xlu1 %4420 }
 0x6b1   : > { %v4493_v20 = vadd.f32 %v4421_v24, %v7485_v16  ;;  %4578 = vrot.lane.b32.xlu0 %v4492_v12, %s5948_s25 }
 0x6b2   : > { %v4415_v56 = vpop.permute.xlu0 %4414 }
 0x6b3   : > { %v4490_v22 = vadd.f32 %v4415_v56, %v7445_v13  ;;  %4580 = vrot.lane.b32.xlu1 %v4493_v20, %s5948_s25 }
 0x6b4   : > { %v4417_v59 = vpop.permute.xlu1 %4416 }
 0x6b5   : > { %v4491_v7 = vadd.f32 %v4417_v59, %v8257_v34  ;;  %4574 = vrot.lane.b32.xlu0 %v4490_v22, %s5948_s25 }
 0x6b7   : > { %4576 = vrot.lane.b32.xlu1 %v4491_v7, %s5948_s25 }
 0x6bc   : > { %v4427_v0 = vpop.permute.xlu0 %4426 }
 0x6bd   : > { %v4496_v9 = vadd.f32 %v4427_v0, %v8258_v42 }
 0x6be   : > { %v4429_v29 = vpop.permute.xlu1 %4428 }
 0x6bf   : > { %v4497_v16 = vadd.f32 %v4429_v29, %v8259_v25  ;;  %4586 = vrot.lane.b32.xlu0 %v4496_v9, %s5948_s25 }
 0x6c0   : > { %v4423_v10 = vpop.permute.xlu0 %4422 }
 0x6c1   : > { %v4494_v13 = vadd.f32 %v4423_v10, %v8260_v61  ;;  %4588 = vrot.lane.b32.xlu1 %v4497_v16, %s5948_s25 }
 0x6c2   : > { %v4425_v11 = vpop.permute.xlu1 %4424 }
 0x6c3   : > { %v4495_v54 = vadd.f32 %v4425_v11, %v8261_v35  ;;  %4582 = vrot.lane.b32.xlu0 %v4494_v13, %s5948_s25 }
 0x6c4   : > { %v4435_v21 = vpop.permute.xlu0 %4434 }
 0x6c5   : > { %4584 = vrot.lane.b32.xlu1 %v4495_v54, %s5948_s25  ;;  %v4500_v46 = vadd.f32 %v4435_v21, %v8264_v60 }
 0x6c6   : > { %v4437_v63 = vpop.permute.xlu1 %4436 }
 0x6c7   : > { %v4501_v39 = vadd.f32 %v4437_v63, %v8265_v33 }
 0x6c8   : > { %v4431_v2 = vpop.permute.xlu0 %4430 }
 0x6c9   : > { %v4498_v45 = vadd.f32 %v4431_v2, %v8262_v58 }
 0x6ca   : > { %v4433_v31 = vpop.permute.xlu1 %4432 }
 0x6cb   : > { %v4499_v8 = vadd.f32 %v4433_v31, %v8263_v36  ;;  %4590 = vrot.lane.b32.xlu0 %v4498_v45, %s5948_s25 }
 0x6cd   : > { %4592 = vrot.lane.b32.xlu1 %v4499_v8, %s5948_s25 }
 0x6cf   : > { %4594 = vrot.lane.b32.xlu0 %v4500_v46, %s5948_s25 }
 0x6d1   : > { %4596 = vrot.lane.b32.xlu1 %v4501_v39, %s5948_s25 }
 0x6e7   : > { %v4539_v32 = vpop.permute.xlu0 %4538 }
 0x6e8   : > { %4632 = vst.msk [vmem:[%s8061_s28 + $0x10] sm:$0xff] %vm1241_vm3, %v4539_v32 }
 0x6e9   : > { %v4541_v51 = vpop.permute.xlu1 %4540 }
 0x6ea   : > { %4633 = vst.msk [vmem:[%s8061_s28 + $0x18] sm:$0xff] %vm1241_vm3, %v4541_v51 }
 0x6eb   : > { %v4535_v44 = vpop.permute.xlu0 %4534 }
 0x6ec   : > { %4630 = vst.msk [vmem:[%s8061_s28] sm:$0xff] %vm1241_vm3, %v4535_v44 }
 0x6ed   : > { %v4537_v43 = vpop.permute.xlu1 %4536 }
 0x6ee   : > { %4631 = vst.msk [vmem:[%s8061_s28 + $0x8] sm:$0xff] %vm1241_vm3, %v4537_v43 }
 0x6f3   : > { %v4547_v6 = vpop.permute.xlu0 %4546 }
 0x6f4   : > { %4636 = vst.msk [vmem:[%s8061_s28 + $0x30] sm:$0xff] %vm1241_vm3, %v4547_v6 }
 0x6f5   : > { %v4549_v30 = vpop.permute.xlu1 %4548 }
 0x6f6   : > { %4637 = vst.msk [vmem:[%s8061_s28 + $0x38] sm:$0xff] %vm1241_vm3, %v4549_v30 }
 0x6f7   : > { %v4543_v55 = vpop.permute.xlu0 %4542 }
 0x6f8   : > { %4634 = vst.msk [vmem:[%s8061_s28 + $0x20] sm:$0xff] %vm1241_vm3, %v4543_v55 }
 0x6f9   : > { %v4545_v18 = vpop.permute.xlu1 %4544 }
 0x6fa   : > { %4635 = vst.msk [vmem:[%s8061_s28 + $0x28] sm:$0xff] %vm1241_vm3, %v4545_v18 }
 0x6ff   : > { %v4555_v28 = vpop.permute.xlu0 %4554 }
 0x700   : > { %4640 = vst.msk [vmem:[%s8061_s28 + $0x50] sm:$0xff] %vm1241_vm3, %v4555_v28 }
 0x701   : > { %v4557_v52 = vpop.permute.xlu1 %4556 }
 0x702   : > { %4641 = vst.msk [vmem:[%s8061_s28 + $0x58] sm:$0xff] %vm1241_vm3, %v4557_v52 }
 0x703   : > { %v4551_v3 = vpop.permute.xlu0 %4550 }
 0x704   : > { %4638 = vst.msk [vmem:[%s8061_s28 + $0x40] sm:$0xff] %vm1241_vm3, %v4551_v3 }
 0x705   : > { %v4553_v49 = vpop.permute.xlu1 %4552 }
 0x706   : > { %4639 = vst.msk [vmem:[%s8061_s28 + $0x48] sm:$0xff] %vm1241_vm3, %v4553_v49 }
 0x70b   : > { %v4563_v50 = vpop.permute.xlu0 %4562 }
 0x70c   : > { %4644 = vst.msk [vmem:[%s8061_s28 + $0x70] sm:$0xff] %vm1241_vm3, %v4563_v50 }
 0x70d   : > { %v4565_v23 = vpop.permute.xlu1 %4564 }
 0x70e   : > { %4645 = vst.msk [vmem:[%s8061_s28 + $0x78] sm:$0xff] %vm1241_vm3, %v4565_v23 }
 0x70f   : > { %v4559_v1 = vpop.permute.xlu0 %4558 }
 0x710   : > { %4642 = vst.msk [vmem:[%s8061_s28 + $0x60] sm:$0xff] %vm1241_vm3, %v4559_v1 }
 0x711   : > { %v4561_v14 = vpop.permute.xlu1 %4560 }
 0x712   : > { %4643 = vst.msk [vmem:[%s8061_s28 + $0x68] sm:$0xff] %vm1241_vm3, %v4561_v14 }
 0x717   : > { %v4571_v40 = vpop.permute.xlu0 %4570 }
 0x718   : > { %4648 = vst.msk [vmem:[%s8061_s28 + $0x90] sm:$0xff] %vm1241_vm3, %v4571_v40 }
 0x719   : > { %v4573_v19 = vpop.permute.xlu1 %4572 }
 0x71a   : > { %4649 = vst.msk [vmem:[%s8061_s28 + $0x98] sm:$0xff] %vm1241_vm3, %v4573_v19 }
 0x71b   : > { %v4567_v4 = vpop.permute.xlu0 %4566 }
 0x71c   : > { %4646 = vst.msk [vmem:[%s8061_s28 + $0x80] sm:$0xff] %vm1241_vm3, %v4567_v4 }
 0x71d   : > { %v4569_v47 = vpop.permute.xlu1 %4568 }
 0x71e   : > { %4647 = vst.msk [vmem:[%s8061_s28 + $0x88] sm:$0xff] %vm1241_vm3, %v4569_v47 }
 0x723   : > { %v4579_v48 = vpop.permute.xlu0 %4578 }
 0x724   : > { %4652 = vst.msk [vmem:[%s8061_s28 + $0xb0] sm:$0xff] %vm1241_vm3, %v4579_v48 }
 0x725   : > { %v4581_v53 = vpop.permute.xlu1 %4580 }
 0x726   : > { %4653 = vst.msk [vmem:[%s8061_s28 + $0xb8] sm:$0xff] %vm1241_vm3, %v4581_v53 }
 0x727   : > { %v4575_v5 = vpop.permute.xlu0 %4574 }
 0x728   : > { %4650 = vst.msk [vmem:[%s8061_s28 + $0xa0] sm:$0xff] %vm1241_vm3, %v4575_v5 }
 0x729   : > { %v4577_v62 = vpop.permute.xlu1 %4576 }
 0x72a   : > { %4651 = vst.msk [vmem:[%s8061_s28 + $0xa8] sm:$0xff] %vm1241_vm3, %v4577_v62 }
 0x731   : > { %v4587_v17 = vpop.permute.xlu0 %4586 }
 0x732   : > { %4656 = vst.msk [vmem:[%s8061_s28 + $0xd0] sm:$0xff] %vm1241_vm3, %v4587_v17 }
 0x733   : > { %v4589_v41 = vpop.permute.xlu1 %4588 }
 0x734   : > { %4657 = vst.msk [vmem:[%s8061_s28 + $0xd8] sm:$0xff] %vm1241_vm3, %v4589_v41 }
 0x735   : > { %v4583_v38 = vpop.permute.xlu0 %4582 }
 0x736   : > { %4654 = vst.msk [vmem:[%s8061_s28 + $0xc0] sm:$0xff] %vm1241_vm3, %v4583_v38 }
 0x737   : > { %v4585_v37 = vpop.permute.xlu1 %4584 }
 0x738   : > { %4655 = vst.msk [vmem:[%s8061_s28 + $0xc8] sm:$0xff] %vm1241_vm3, %v4585_v37 }
 0x73d   : > { %v4591_v26 = vpop.permute.xlu0 %4590 }
 0x73e   : > { %4658 = vst.msk [vmem:[%s8061_s28 + $0xe0] sm:$0xff] %vm1241_vm3, %v4591_v26 }
 0x73f   : > { %v4593_v27 = vpop.permute.xlu1 %4592 }
 0x740   : > { %4659 = vst.msk [vmem:[%s8061_s28 + $0xe8] sm:$0xff] %vm1241_vm3, %v4593_v27 }
 0x741   : > { %v4595_v57 = vpop.permute.xlu0 %4594 }
 0x742   : > { %4660 = vst.msk [vmem:[%s8061_s28 + $0xf0] sm:$0xff] %vm1241_vm3, %v4595_v57 }
 0x743   : > { %v4597_v15 = vpop.permute.xlu1 %4596 }
 0x744   : > { %4661 = vst.msk [vmem:[%s8061_s28 + $0xf8] sm:$0xff] %vm1241_vm3, %v4597_v15 }
 0x745   : > { %5834 = shalt.err (!%p5831_p9)
}
 0x746   : > { %s5835_s4 = scalar_lea.hbm %s8128_s29, 4096  ;;  %s5839_s26 = scalar_lea.hbm %s8267_s2, 8192 }
 0x747   : > { %p5836_p4 = scmp.ne.s32.totalorder %s8128_s29, %s5835_s4  ;;  %p5840_p3 = scmp.lt.u32.totalorder %s8128_s29, %s8267_s2 }
 0x748   : > { %p5841_p12 = scmp.lt.u32.totalorder %s5839_s26, %s5835_s4  ;;  %p5843_p10 = scmp.lt.u32.totalorder %s5835_s4, %s8128_s29 }
 0x749   : > { %p5837_p6 = pnand %p5836_p4, %p8268_p13 }
 0x74a   : > { %p5842_p0 = por %p5841_p12, %p5840_p3 }
 0x74b   : > { %p5838_p11 = pneg %p5837_p6 }
 0x74c   : > { %p5844_p2 = por %p5843_p10, %p5842_p0 }
 0x74e   : > { %p5845_p7 = pnand %p5844_p2, %p5838_p11 }
 0x750   : > { %5848 = shalt.err (!%p5845_p7)
}
 0x751   : > { %s5950_s27 = smov 128  }
 0x752   : > { %5407 = dma.vmem_to_hbm [thread:$0]  (%p8268_p13), %s8132_s0, 4096, %s8128_s29, %s4663_s24, %s5950_s27, %s5950_s27, %s5945_s19  }
 0x753 PF: > { %s4694_s30 = sand.u32 1, %s5907_s13   ;;  %p8269_p5 = scmp.ne.s32.totalorder %s8233_s7, 0 }
 0x754   : > { %p8270_p1 = scmp.ge.s32.totalorder %s5927_s18, 2  ;;  %s4695_s22 = scalar_lea.sflag [#allocation4], %s4694_s30 }
 0x756   : > { %p5442_p8 = pnand %p8270_p1, %p8269_p5 }
 0x758   : > { %5902 = dma.done.wait (!%p5442_p8), %s4695_s22, 4096  }
 0x759   : > { %5904 = vsyncadd (!%p5442_p8), %s4695_s22, 4294963200  ;;  %s33_s18 = sadd.s32 1, %s5927_s18   ;;  %s8271_s3 = smov %s8278_s16 }
 0x75a   : > { %p30_p9 = scmp.ge.s32.totalorder %s33_s18, 4   ;;  %s8272_s13 = smov %s5911_s14 }
 0x75b   : > { %s8273_s14 = smov %s5915_s15  ;;  %s8274_s15 = smov %s6258_s5 }
 0x75c   : > { %s8275_s16 = smov %s5923_s17  ;;  %s8276_s17 = smov %s8271_s3 }
 0x75d   :  { %32 = sbr.rel (!%p30_p9) target bundleno = 22 (0x16), region = 152 }
 0x764   :  { %4700 = vsyncpa [#allocation3], 1 }
 0x765   :  { %4702 = vsyncpa [#allocation3 + $0x1], 1 }
 0x766   :  { %4703 = vsyncpa [#allocation6], 1 }
 0x767   :  { %4705 = vsyncpa [#allocation6 + $0x1], 1 }
 0x768   :  { %4706 = vsyncpa [#allocation9], 1 }
 0x769   :  { %4707 = vsyncpa [#allocation12], 1 }
 0x76a   :  { %4708 = vsyncpa [#allocation15], 1 }
 0x76b   :  { %4709 = vsyncpa [#allocation18], 1 }
 0x76c   :  { %4710 = vsyncpa [#allocation4], 1 }
 0x76d   :  { %4712 = vsyncpa [#allocation4 + $0x1], 1 }

</bundles_post_ra>
